<compile_context>
chip_gen: v6e
topology: v6e:2x2x1
jax: 0.10.0
libtpu: 0.0.40
codegen_flags: <defaults>
</compile_context>

<pallas_src>
import functools

import jax
import jax.numpy as jnp
from jax.experimental import pallas as pl
from jax.experimental.pallas import tpu as pltpu


# ---------------------------------------------------------------------------
# Pallas kernel: implicit-GEMM conv (K*K accumulated MXU matmuls) fused with
# folded-BN bias and LeakyReLU(0.1).
# ---------------------------------------------------------------------------
def _conv_bn_lrelu_kernel(x_ref, w_ref, b_ref, o_ref, acc_ref, *,
                          K, TH, OW, stride, dilation):
    """One grid step = one batch element (full padded image resident in VMEM)
    x one tile of TH output rows (full output width).

      x_ref:   (Hp, Wp, Cin)       bf16  padded NHWC image (batch dim squeezed)
      w_ref:   (K*K, Cin, Coutp)   bf16  conv weight with BN scale folded in
      b_ref:   (1, Coutp)          f32   folded BN bias
      o_ref:   (TH, OW, Coutp)     f32   output tile
      acc_ref: (TH*OW, Coutp)      f32   VMEM accumulator scratch
    """
    row0 = pl.program_id(1) * (TH * stride)
    if (TH * stride) % 8 == 0:
        row0 = pl.multiple_of(row0, TH * stride)

    for kh in range(K):
        for kw in range(K):
            r0 = row0 + kh * dilation
            c0 = kw * dilation
            if stride == 1:
                rows = pl.ds(r0, TH)
                cols = pl.ds(c0, OW)
            else:
                rows = pl.ds(r0, TH, stride)
                cols = pl.ds(c0, OW, stride)
            # Shifted slice of the resident input tile -> (TH*OW, Cin) bf16.
            patch = x_ref[rows, cols, :].reshape(TH * OW, -1)
            # Per-tap (Cin, Coutp) weight slab; MXU matmul with f32 accumulation.
            tap = jnp.dot(patch, w_ref[kh * K + kw],
                          preferred_element_type=jnp.float32)
            if kh == 0 and kw == 0:
                acc_ref[...] = tap
            else:
                acc_ref[...] += tap

    y = acc_ref[...] + b_ref[...]              # folded BN bias (scale already in W)
    y = jnp.where(y >= 0.0, y, 0.1 * y)        # LeakyReLU(0.1)
    o_ref[...] = y.reshape(TH, OW, -1).astype(o_ref.dtype)


# ---------------------------------------------------------------------------
# BasicConv wrapper (non-depthwise path: conv -> BN -> LeakyReLU)
# ---------------------------------------------------------------------------
def basic_conv_forward(x_nchw, weight, bn_gamma, bn_beta, bn_mean, bn_var,
                       *, stride=1, padding=0, dilation=1, eps=1e-5,
                       target_tile_rows=1024):
    """x_nchw: (N, Cin, H, W).  weight: (Cout, Cin, K, K) (PyTorch OIHW layout)."""
    N, Cin, H, W = x_nchw.shape
    Cout, _, K, _ = weight.shape

    OH = (H + 2 * padding - dilation * (K - 1) - 1) // stride + 1
    OW = (W + 2 * padding - dilation * (K - 1) - 1) // stride + 1

    # Output-row tile height: multiple of 8 when possible, big enough to amortize the
    # ~0.35us per-grid-step overhead, small enough that the f32 accumulator fits VMEM.
    th = max(1, target_tile_rows // max(OW, 1))
    th = max(8, (th // 8) * 8)
    TH = min(OH, th)
    R = -(-OH // TH)            # cdiv
    OH_pad = R * TH

    # Padded-input extents so every row tile's reads stay in bounds.
    Wp = W + 2 * padding
    Hp_need = (OH_pad - 1) * stride + dilation * (K - 1) + 1
    pad_bottom = max(0, Hp_need - (H + 2 * padding))
    Hp = H + 2 * padding + pad_bottom

    # NCHW -> NHWC, spatial zero pad, bf16 for the MXU (f32 accumulation in-kernel).
    x = jnp.transpose(x_nchw, (0, 2, 3, 1)).astype(jnp.float32)
    x = jnp.pad(x, ((0, 0), (padding, padding + pad_bottom),
                    (padding, padding), (0, 0)))
    x = x.astype(jnp.bfloat16)

    # Fold BatchNorm2d (eval mode): scale into the weights, bias added in-kernel.
    inv_std = 1.0 / jnp.sqrt(bn_var.astype(jnp.float32) + eps)
    scale = bn_gamma.astype(jnp.float32) * inv_std                     # (Cout,)
    bias = bn_beta.astype(jnp.float32) - bn_mean.astype(jnp.float32) * scale

    # Lane-dense output channels: pad Cout up to a multiple of 128.
    Coutp = ((Cout + 127) // 128) * 128
    w = weight.astype(jnp.float32) * scale[:, None, None, None]        # (Cout,Cin,K,K)
    w = jnp.transpose(w, (2, 3, 1, 0)).reshape(K * K, Cin, Cout)       # (K*K,Cin,Cout)
    w = jnp.pad(w, ((0, 0), (0, 0), (0, Coutp - Cout))).astype(jnp.bfloat16)
    b = jnp.pad(bias, (0, Coutp - Cout)).reshape(1, Coutp).astype(jnp.float32)

    kernel = functools.partial(_conv_bn_lrelu_kernel, K=K, TH=TH, OW=OW,
                               stride=stride, dilation=dilation)

    out = pl.pallas_call(
        kernel,
        out_shape=jax.ShapeDtypeStruct((N, OH_pad, OW, Coutp), jnp.float32),
        grid_spec=pltpu.PrefetchScalarGridSpec(
            num_scalar_prefetch=0,
            grid=(N, R),
            in_specs=[
                # Full padded image; block index depends only on n, so it is kept
                # resident (no re-DMA) across the row-tile axis.
                pl.BlockSpec((None, Hp, Wp, Cin), lambda n, r: (n, 0, 0, 0)),
                # Full weight / bias, constant index -> fetched once.
                pl.BlockSpec((K * K, Cin, Coutp), lambda n, r: (0, 0, 0)),
                pl.BlockSpec((1, Coutp), lambda n, r: (0, 0)),
            ],
            out_specs=pl.BlockSpec((None, TH, OW, Coutp),
                                   lambda n, r: (n, r, 0, 0)),
            scratch_shapes=[pltpu.VMEM((TH * OW, Coutp), jnp.float32)],
        ),
        compiler_params=pltpu.CompilerParams(
            dimension_semantics=("parallel", "parallel"),
            vmem_limit_bytes=64 * 1024 * 1024),
    )(x, w, b)

    # Drop padded rows / channels, back to NCHW.
    out = out[:, :OH, :, :Cout]
    return jnp.transpose(out, (0, 3, 1, 2))


# ---------------------------------------------------------------------------
# Pure-JAX reference for correctness check
# ---------------------------------------------------------------------------
def basic_conv_reference(x_nchw, weight, bn_gamma, bn_beta, bn_mean, bn_var,
                         *, stride=1, padding=0, dilation=1, eps=1e-5):
    y = jax.lax.conv_general_dilated(
        x_nchw.astype(jnp.float32), weight.astype(jnp.float32),
        window_strides=(stride, stride),
        padding=[(padding, padding), (padding, padding)],
        rhs_dilation=(dilation, dilation),
        dimension_numbers=("NCHW", "OIHW", "NCHW"))
    scale = (bn_gamma / jnp.sqrt(bn_var + eps)).reshape(1, -1, 1, 1)
    bias = (bn_beta - bn_mean * bn_gamma / jnp.sqrt(bn_var + eps)).reshape(1, -1, 1, 1)
    y = y * scale + bias
    return jnp.where(y >= 0, y, 0.1 * y)


# TODO(synk): depthwise=True path (grouped conv + second 1x1 conv) not implemented;
# default BasicConv config is depthwise=False (and act='lrelu', norm='BN').

if __name__ == "__main__":
    key = jax.random.PRNGKey(0)
    k_x, k_w = jax.random.split(key)

    # Shapes consistent with BasicConv(in_dim=4, out_dim=8, kernel_size=3,
    # padding=1, stride=1, act='lrelu', norm='BN')
    N, Cin, H, W = 2, 4, 16, 16
    Cout, K, pad, stride = 8, 3, 1, 1

    x = jax.random.normal(k_x, (N, Cin, H, W), dtype=jnp.float32)
    weight = 0.1 * jax.random.normal(k_w, (Cout, Cin, K, K), dtype=jnp.float32)

    # Deterministic, non-trivial BN parameters (eval-mode running stats).
    bn_gamma = 0.5 + 0.1 * jnp.arange(Cout, dtype=jnp.float32)
    bn_beta = jnp.linspace(-0.2, 0.2, Cout, dtype=jnp.float32)
    bn_mean = 0.05 * jnp.arange(Cout, dtype=jnp.float32)
    bn_var = 1.0 + 0.1 * jnp.arange(Cout, dtype=jnp.float32)

    fwd = jax.jit(functools.partial(basic_conv_forward, stride=stride, padding=pad))
    out = fwd(x, weight, bn_gamma, bn_beta, bn_mean, bn_var)
    out = jax.block_until_ready(out)

    ref = basic_conv_reference(x, weight, bn_gamma, bn_beta, bn_mean, bn_var,
                               stride=stride, padding=pad)
    assert out.shape == (N, Cout, H, W), out.shape
    # bf16 operands on the MXU (f32 accumulation) -> loosen tolerance vs f32 reference.
    max_err = float(jnp.max(jnp.abs(out - ref)))
    assert jnp.allclose(out, ref, atol=5e-2, rtol=5e-2), max_err

    print("KERNEL_OK")
</pallas_src>

<mosaic_0001>
module attributes {stable_mosaic.version = 11 : i64} {
  func.func @_conv_bn_lrelu_kernel(%arg0: i32, %arg1: i32, %arg2: memref<1x18x18x4xbf16, #tpu.memory_space<vmem>>, %arg3: memref<9x4x128xbf16, #tpu.memory_space<vmem>>, %arg4: memref<1x128xf32, #tpu.memory_space<vmem>>, %arg5: memref<1x16x16x128xf32, #tpu.memory_space<vmem>>, %arg6: memref<256x128xf32, #tpu.memory_space<vmem>>) attributes {dimension_semantics = [#tpu.dimension_semantics<parallel>, #tpu.dimension_semantics<parallel>], iteration_bounds = array<i64: 2, 1>, scalar_prefetch = 0 : i64, scratch_operands = 1 : i64, tpu.core_type = #tpu.core_type<tc>, window_params = [{transform_indices = @transform_0, window_bounds = array<i64: 1, 18, 18, 4>}, {pipeline_mode = #tpu.pipeline_mode<synchronous>, transform_indices = @transform_1, window_bounds = array<i64: 9, 4, 128>}, {pipeline_mode = #tpu.pipeline_mode<synchronous>, transform_indices = @transform_2, window_bounds = array<i64: 1, 128>}, {transform_indices = @transform_3, window_bounds = array<i64: 1, 16, 16, 128>}]} {
    %c16_i32 = arith.constant 16 : i32
    %0 = arith.muli %arg1, %c16_i32 : i32
    %1 = tpu.assume_multiple %0, 16 : i32
    %c0_i32 = arith.constant 0 : i32
    %2 = arith.addi %1, %c0_i32 : i32
    %c0 = arith.constant 0 : index
    %3 = arith.index_cast %2 : i32 to index
    %c0_0 = arith.constant 0 : index
    %c0_1 = arith.constant 0 : index
    %4 = vector.load %arg2[%c0, %3, %c0_0, %c0_1] : memref<1x18x18x4xbf16, #tpu.memory_space<vmem>>, vector<1x16x16x4xbf16>
    %5 = vector.shape_cast %4 : vector<1x16x16x4xbf16> to vector<16x16x4xbf16>
    %6 = vector.shape_cast %5 : vector<16x16x4xbf16> to vector<256x4xbf16>
    %c0_2 = arith.constant 0 : index
    %c0_3 = arith.constant 0 : index
    %c0_4 = arith.constant 0 : index
    %7 = vector.load %arg3[%c0_2, %c0_3, %c0_4] : memref<9x4x128xbf16, #tpu.memory_space<vmem>>, vector<1x4x128xbf16>
    %8 = vector.shape_cast %7 : vector<1x4x128xbf16> to vector<4x128xbf16>
    %cst = arith.constant dense<0.000000e+00> : vector<256x128xf32>
    %9 = tpu.matmul %6, %8, %cst {dimension_numbers = #tpu.dot_dimension_numbers<[1], [0], [0], [1], [0, 0, 1, 1], [], []>} : vector<256x4xbf16>, vector<4x128xbf16>, vector<256x128xf32> -> vector<256x128xf32>
    %c0_5 = arith.constant 0 : index
    %c0_6 = arith.constant 0 : index
    %10 = vector.load %arg6[%c0_5, %c0_6] : memref<256x128xf32, #tpu.memory_space<vmem>>, vector<256x128xf32>
    tpu.vector_store %arg6[%c0_5, %c0_6], %9 {strides = array<i32>} : memref<256x128xf32, #tpu.memory_space<vmem>>, vector<256x128xf32>,
    %c0_i32_7 = arith.constant 0 : i32
    %11 = arith.addi %1, %c0_i32_7 : i32
    %c0_8 = arith.constant 0 : index
    %12 = arith.index_cast %11 : i32 to index
    %c1 = arith.constant 1 : index
    %c0_9 = arith.constant 0 : index
    %13 = vector.load %arg2[%c0_8, %12, %c1, %c0_9] : memref<1x18x18x4xbf16, #tpu.memory_space<vmem>>, vector<1x16x16x4xbf16>
    %14 = vector.shape_cast %13 : vector<1x16x16x4xbf16> to vector<16x16x4xbf16>
    %15 = vector.shape_cast %14 : vector<16x16x4xbf16> to vector<256x4xbf16>
    %c1_10 = arith.constant 1 : index
    %c0_11 = arith.constant 0 : index
    %c0_12 = arith.constant 0 : index
    %16 = vector.load %arg3[%c1_10, %c0_11, %c0_12] : memref<9x4x128xbf16, #tpu.memory_space<vmem>>, vector<1x4x128xbf16>
    %17 = vector.shape_cast %16 : vector<1x4x128xbf16> to vector<4x128xbf16>
    %cst_13 = arith.constant dense<0.000000e+00> : vector<256x128xf32>
    %18 = tpu.matmul %15, %17, %cst_13 {dimension_numbers = #tpu.dot_dimension_numbers<[1], [0], [0], [1], [0, 0, 1, 1], [], []>} : vector<256x4xbf16>, vector<4x128xbf16>, vector<256x128xf32> -> vector<256x128xf32>
    %c0_14 = arith.constant 0 : index
    %c0_15 = arith.constant 0 : index
    %19 = vector.load %arg6[%c0_14, %c0_15] : memref<256x128xf32, #tpu.memory_space<vmem>>, vector<256x128xf32>
    %20 = arith.addf %19, %18 : vector<256x128xf32>
    %c0_16 = arith.constant 0 : index
    %c0_17 = arith.constant 0 : index
    %21 = vector.load %arg6[%c0_16, %c0_17] : memref<256x128xf32, #tpu.memory_space<vmem>>, vector<256x128xf32>
    tpu.vector_store %arg6[%c0_16, %c0_17], %20 {strides = array<i32>} : memref<256x128xf32, #tpu.memory_space<vmem>>, vector<256x128xf32>,
    %c0_i32_18 = arith.constant 0 : i32
    %22 = arith.addi %1, %c0_i32_18 : i32
    %c0_19 = arith.constant 0 : index
    %23 = arith.index_cast %22 : i32 to index
    %c2 = arith.constant 2 : index
    %c0_20 = arith.constant 0 : index
    %24 = vector.load %arg2[%c0_19, %23, %c2, %c0_20] : memref<1x18x18x4xbf16, #tpu.memory_space<vmem>>, vector<1x16x16x4xbf16>
    %25 = vector.shape_cast %24 : vector<1x16x16x4xbf16> to vector<16x16x4xbf16>
    %26 = vector.shape_cast %25 : vector<16x16x4xbf16> to vector<256x4xbf16>
    %c2_21 = arith.constant 2 : index
    %c0_22 = arith.constant 0 : index
    %c0_23 = arith.constant 0 : index
    %27 = vector.load %arg3[%c2_21, %c0_22, %c0_23] : memref<9x4x128xbf16, #tpu.memory_space<vmem>>, vector<1x4x128xbf16>
    %28 = vector.shape_cast %27 : vector<1x4x128xbf16> to vector<4x128xbf16>
    %cst_24 = arith.constant dense<0.000000e+00> : vector<256x128xf32>
    %29 = tpu.matmul %26, %28, %cst_24 {dimension_numbers = #tpu.dot_dimension_numbers<[1], [0], [0], [1], [0, 0, 1, 1], [], []>} : vector<256x4xbf16>, vector<4x128xbf16>, vector<256x128xf32> -> vector<256x128xf32>
    %c0_25 = arith.constant 0 : index
    %c0_26 = arith.constant 0 : index
    %30 = vector.load %arg6[%c0_25, %c0_26] : memref<256x128xf32, #tpu.memory_space<vmem>>, vector<256x128xf32>
    %31 = arith.addf %30, %29 : vector<256x128xf32>
    %c0_27 = arith.constant 0 : index
    %c0_28 = arith.constant 0 : index
    %32 = vector.load %arg6[%c0_27, %c0_28] : memref<256x128xf32, #tpu.memory_space<vmem>>, vector<256x128xf32>
    tpu.vector_store %arg6[%c0_27, %c0_28], %31 {strides = array<i32>} : memref<256x128xf32, #tpu.memory_space<vmem>>, vector<256x128xf32>,
    %c1_i32 = arith.constant 1 : i32
    %33 = arith.addi %1, %c1_i32 : i32
    %c0_29 = arith.constant 0 : index
    %34 = arith.index_cast %33 : i32 to index
    %c0_30 = arith.constant 0 : index
    %c0_31 = arith.constant 0 : index
    %35 = vector.load %arg2[%c0_29, %34, %c0_30, %c0_31] : memref<1x18x18x4xbf16, #tpu.memory_space<vmem>>, vector<1x16x16x4xbf16>
    %36 = vector.shape_cast %35 : vector<1x16x16x4xbf16> to vector<16x16x4xbf16>
    %37 = vector.shape_cast %36 : vector<16x16x4xbf16> to vector<256x4xbf16>
    %c3 = arith.constant 3 : index
    %c0_32 = arith.constant 0 : index
    %c0_33 = arith.constant 0 : index
    %38 = vector.load %arg3[%c3, %c0_32, %c0_33] : memref<9x4x128xbf16, #tpu.memory_space<vmem>>, vector<1x4x128xbf16>
    %39 = vector.shape_cast %38 : vector<1x4x128xbf16> to vector<4x128xbf16>
    %cst_34 = arith.constant dense<0.000000e+00> : vector<256x128xf32>
    %40 = tpu.matmul %37, %39, %cst_34 {dimension_numbers = #tpu.dot_dimension_numbers<[1], [0], [0], [1], [0, 0, 1, 1], [], []>} : vector<256x4xbf16>, vector<4x128xbf16>, vector<256x128xf32> -> vector<256x128xf32>
    %c0_35 = arith.constant 0 : index
    %c0_36 = arith.constant 0 : index
    %41 = vector.load %arg6[%c0_35, %c0_36] : memref<256x128xf32, #tpu.memory_space<vmem>>, vector<256x128xf32>
    %42 = arith.addf %41, %40 : vector<256x128xf32>
    %c0_37 = arith.constant 0 : index
    %c0_38 = arith.constant 0 : index
    %43 = vector.load %arg6[%c0_37, %c0_38] : memref<256x128xf32, #tpu.memory_space<vmem>>, vector<256x128xf32>
    tpu.vector_store %arg6[%c0_37, %c0_38], %42 {strides = array<i32>} : memref<256x128xf32, #tpu.memory_space<vmem>>, vector<256x128xf32>,
    %c1_i32_39 = arith.constant 1 : i32
    %44 = arith.addi %1, %c1_i32_39 : i32
    %c0_40 = arith.constant 0 : index
    %45 = arith.index_cast %44 : i32 to index
    %c1_41 = arith.constant 1 : index
    %c0_42 = arith.constant 0 : index
    %46 = vector.load %arg2[%c0_40, %45, %c1_41, %c0_42] : memref<1x18x18x4xbf16, #tpu.memory_space<vmem>>, vector<1x16x16x4xbf16>
    %47 = vector.shape_cast %46 : vector<1x16x16x4xbf16> to vector<16x16x4xbf16>
    %48 = vector.shape_cast %47 : vector<16x16x4xbf16> to vector<256x4xbf16>
    %c4 = arith.constant 4 : index
    %c0_43 = arith.constant 0 : index
    %c0_44 = arith.constant 0 : index
    %49 = vector.load %arg3[%c4, %c0_43, %c0_44] : memref<9x4x128xbf16, #tpu.memory_space<vmem>>, vector<1x4x128xbf16>
    %50 = vector.shape_cast %49 : vector<1x4x128xbf16> to vector<4x128xbf16>
    %cst_45 = arith.constant dense<0.000000e+00> : vector<256x128xf32>
    %51 = tpu.matmul %48, %50, %cst_45 {dimension_numbers = #tpu.dot_dimension_numbers<[1], [0], [0], [1], [0, 0, 1, 1], [], []>} : vector<256x4xbf16>, vector<4x128xbf16>, vector<256x128xf32> -> vector<256x128xf32>
    %c0_46 = arith.constant 0 : index
    %c0_47 = arith.constant 0 : index
    %52 = vector.load %arg6[%c0_46, %c0_47] : memref<256x128xf32, #tpu.memory_space<vmem>>, vector<256x128xf32>
    %53 = arith.addf %52, %51 : vector<256x128xf32>
    %c0_48 = arith.constant 0 : index
    %c0_49 = arith.constant 0 : index
    %54 = vector.load %arg6[%c0_48, %c0_49] : memref<256x128xf32, #tpu.memory_space<vmem>>, vector<256x128xf32>
    tpu.vector_store %arg6[%c0_48, %c0_49], %53 {strides = array<i32>} : memref<256x128xf32, #tpu.memory_space<vmem>>, vector<256x128xf32>,
    %c1_i32_50 = arith.constant 1 : i32
    %55 = arith.addi %1, %c1_i32_50 : i32
    %c0_51 = arith.constant 0 : index
    %56 = arith.index_cast %55 : i32 to index
    %c2_52 = arith.constant 2 : index
    %c0_53 = arith.constant 0 : index
    %57 = vector.load %arg2[%c0_51, %56, %c2_52, %c0_53] : memref<1x18x18x4xbf16, #tpu.memory_space<vmem>>, vector<1x16x16x4xbf16>
    %58 = vector.shape_cast %57 : vector<1x16x16x4xbf16> to vector<16x16x4xbf16>
    %59 = vector.shape_cast %58 : vector<16x16x4xbf16> to vector<256x4xbf16>
    %c5 = arith.constant 5 : index
    %c0_54 = arith.constant 0 : index
    %c0_55 = arith.constant 0 : index
    %60 = vector.load %arg3[%c5, %c0_54, %c0_55] : memref<9x4x128xbf16, #tpu.memory_space<vmem>>, vector<1x4x128xbf16>
    %61 = vector.shape_cast %60 : vector<1x4x128xbf16> to vector<4x128xbf16>
    %cst_56 = arith.constant dense<0.000000e+00> : vector<256x128xf32>
    %62 = tpu.matmul %59, %61, %cst_56 {dimension_numbers = #tpu.dot_dimension_numbers<[1], [0], [0], [1], [0, 0, 1, 1], [], []>} : vector<256x4xbf16>, vector<4x128xbf16>, vector<256x128xf32> -> vector<256x128xf32>
    %c0_57 = arith.constant 0 : index
    %c0_58 = arith.constant 0 : index
    %63 = vector.load %arg6[%c0_57, %c0_58] : memref<256x128xf32, #tpu.memory_space<vmem>>, vector<256x128xf32>
    %64 = arith.addf %63, %62 : vector<256x128xf32>
    %c0_59 = arith.constant 0 : index
    %c0_60 = arith.constant 0 : index
    %65 = vector.load %arg6[%c0_59, %c0_60] : memref<256x128xf32, #tpu.memory_space<vmem>>, vector<256x128xf32>
    tpu.vector_store %arg6[%c0_59, %c0_60], %64 {strides = array<i32>} : memref<256x128xf32, #tpu.memory_space<vmem>>, vector<256x128xf32>,
    %c2_i32 = arith.constant 2 : i32
    %66 = arith.addi %1, %c2_i32 : i32
    %c0_61 = arith.constant 0 : index
    %67 = arith.index_cast %66 : i32 to index
    %c0_62 = arith.constant 0 : index
    %c0_63 = arith.constant 0 : index
    %68 = vector.load %arg2[%c0_61, %67, %c0_62, %c0_63] : memref<1x18x18x4xbf16, #tpu.memory_space<vmem>>, vector<1x16x16x4xbf16>
    %69 = vector.shape_cast %68 : vector<1x16x16x4xbf16> to vector<16x16x4xbf16>
    %70 = vector.shape_cast %69 : vector<16x16x4xbf16> to vector<256x4xbf16>
    %c6 = arith.constant 6 : index
    %c0_64 = arith.constant 0 : index
    %c0_65 = arith.constant 0 : index
    %71 = vector.load %arg3[%c6, %c0_64, %c0_65] : memref<9x4x128xbf16, #tpu.memory_space<vmem>>, vector<1x4x128xbf16>
    %72 = vector.shape_cast %71 : vector<1x4x128xbf16> to vector<4x128xbf16>
    %cst_66 = arith.constant dense<0.000000e+00> : vector<256x128xf32>
    %73 = tpu.matmul %70, %72, %cst_66 {dimension_numbers = #tpu.dot_dimension_numbers<[1], [0], [0], [1], [0, 0, 1, 1], [], []>} : vector<256x4xbf16>, vector<4x128xbf16>, vector<256x128xf32> -> vector<256x128xf32>
    %c0_67 = arith.constant 0 : index
    %c0_68 = arith.constant 0 : index
    %74 = vector.load %arg6[%c0_67, %c0_68] : memref<256x128xf32, #tpu.memory_space<vmem>>, vector<256x128xf32>
    %75 = arith.addf %74, %73 : vector<256x128xf32>
    %c0_69 = arith.constant 0 : index
    %c0_70 = arith.constant 0 : index
    %76 = vector.load %arg6[%c0_69, %c0_70] : memref<256x128xf32, #tpu.memory_space<vmem>>, vector<256x128xf32>
    tpu.vector_store %arg6[%c0_69, %c0_70], %75 {strides = array<i32>} : memref<256x128xf32, #tpu.memory_space<vmem>>, vector<256x128xf32>,
    %c2_i32_71 = arith.constant 2 : i32
    %77 = arith.addi %1, %c2_i32_71 : i32
    %c0_72 = arith.constant 0 : index
    %78 = arith.index_cast %77 : i32 to index
    %c1_73 = arith.constant 1 : index
    %c0_74 = arith.constant 0 : index
    %79 = vector.load %arg2[%c0_72, %78, %c1_73, %c0_74] : memref<1x18x18x4xbf16, #tpu.memory_space<vmem>>, vector<1x16x16x4xbf16>
    %80 = vector.shape_cast %79 : vector<1x16x16x4xbf16> to vector<16x16x4xbf16>
    %81 = vector.shape_cast %80 : vector<16x16x4xbf16> to vector<256x4xbf16>
    %c7 = arith.constant 7 : index
    %c0_75 = arith.constant 0 : index
    %c0_76 = arith.constant 0 : index
    %82 = vector.load %arg3[%c7, %c0_75, %c0_76] : memref<9x4x128xbf16, #tpu.memory_space<vmem>>, vector<1x4x128xbf16>
    %83 = vector.shape_cast %82 : vector<1x4x128xbf16> to vector<4x128xbf16>
    %cst_77 = arith.constant dense<0.000000e+00> : vector<256x128xf32>
    %84 = tpu.matmul %81, %83, %cst_77 {dimension_numbers = #tpu.dot_dimension_numbers<[1], [0], [0], [1], [0, 0, 1, 1], [], []>} : vector<256x4xbf16>, vector<4x128xbf16>, vector<256x128xf32> -> vector<256x128xf32>
    %c0_78 = arith.constant 0 : index
    %c0_79 = arith.constant 0 : index
    %85 = vector.load %arg6[%c0_78, %c0_79] : memref<256x128xf32, #tpu.memory_space<vmem>>, vector<256x128xf32>
    %86 = arith.addf %85, %84 : vector<256x128xf32>
    %c0_80 = arith.constant 0 : index
    %c0_81 = arith.constant 0 : index
    %87 = vector.load %arg6[%c0_80, %c0_81] : memref<256x128xf32, #tpu.memory_space<vmem>>, vector<256x128xf32>
    tpu.vector_store %arg6[%c0_80, %c0_81], %86 {strides = array<i32>} : memref<256x128xf32, #tpu.memory_space<vmem>>, vector<256x128xf32>,
    %c2_i32_82 = arith.constant 2 : i32
    %88 = arith.addi %1, %c2_i32_82 : i32
    %c0_83 = arith.constant 0 : index
    %89 = arith.index_cast %88 : i32 to index
    %c2_84 = arith.constant 2 : index
    %c0_85 = arith.constant 0 : index
    %90 = vector.load %arg2[%c0_83, %89, %c2_84, %c0_85] : memref<1x18x18x4xbf16, #tpu.memory_space<vmem>>, vector<1x16x16x4xbf16>
    %91 = vector.shape_cast %90 : vector<1x16x16x4xbf16> to vector<16x16x4xbf16>
    %92 = vector.shape_cast %91 : vector<16x16x4xbf16> to vector<256x4xbf16>
    %c8 = arith.constant 8 : index
    %c0_86 = arith.constant 0 : index
    %c0_87 = arith.constant 0 : index
    %93 = vector.load %arg3[%c8, %c0_86, %c0_87] : memref<9x4x128xbf16, #tpu.memory_space<vmem>>, vector<1x4x128xbf16>
    %94 = vector.shape_cast %93 : vector<1x4x128xbf16> to vector<4x128xbf16>
    %cst_88 = arith.constant dense<0.000000e+00> : vector<256x128xf32>
    %95 = tpu.matmul %92, %94, %cst_88 {dimension_numbers = #tpu.dot_dimension_numbers<[1], [0], [0], [1], [0, 0, 1, 1], [], []>} : vector<256x4xbf16>, vector<4x128xbf16>, vector<256x128xf32> -> vector<256x128xf32>
    %c0_89 = arith.constant 0 : index
    %c0_90 = arith.constant 0 : index
    %96 = vector.load %arg6[%c0_89, %c0_90] : memref<256x128xf32, #tpu.memory_space<vmem>>, vector<256x128xf32>
    %97 = arith.addf %96, %95 : vector<256x128xf32>
    %c0_91 = arith.constant 0 : index
    %c0_92 = arith.constant 0 : index
    %98 = vector.load %arg6[%c0_91, %c0_92] : memref<256x128xf32, #tpu.memory_space<vmem>>, vector<256x128xf32>
    tpu.vector_store %arg6[%c0_91, %c0_92], %97 {strides = array<i32>} : memref<256x128xf32, #tpu.memory_space<vmem>>, vector<256x128xf32>,
    %c0_93 = arith.constant 0 : index
    %c0_94 = arith.constant 0 : index
    %99 = vector.load %arg6[%c0_93, %c0_94] : memref<256x128xf32, #tpu.memory_space<vmem>>, vector<256x128xf32>
    %c0_95 = arith.constant 0 : index
    %c0_96 = arith.constant 0 : index
    %100 = vector.load %arg4[%c0_95, %c0_96] : memref<1x128xf32, #tpu.memory_space<vmem>>, vector<1x128xf32>
    %101 = vector.broadcast %100 : vector<1x128xf32> to vector<256x128xf32>
    %102 = arith.addf %99, %101 : vector<256x128xf32>
    %cst_97 = arith.constant 0.000000e+00 : f32
    %103 = vector.broadcast %cst_97 : f32 to vector<256x128xf32>
    %104 = arith.cmpf oge, %102, %103 : vector<256x128xf32>
    %cst_98 = arith.constant 1.000000e-01 : f32
    %105 = vector.broadcast %cst_98 : f32 to vector<256x128xf32>
    %106 = arith.mulf %105, %102 : vector<256x128xf32>
    %107 = arith.select %104, %102, %106 : vector<256x128xi1>, vector<256x128xf32>
    %108 = vector.shape_cast %107 : vector<256x128xf32> to vector<16x16x128xf32>
    %c0_99 = arith.constant 0 : index
    %c0_100 = arith.constant 0 : index
    %c0_101 = arith.constant 0 : index
    %c0_102 = arith.constant 0 : index
    %109 = vector.load %arg5[%c0_99, %c0_100, %c0_101, %c0_102] : memref<1x16x16x128xf32, #tpu.memory_space<vmem>>, vector<1x16x16x128xf32>
    %110 = vector.shape_cast %109 : vector<1x16x16x128xf32> to vector<16x16x128xf32>
    %111 = vector.shape_cast %108 : vector<16x16x128xf32> to vector<1x16x16x128xf32>
    tpu.vector_store %arg5[%c0_99, %c0_100, %c0_101, %c0_102], %111 {strides = array<i32>} : memref<1x16x16x128xf32, #tpu.memory_space<vmem>>, vector<1x16x16x128xf32>,
    return
  }
  func.func @transform_0(%arg0: i32, %arg1: i32) -> (i32, i32, i32, i32) {
    %c0_i32 = arith.constant 0 : i32
    %c0_i32_0 = arith.constant 0 : i32
    %c0_i32_1 = arith.constant 0 : i32
    %c0_i32_2 = arith.constant 0 : i32
    return %arg0, %c0_i32, %c0_i32_0, %c0_i32_1 : i32, i32, i32, i32
  }
  func.func @transform_1(%arg0: i32, %arg1: i32) -> (i32, i32, i32) {
    %c0_i32 = arith.constant 0 : i32
    %c0_i32_0 = arith.constant 0 : i32
    %c0_i32_1 = arith.constant 0 : i32
    %c0_i32_2 = arith.constant 0 : i32
    return %c0_i32, %c0_i32_0, %c0_i32_1 : i32, i32, i32
  }
  func.func @transform_2(%arg0: i32, %arg1: i32) -> (i32, i32) {
    %c0_i32 = arith.constant 0 : i32
    %c0_i32_0 = arith.constant 0 : i32
    %c0_i32_1 = arith.constant 0 : i32
    return %c0_i32, %c0_i32_0 : i32, i32
  }
  func.func @transform_3(%arg0: i32, %arg1: i32) -> (i32, i32, i32, i32) {
    %c0_i32 = arith.constant 0 : i32
    %c0_i32_0 = arith.constant 0 : i32
    %c0_i32_1 = arith.constant 0 : i32
    return %arg0, %arg1, %c0_i32, %c0_i32_0 : i32, i32, i32, i32
  }
}

</mosaic_0001>

<bundles_post_ra>
// kernel: basic_conv_forward.1
= control target key start
LH: loop header
LB: loop body
LE: loop exit
PB: predicated region body
PF: predicated region fallthrough
CT: control target
= control target key end

     0   :  { %s6982_s12 = smov 0   ;;  %s6984_s13 = smov 0   ;;  %s8714_s0 = inlined_call_operand.vmem [shape: bf16[2,18,18,4], index: 0, kind: input, shape index: {}]   ;;  %s8715_s1 = inlined_call_operand.vmem [shape: bf16[9,4,128], index: 1, kind: input, shape index: {}]   ;;  %s8716_s2 = inlined_call_operand.vmem [shape: f32[1,128], index: 2, kind: input, shape index: {}]   ;;  %s8717_s3 = inlined_call_operand.vmem [shape: f32[2,16,16,128], index: 3, kind: output, shape index: {}]  }
   0x1   :  { %s6986_s14 = smov 0  }
   0x2 LB: > { %s25_s15 = sadd.s32 1, %s6956_s13  ;;  %p5786_p0 = scmp.ge.s32.totalorder %s6960_s14, 1  ;;  %s6960_s14 = sphi %s6986_s14, %s13_s14   ;;  %s6956_s13 = sphi %s6984_s13, %s8823_s13   ;;  %s6952_s12 = sphi %s6982_s12, %s8822_s12  }
   0x3   : > { %p27_p1 = scmp.ge.s32.totalorder %s25_s15, 2  ;;  %p151_p2 = scmp.lt.s32.totalorder %s6960_s14, 3 }
   0x5   : > { %s8825_s15 = smov (%p27_p1, %s25_s15), 0  ;;  %p152_p3 = pnand %p5786_p0, %p151_p2 }
   0x7   : > { %155 = sbr.rel (%p152_p3) target bundleno = 551 (0x227), region = 32 }
   0xc   : > { %v233_v0 = vld [vmem:[%s8715_s1] sm:$0x3]  ;;  %vm363_vm0 = vcmask 1041408   ;;  %p180_p4 = scmp.lt.s32.totalorder %s6952_s12, 1  ;;  %v5822_v2 = vld [vmem:[%s8715_s1 + $0x2] sm:$0x3] }
   0xd   : > { %6856 = vmatprep.subr.msk.bf16.mxu1 %vm363_vm0, %v233_v0  ;;  %6855 = vmatprep.subr.msk.bf16.mxu0 %vm363_vm0, %v233_v0  ;;  %v365_v1 = vsel %vm363_vm0, %v233_v0, 0  ;;  %v5871_v3 = vld [vmem:[%s8715_s1 + $0x4] sm:$0x3]  ;;  %vm314_vm1 = vcmask 31744   ;;  %v5936_v8 = vld [vmem:[%s8715_s1 + $0x6] sm:$0x3] }
   0xe   : > { %6854 = vmatpush3.bf16.msra.mxu1 %v365_v1  ;;  %6548 = vmatpush3.bf16.msra.mxu0 %v365_v1  ;;  %s8827_s12 = smov (!%p180_p4, %s6952_s12), 1  ;;  %v1663_v7 = vsel %vm363_vm0, %v5871_v3, 0  ;;  %v1094_v10 = vsel %vm363_vm0, %v5822_v2, 0  ;;  %v6017_v11 = vld [vmem:[%s8715_s1 + $0x8] sm:$0x3]  ;;  %vm1449_vm2 = vcmask 1042432  }
   0xf   : > { %6857 = vmatprep.subr.msk.bf16.mxu1 %vm363_vm0, %v5822_v2  ;;  %6858 = vmatprep.subr.msk.bf16.mxu0 %vm363_vm0, %v5871_v3  ;;  %s6865_s22 = smul.u32 216, %s8827_s12  ;;  %vm608_vm3 = vsmask.f32 3328  ;;  %vm609_vm4 = vsmask.f32 7440  ;;  %vm1450_vm5 = vcmask 1046532  }
  0x10   : > { %v7052_v18 = vld [vmem:[%s8715_s1 + $0xa] sm:$0x3]  ;;  %v7057_v19 = vsel %vm363_vm0, %v5936_v8, 0  ;;  %v7062_v21 = vsel %vm363_vm0, %v6017_v11, 0  ;;  %vm7079_vm6 = vmor %vm1449_vm2, %vm1450_vm5  ;;  %s6393_s17 = sshll.u32 %s8827_s12, 8 }
  0x11   : > { %s7020_s25 = scalar_lea.vmem %s8714_s0, %s6865_s22  ;;  %v7068_v24 = vsel %vm363_vm0, %v7052_v18, 0  ;;  %vm7093_vm7 = vmor %vm608_vm3, %vm609_vm4  ;;  %s8582_s20 = scalar_lea.vmem %s8717_s3, %s6393_s17 }
  0x12   : > { %v6890_v4 = vld [vmem:[%s7020_s25] sm:$0xff]   ;;  %v6892_v6 = vld [vmem:[%s7020_s25 + $0xc] sm:$0xff]   ;;  %v6894_v12 = vld [vmem:[%s7020_s25 + $0x18] sm:$0xff]  }
  0x13   : > { %v6891_v5 = vld [vmem:[%s7020_s25 + $0x60] sm:$0xff]   ;;  %6549 = vmatprep.mubr.msk.bf16.mxu0 %vm314_vm1, %v6890_v4  ;;  %v6893_v9 = vld [vmem:[%s7020_s25 + $0x6c] sm:$0xff]   ;;  %v6895_v13 = vld [vmem:[%s7020_s25 + $0x78] sm:$0xff]  }
  0x14   : > { %6565 = vmatprep.mubr.msk.bf16.mxu1 %vm314_vm1, %v6891_v5  ;;  %6550 = vmatmul.mubr.msk.bf16.vlgmr.msra.gmra.mxu0 %vm314_vm1, %v6892_v6  ;;  %v6896_v14 = vld [vmem:[%s7020_s25 + $0x24] sm:$0xff]   ;;  %v6898_v16 = vld [vmem:[%s7020_s25 + $0x30] sm:$0xff]   ;;  %v6900_v20 = vld [vmem:[%s7020_s25 + $0x3c] sm:$0xff]  }
  0x15   : > { %6566 = vmatmul.mubr.msk.bf16.vlgmr.msra.gmra.mxu1 %vm314_vm1, %v6893_v9  ;;  %6616 = vmatpush3.bf16.msra.mxu0 %v1663_v7  ;;  %v6897_v15 = vld [vmem:[%s7020_s25 + $0x84] sm:$0xff]   ;;  %v6899_v17 = vld [vmem:[%s7020_s25 + $0x90] sm:$0xff]   ;;  %v6901_v22 = vld [vmem:[%s7020_s25 + $0x9c] sm:$0xff]  }
  0x16   : > { %6582 = vmatpush3.bf16.msra.mxu1 %v1094_v10  ;;  %6553 = vmatprep.mubr.msk.bf16.mxu0 %vm314_vm1, %v6894_v12  ;;  %v6902_v23 = vld [vmem:[%s7020_s25 + $0x48] sm:$0xff]   ;;  %v560_v26 = vld [vmem:[%s7020_s25] sm:$0xf]  ;;  %v561_v27 = vld [vmem:[%s7020_s25 + $0x4] sm:$0xf] }
  0x17   : > { %6569 = vmatprep.mubr.msk.bf16.mxu1 %vm314_vm1, %v6895_v13  ;;  %6859 = vmatprep.subr.msk.bf16.mxu1 %vm363_vm0, %v5936_v8  ;;  %v6903_v25 = vld [vmem:[%s7020_s25 + $0xa8] sm:$0xff]   ;;  %v612_v29 = vshrl.u32 %v560_v26, 16  ;;  %v615_v30 = vshll.u32 %v560_v26, 16  ;;  %v621_v31 = vshll.u32 %v561_v27, 16  ;;  %v625_v32 = vshrl.u32 %v561_v27, 16  ;;  %v6904_v2 = vld [vmem:[%s7020_s25 + $0x54] sm:$0xff]  }
  0x18   : > { %6860 = vmatprep.subr.msk.bf16.mxu0 %vm363_vm0, %v6017_v11  ;;  %v562_v28 = vld [vmem:[%s7020_s25 + $0x8] sm:$0x1]  ;;  %v1353_v33 = vld [vmem:[%s7020_s25] sm:$0xe]  ;;  %v1354_v35 = vld [vmem:[%s7020_s25 + $0x4] sm:$0xf] }
  0x19   : > { %v631_v34 = vshll.u32 %v562_v28, 16  ;;  %v1355_v36 = vld [vmem:[%s7020_s25 + $0x8] sm:$0x1]  ;;  %v5855_v37 = vrot.slane %v1353_v33, 9  ;;  %v614_v38 = vrot.slane %v612_v29, 4  ;;  %v617_v39 = vrot.slane %v615_v30, 5 }
  0x1a   : > { %v623_v40 = vrot.slane %v621_v31, 5  ;;  %v627_v41 = vrot.slane %v625_v32, 4  ;;  %v563_v43 = vld [vmem:[%s7020_s25 + $0xc] sm:$0xf]  ;;  %v1454_v45 = vrot.slane %v1354_v35, 5  ;;  %v1457_v46 = vrot.slane %v1355_v36, 5 }
  0x1b   : > { %v633_v44 = vrot.slane %v631_v34, 5  ;;  %v564_v47 = vld [vmem:[%s7020_s25 + $0x10] sm:$0xf]  ;;  %v636_v48 = vshrl.u32 %v563_v43, 16  ;;  %v618_v49 = vor.u32 %v617_v39, %v614_v38  ;;  %v565_v51 = vld [vmem:[%s7020_s25 + $0x14] sm:$0x1] }
  0x1c   : > { %6554 = vmatmul.mubr.msk.bf16.gmra.mxu0 %vm314_vm1, %v6896_v14  ;;  %v628_v50 = vor.u32 %v627_v41, %v623_v40  ;;  %v639_v52 = vshll.u32 %v563_v43, 16  ;;  %v645_v53 = vshll.u32 %v564_v47, 16  ;;  %v1356_v54 = vld [vmem:[%s7020_s25 + $0xc] sm:$0xe]  ;;  %v1455_v56 = vsel %vm7079_vm6, %v5855_v37, %v1454_v45  ;;  %v1357_v60 = vld [vmem:[%s7020_s25 + $0x10] sm:$0xf] }
  0x1d   : > { %6570 = vmatmul.mubr.msk.bf16.gmra.mxu1 %vm314_vm1, %v6897_v15  ;;  %6557 = vmatprep.mubr.msk.bf16.mxu0 %vm314_vm1, %v6898_v16  ;;  %v1456_v57 = vrot.slane %v1454_v45, 4  ;;  %v638_v58 = vrot.slane %v636_v48, 4  ;;  %v649_v59 = vshrl.u32 %v564_v47, 16  ;;  %v619_v61 = vrot.slane %v618_v49, 4  ;;  %v1358_v1 = vld [vmem:[%s7020_s25 + $0x14] sm:$0x1] }
  0x1e   : > { %6573 = vmatprep.mubr.msk.bf16.mxu1 %vm314_vm1, %v6899_v17  ;;  %v629_v62 = vrot.slane %v628_v50, 4  ;;  %v641_v63 = vrot.slane %v639_v52, 5  ;;  %v647_v0 = vrot.slane %v645_v53, 5  ;;  %v655_v5 = vshll.u32 %v565_v51, 16  ;;  %v566_v7 = vld [vmem:[%s7020_s25 + $0x18] sm:$0xf] }
  0x1f   : > { %v1458_v3 = vsel %vm7079_vm6, %v1456_v57, %v1457_v46  ;;  %v651_v4 = vrot.slane %v649_v59, 4  ;;  %v5856_v6 = vrot.slane %v1356_v54, 9  ;;  %v6905_v8 = vld [vmem:[%s7020_s25 + $0xb4] sm:$0xff]   ;;  %v624_v9 = vsel %vm7093_vm7, %v619_v61, %v623_v40  ;;  %v567_v13 = vld [vmem:[%s7020_s25 + $0x1c] sm:$0xf] }
  0x20   : > { %v634_v10 = vsel %vm7093_vm7, %v629_v62, %v633_v44  ;;  %v5872_v11 = vcombine.low %v1455_v56, %v1458_v3  ;;  %v642_v12 = vor.u32 %v641_v63, %v638_v58  ;;  %v657_v16 = vrot.slane %v655_v5, 5  ;;  %v1359_v27 = vld [vmem:[%s7020_s25 + $0x18] sm:$0xe]  ;;  %v1360_v32 = vld [vmem:[%s7020_s25 + $0x1c] sm:$0xf] }
  0x21   : > { %v5823_v14 = vcombine.low %v624_v9, %v634_v10  ;;  %v652_v15 = vor.u32 %v651_v4, %v647_v0  ;;  %v1461_v17 = vrot.slane %v1357_v60, 5  ;;  %v663_v26 = vshll.u32 %v566_v7, 16  ;;  %v1361_v37 = vld [vmem:[%s7020_s25 + $0x20] sm:$0x1]  ;;  %v569_v43 = vld [vmem:[%s7020_s25 + $0x24] sm:$0xf] }
  0x22   : > { %v669_v31 = vshll.u32 %v567_v13, 16  ;;  %v673_v36 = vshrl.u32 %v567_v13, 16  ;;  %v570_v48 = vld [vmem:[%s7020_s25 + $0x28] sm:$0xf]  ;;  %v5857_v50 = vrot.slane %v1359_v27, 9  ;;  %v1468_v51 = vrot.slane %v1360_v32, 5 }
  0x23   : > { %v653_v28 = vrot.slane %v652_v15, 4  ;;  %v1462_v29 = vsel %vm7079_vm6, %v5856_v6, %v1461_v17  ;;  %v1463_v30 = vrot.slane %v1461_v17, 4  ;;  %v665_v35 = vrot.slane %v663_v26, 5  ;;  %v571_v53 = vld [vmem:[%s7020_s25 + $0x2c] sm:$0x1] }
  0x24   : > { %6558 = vmatmul.mubr.msk.bf16.gmra.mxu0 %vm314_vm1, %v6900_v20  ;;  %v568_v20 = vld [vmem:[%s7020_s25 + $0x20] sm:$0x1]  ;;  %v671_v40 = vrot.slane %v669_v31, 5  ;;  %v675_v47 = vrot.slane %v673_v36, 4  ;;  %v1471_v52 = vrot.slane %v1361_v37, 5  ;;  %v684_v57 = vshrl.u32 %v569_v43, 16 }
  0x25   : > { %6574 = vmatmul.mubr.msk.bf16.gmra.mxu1 %vm314_vm1, %v6901_v22  ;;  %6561 = vmatprep.mubr.msk.bf16.mxu0 %vm314_vm1, %v6902_v23  ;;  %v643_v22 = vrot.slane %v642_v12, 4  ;;  %v1464_v23 = vrot.slane %v1358_v1, 5  ;;  %v658_v38 = vsel %vm7093_vm7, %v653_v28, %v657_v16  ;;  %v679_v41 = vshll.u32 %v568_v20, 16  ;;  %v1362_v59 = vld [vmem:[%s7020_s25 + $0x24] sm:$0xe] }
  0x26   : > { %6577 = vmatprep.mubr.msk.bf16.mxu1 %vm314_vm1, %v6903_v25  ;;  %v660_v25 = vshrl.u32 %v566_v7, 16  ;;  %v676_v56 = vor.u32 %v675_v47, %v671_v40  ;;  %v687_v58 = vshll.u32 %v569_v43, 16  ;;  %v1469_v60 = vsel %vm7079_vm6, %v5857_v50, %v1468_v51  ;;  %v1364_v5 = vld [vmem:[%s7020_s25 + $0x2c] sm:$0x1]  ;;  %v572_v10 = vld [vmem:[%s7020_s25 + $0x30] sm:$0xf] }
  0x27   : > { %v648_v33 = vsel %vm7093_vm7, %v643_v22, %v647_v0  ;;  %v1465_v39 = vsel %vm7079_vm6, %v1463_v30, %v1464_v23  ;;  %v681_v49 = vrot.slane %v679_v41, 5  ;;  %v1470_v61 = vrot.slane %v1468_v51, 4  ;;  %v1363_v0 = vld [vmem:[%s7020_s25 + $0x28] sm:$0xf]  ;;  %v573_v15 = vld [vmem:[%s7020_s25 + $0x34] sm:$0xf] }
  0x28   : > { %v662_v34 = vrot.slane %v660_v25, 4  ;;  %v5824_v44 = vcombine.low %v648_v33, %v658_v38  ;;  %v5873_v45 = vcombine.low %v1462_v29, %v1465_v39  ;;  %v693_v62 = vshll.u32 %v570_v48, 16  ;;  %v574_v23 = vld [vmem:[%s7020_s25 + $0x38] sm:$0x1]  ;;  %v1365_v28 = vld [vmem:[%s7020_s25 + $0x30] sm:$0xe] }
  0x29   : > { %v697_v63 = vshrl.u32 %v570_v48, 16  ;;  %v686_v3 = vrot.slane %v684_v57, 4  ;;  %v689_v4 = vrot.slane %v687_v58, 5  ;;  %v1472_v6 = vsel %vm7079_vm6, %v1470_v61, %v1471_v52  ;;  %v1366_v32 = vld [vmem:[%s7020_s25 + $0x34] sm:$0xf] }
  0x2a   : > { %v666_v46 = vor.u32 %v665_v35, %v662_v34  ;;  %v695_v7 = vrot.slane %v693_v62, 5  ;;  %v703_v9 = vshll.u32 %v571_v53, 16  ;;  %v5874_v12 = vcombine.low %v1469_v60, %v1472_v6  ;;  %v1367_v37 = vld [vmem:[%s7020_s25 + $0x38] sm:$0x1]  ;;  %v575_v41 = vld [vmem:[%s7020_s25 + $0x3c] sm:$0xf] }
  0x2b   : > { %v690_v13 = vor.u32 %v689_v4, %v686_v3  ;;  %v1475_v22 = vrot.slane %v1363_v0, 5  ;;  %v708_v26 = vshrl.u32 %v572_v10, 16  ;;  %v711_v27 = vshll.u32 %v572_v10, 16  ;;  %v576_v47 = vld [vmem:[%s7020_s25 + $0x40] sm:$0xf] }
  0x2c   : > { %6562 = vmatmul.mubr.msk.bf16.gmra.mxu0 %vm314_vm1, %v6904_v2  ;;  %v667_v54 = vrot.slane %v666_v46, 4  ;;  %v677_v2 = vrot.slane %v676_v56, 4  ;;  %v705_v20 = vrot.slane %v703_v9, 5  ;;  %v717_v31 = vshll.u32 %v573_v15, 16  ;;  %v577_v52 = vld [vmem:[%s7020_s25 + $0x44] sm:$0x1] }
  0x2d   : > { %6578 = vmatmul.mubr.msk.bf16.gmra.mxu1 %vm314_vm1, %v6905_v8  ;;  %6617 = vmatprep.mubr.msk.bf16.mxu0 %vm314_vm1, %v5872_v11  ;;  %v699_v8 = vrot.slane %v697_v63, 4  ;;  %v691_v25 = vrot.slane %v690_v13, 4  ;;  %v1477_v30 = vrot.slane %v1475_v22, 4  ;;  %v710_v34 = vrot.slane %v708_v26, 4  ;;  %v1368_v58 = vld [vmem:[%s7020_s25 + $0x3c] sm:$0xe] }
  0x2e   : > { %6583 = vmatprep.mubr.msk.bf16.mxu1 %vm314_vm1, %v5823_v14  ;;  %v672_v1 = vsel %vm7093_vm7, %v667_v54, %v671_v40  ;;  %v682_v11 = vsel %vm7093_vm7, %v677_v2, %v681_v49  ;;  %v5858_v14 = vrot.slane %v1362_v59, 9  ;;  %v713_v35 = vrot.slane %v711_v27, 5  ;;  %v1369_v63 = vld [vmem:[%s7020_s25 + $0x40] sm:$0xf]  ;;  %v1370_v4 = vld [vmem:[%s7020_s25 + $0x44] sm:$0x1] }
  0x2f   : > { %v5825_v16 = vcombine.low %v672_v1, %v682_v11  ;;  %v700_v17 = vor.u32 %v699_v8, %v695_v7  ;;  %v696_v33 = vsel %vm7093_vm7, %v691_v25, %v695_v7  ;;  %v721_v36 = vshrl.u32 %v573_v15, 16  ;;  %v578_v9 = vld [vmem:[%s7020_s25 + $0x48] sm:$0xf] }
  0x30   : > { %v1476_v29 = vsel %vm7079_vm6, %v5858_v14, %v1475_v22  ;;  %v719_v39 = vrot.slane %v717_v31, 5  ;;  %v727_v40 = vshll.u32 %v574_v23, 16  ;;  %v5859_v49 = vrot.slane %v1365_v28, 9  ;;  %v579_v14 = vld [vmem:[%s7020_s25 + $0x4c] sm:$0xf] }
  0x31   : > { %v723_v46 = vrot.slane %v721_v36, 4  ;;  %v1482_v50 = vrot.slane %v1366_v32, 5  ;;  %v1485_v51 = vrot.slane %v1367_v37, 5  ;;  %v732_v56 = vshrl.u32 %v575_v41, 16  ;;  %v580_v22 = vld [vmem:[%s7020_s25 + $0x50] sm:$0x1] }
  0x32   : > { %v729_v48 = vrot.slane %v727_v40, 5  ;;  %v735_v57 = vshll.u32 %v575_v41, 16  ;;  %v741_v61 = vshll.u32 %v576_v47, 16  ;;  %v745_v62 = vshrl.u32 %v576_v47, 16  ;;  %v1371_v27 = vld [vmem:[%s7020_s25 + $0x48] sm:$0xe] }
  0x33   : > { %v724_v54 = vor.u32 %v723_v46, %v719_v39  ;;  %v1483_v59 = vsel %vm7079_vm6, %v5859_v49, %v1482_v50  ;;  %v1484_v60 = vrot.slane %v1482_v50, 4  ;;  %v734_v2 = vrot.slane %v732_v56, 4  ;;  %v1372_v31 = vld [vmem:[%s7020_s25 + $0x4c] sm:$0xf]  ;;  %v1373_v36 = vld [vmem:[%s7020_s25 + $0x50] sm:$0x1] }
  0x34   : > { %6618 = vmatmul.mubr.msk.bf16.vlgmr.msra.gmra.mxu0 %vm314_vm1, %v5873_v45  ;;  %v714_v45 = vor.u32 %v713_v35, %v710_v34  ;;  %v737_v3 = vrot.slane %v735_v57, 5  ;;  %v743_v6 = vrot.slane %v741_v61, 5  ;;  %v747_v7 = vrot.slane %v745_v62, 4  ;;  %v581_v40 = vld [vmem:[%s7020_s25 + $0x54] sm:$0xf] }
  0x35   : > { %6584 = vmatmul.mubr.msk.bf16.vlgmr.msra.gmra.mxu1 %vm314_vm1, %v5824_v44  ;;  %6684 = vmatpush3.bf16.msra.mxu0 %v7062_v21  ;;  %v1478_v21 = vrot.slane %v1364_v5, 5  ;;  %v725_v1 = vrot.slane %v724_v54, 4  ;;  %v1486_v5 = vsel %vm7079_vm6, %v1484_v60, %v1485_v51  ;;  %v751_v8 = vshll.u32 %v577_v52, 16  ;;  %v582_v46 = vld [vmem:[%s7020_s25 + $0x58] sm:$0xf] }
  0x36   : > { %6650 = vmatpush3.bf16.msra.mxu1 %v7057_v19  ;;  %6621 = vmatprep.mubr.msk.bf16.mxu0 %vm314_vm1, %v5874_v12  ;;  %v701_v19 = vrot.slane %v700_v17, 4  ;;  %v715_v53 = vrot.slane %v714_v45, 4  ;;  %v5876_v11 = vcombine.low %v1483_v59, %v1486_v5  ;;  %v738_v12 = vor.u32 %v737_v3, %v734_v2  ;;  %v583_v51 = vld [vmem:[%s7020_s25 + $0x5c] sm:$0x1]  ;;  %v1374_v57 = vld [vmem:[%s7020_s25 + $0x54] sm:$0xe] }
  0x37   : > { %6861 = vmatprep.subr.msk.bf16.mxu1 %vm363_vm0, %v7052_v18  ;;  %6587 = vmatprep.mubr.msk.bf16.mxu1 %vm314_vm1, %v5825_v16  ;;  %v1479_v38 = vsel %vm7079_vm6, %v1477_v30, %v1478_v21  ;;  %v730_v10 = vsel %vm7093_vm7, %v725_v1, %v729_v48  ;;  %v5860_v13 = vrot.slane %v1368_v58, 9  ;;  %v748_v16 = vor.u32 %v747_v7, %v743_v6  ;;  %v1375_v62 = vld [vmem:[%s7020_s25 + $0x58] sm:$0xf]  ;;  %v1376_v3 = vld [vmem:[%s7020_s25 + $0x5c] sm:$0x1] }
  0x38   : > { %v706_v18 = vsel %vm7093_vm7, %v701_v19, %v705_v20  ;;  %v5875_v44 = vcombine.low %v1476_v29, %v1479_v38  ;;  %v720_v0 = vsel %vm7093_vm7, %v715_v53, %v719_v39  ;;  %v753_v17 = vrot.slane %v751_v8, 5  ;;  %v584_v8 = vld [vmem:[%s7020_s25 + $0x60] sm:$0xf] }
  0x39   : > { %v5826_v43 = vcombine.low %v696_v33, %v706_v18  ;;  %v5827_v15 = vcombine.low %v720_v0, %v730_v10  ;;  %v1489_v20 = vrot.slane %v1369_v63, 5  ;;  %v739_v23 = vrot.slane %v738_v12, 4 }
  0x3a   : > { %v1492_v25 = vrot.slane %v1370_v4, 5  ;;  %v756_v21 = vshrl.u32 %v578_v9, 16  ;;  %v759_v26 = vshll.u32 %v578_v9, 16  ;;  %v749_v28 = vrot.slane %v748_v16, 4 }
  0x3b   : > { %v1490_v19 = vsel %vm7079_vm6, %v5860_v13, %v1489_v20  ;;  %v1491_v29 = vrot.slane %v1489_v20, 4  ;;  %v765_v30 = vshll.u32 %v579_v14, 16  ;;  %v744_v32 = vsel %vm7093_vm7, %v739_v23, %v743_v6  ;;  %v585_v13 = vld [vmem:[%s7020_s25 + $0x64] sm:$0xf]  ;;  %v586_v20 = vld [vmem:[%s7020_s25 + $0x68] sm:$0x1] }
  0x3c   : > { %6622 = vmatmul.mubr.msk.bf16.gmra.mxu0 %vm314_vm1, %v5875_v44  ;;  %v758_v33 = vrot.slane %v756_v21, 4  ;;  %v761_v34 = vrot.slane %v759_v26, 5  ;;  %v769_v35 = vshrl.u32 %v579_v14, 16  ;;  %v754_v37 = vsel %vm7093_vm7, %v749_v28, %v753_v17  ;;  %v1377_v26 = vld [vmem:[%s7020_s25 + $0x60] sm:$0xe] }
  0x3d   : > { %6588 = vmatmul.mubr.msk.bf16.gmra.mxu1 %vm314_vm1, %v5826_v43  ;;  %6625 = vmatprep.mubr.msk.bf16.mxu0 %vm314_vm1, %v5876_v11  ;;  %v1493_v18 = vsel %vm7079_vm6, %v1491_v29, %v1492_v25  ;;  %v767_v38 = vrot.slane %v765_v30, 5  ;;  %v775_v39 = vshll.u32 %v580_v22, 16  ;;  %v5828_v41 = vcombine.low %v744_v32, %v754_v37  ;;  %v1378_v30 = vld [vmem:[%s7020_s25 + $0x64] sm:$0xf] }
  0x3e   : > { %6591 = vmatprep.mubr.msk.bf16.mxu1 %vm314_vm1, %v5827_v15  ;;  %v5877_v43 = vcombine.low %v1490_v19, %v1493_v18  ;;  %v762_v44 = vor.u32 %v761_v34, %v758_v33  ;;  %v771_v45 = vrot.slane %v769_v35, 4  ;;  %v5861_v48 = vrot.slane %v1371_v27, 9  ;;  %v1379_v35 = vld [vmem:[%s7020_s25 + $0x68] sm:$0x1] }
  0x3f   : > { %v777_v47 = vrot.slane %v775_v39, 5  ;;  %v1496_v49 = vrot.slane %v1372_v31, 5  ;;  %v1499_v50 = vrot.slane %v1373_v36, 5  ;;  %v780_v54 = vshrl.u32 %v581_v40, 16  ;;  %v587_v39 = vld [vmem:[%s7020_s25 + $0x6c] sm:$0xf] }
  0x40   : > { %v763_v52 = vrot.slane %v762_v44, 4  ;;  %v772_v53 = vor.u32 %v771_v45, %v767_v38  ;;  %v783_v56 = vshll.u32 %v581_v40, 16  ;;  %v789_v60 = vshll.u32 %v582_v46, 16  ;;  %v588_v45 = vld [vmem:[%s7020_s25 + $0x70] sm:$0xf] }
  0x41   : > { %v1497_v58 = vsel %vm7079_vm6, %v5861_v48, %v1496_v49  ;;  %v1498_v59 = vrot.slane %v1496_v49, 4  ;;  %v793_v61 = vshrl.u32 %v582_v46, 16  ;;  %v782_v1 = vrot.slane %v780_v54, 4 }
  0x42   : > { %v768_v63 = vsel %vm7093_vm7, %v763_v52, %v767_v38  ;;  %v773_v0 = vrot.slane %v772_v53, 4  ;;  %v785_v2 = vrot.slane %v783_v56, 5  ;;  %v791_v5 = vrot.slane %v789_v60, 5  ;;  %v1380_v56 = vld [vmem:[%s7020_s25 + $0x6c] sm:$0xe] }
  0x43   : > { %v1500_v4 = vsel %vm7079_vm6, %v1498_v59, %v1499_v50  ;;  %v795_v6 = vrot.slane %v793_v61, 4  ;;  %v799_v7 = vshll.u32 %v583_v51, 16  ;;  %v5862_v12 = vrot.slane %v1374_v57, 9  ;;  %v589_v50 = vld [vmem:[%s7020_s25 + $0x74] sm:$0x1] }
  0x44   : > { %6626 = vmatmul.mubr.msk.bf16.gmra.mxu0 %vm314_vm1, %v5877_v43  ;;  %v778_v9 = vsel %vm7093_vm7, %v773_v0, %v777_v47  ;;  %v5878_v10 = vcombine.low %v1497_v58, %v1500_v4  ;;  %v786_v11 = vor.u32 %v785_v2, %v782_v1  ;;  %v1503_v17 = vrot.slane %v1375_v62, 5  ;;  %v1381_v61 = vld [vmem:[%s7020_s25 + $0x70] sm:$0xf]  ;;  %v1382_v2 = vld [vmem:[%s7020_s25 + $0x74] sm:$0x1] }
  0x45   : > { %6592 = vmatmul.mubr.msk.bf16.gmra.mxu1 %vm314_vm1, %v5828_v41  ;;  %v5829_v14 = vcombine.low %v768_v63, %v778_v9  ;;  %v796_v15 = vor.u32 %v795_v6, %v791_v5  ;;  %v801_v16 = vrot.slane %v799_v7, 5  ;;  %v1506_v23 = vrot.slane %v1376_v3, 5  ;;  %v590_v7 = vld [vmem:[%s7020_s25 + $0x78] sm:$0xf] }
  0x46   : > { %6629 = vmatprep.mubr.msk.bf16.mxu0 %vm314_vm1, %v5878_v10  ;;  %v787_v22 = vrot.slane %v786_v11, 4  ;;  %v804_v25 = vshrl.u32 %v584_v8, 16  ;;  %v807_v21 = vshll.u32 %v584_v8, 16  ;;  %v1504_v28 = vsel %vm7079_vm6, %v5862_v12, %v1503_v17  ;;  %v591_v12 = vld [vmem:[%s7020_s25 + $0x7c] sm:$0xf] }
  0x47   : > { %6595 = vmatprep.mubr.msk.bf16.mxu1 %vm314_vm1, %v5829_v14  ;;  %v797_v27 = vrot.slane %v796_v15, 4  ;;  %v1505_v19 = vrot.slane %v1503_v17, 4  ;;  %v813_v29 = vshll.u32 %v585_v13, 16  ;;  %v817_v34 = vshrl.u32 %v585_v13, 16  ;;  %v592_v17 = vld [vmem:[%s7020_s25 + $0x80] sm:$0x1] }
  0x48   : > { %v792_v31 = vsel %vm7093_vm7, %v787_v22, %v791_v5  ;;  %v806_v32 = vrot.slane %v804_v25, 4  ;;  %v809_v33 = vrot.slane %v807_v21, 5  ;;  %v823_v38 = vshll.u32 %v586_v20, 16  ;;  %v1383_v21 = vld [vmem:[%s7020_s25 + $0x78] sm:$0xe] }
  0x49   : > { %v802_v36 = vsel %vm7093_vm7, %v797_v27, %v801_v16  ;;  %v1507_v37 = vsel %vm7079_vm6, %v1505_v19, %v1506_v23  ;;  %v815_v18 = vrot.slane %v813_v29, 5  ;;  %v819_v44 = vrot.slane %v817_v34, 4  ;;  %v1384_v29 = vld [vmem:[%s7020_s25 + $0x7c] sm:$0xf]  ;;  %v1385_v34 = vld [vmem:[%s7020_s25 + $0x80] sm:$0x1] }
  0x4a   : > { %v5830_v40 = vcombine.low %v792_v31, %v802_v36  ;;  %v5879_v41 = vcombine.low %v1504_v28, %v1507_v37  ;;  %v810_v43 = vor.u32 %v809_v33, %v806_v32  ;;  %v825_v46 = vrot.slane %v823_v38, 5  ;;  %v593_v38 = vld [vmem:[%s7020_s25 + $0x84] sm:$0xf] }
  0x4b   : > { %v5863_v47 = vrot.slane %v1377_v26, 9  ;;  %v1510_v48 = vrot.slane %v1378_v30, 5  ;;  %v1513_v49 = vrot.slane %v1379_v35, 5  ;;  %v820_v52 = vor.u32 %v819_v44, %v815_v18  ;;  %v594_v44 = vld [vmem:[%s7020_s25 + $0x88] sm:$0xf] }
  0x4c   : > { %6630 = vmatmul.mubr.msk.bf16.gmra.mxu0 %vm314_vm1, %v5879_v41  ;;  %v811_v51 = vrot.slane %v810_v43, 4  ;;  %v828_v53 = vshrl.u32 %v587_v39, 16  ;;  %v831_v54 = vshll.u32 %v587_v39, 16  ;;  %v837_v59 = vshll.u32 %v588_v45, 16 }
  0x4d   : > { %6596 = vmatmul.mubr.msk.bf16.gmra.mxu1 %vm314_vm1, %v5830_v40  ;;  %v1511_v57 = vsel %vm7079_vm6, %v5863_v47, %v1510_v48  ;;  %v1512_v58 = vrot.slane %v1510_v48, 4  ;;  %v841_v60 = vshrl.u32 %v588_v45, 16  ;;  %v821_v63 = vrot.slane %v820_v52, 4 }
  0x4e   : > { %v816_v62 = vsel %vm7093_vm7, %v811_v51, %v815_v18  ;;  %v830_v0 = vrot.slane %v828_v53, 4  ;;  %v833_v1 = vrot.slane %v831_v54, 5  ;;  %v839_v4 = vrot.slane %v837_v59, 5  ;;  %v1386_v54 = vld [vmem:[%s7020_s25 + $0x84] sm:$0xe] }
  0x4f   : > { %v1514_v3 = vsel %vm7079_vm6, %v1512_v58, %v1513_v49  ;;  %v843_v5 = vrot.slane %v841_v60, 4  ;;  %v847_v6 = vshll.u32 %v589_v50, 16  ;;  %v826_v8 = vsel %vm7093_vm7, %v821_v63, %v825_v46  ;;  %v595_v49 = vld [vmem:[%s7020_s25 + $0x8c] sm:$0x1]  ;;  %v1387_v60 = vld [vmem:[%s7020_s25 + $0x88] sm:$0xf] }
  0x50   : > { %v5880_v9 = vcombine.low %v1511_v57, %v1514_v3  ;;  %v834_v10 = vor.u32 %v833_v1, %v830_v0  ;;  %v5864_v11 = vrot.slane %v1380_v56, 9  ;;  %v5831_v13 = vcombine.low %v816_v62, %v826_v8  ;;  %v1388_v1 = vld [vmem:[%s7020_s25 + $0x8c] sm:$0x1] }
  0x51   : > { %v844_v14 = vor.u32 %v843_v5, %v839_v4  ;;  %v849_v15 = vrot.slane %v847_v6, 5  ;;  %v1517_v16 = vrot.slane %v1381_v61, 5  ;;  %v1520_v22 = vrot.slane %v1382_v2, 5  ;;  %v596_v6 = vld [vmem:[%s7020_s25 + $0x90] sm:$0xf] }
  0x52   : > { %6633 = vmatprep.mubr.msk.bf16.mxu0 %vm314_vm1, %v5880_v9  ;;  %v835_v20 = vrot.slane %v834_v10, 4  ;;  %v852_v23 = vshrl.u32 %v590_v7, 16  ;;  %v855_v25 = vshll.u32 %v590_v7, 16  ;;  %6599 = vmatprep.mubr.msk.bf16.mxu1 %vm314_vm1, %v5831_v13  ;;  %v861_v19 = vshll.u32 %v591_v12, 16 }
  0x53   : > { %v845_v26 = vrot.slane %v844_v14, 4  ;;  %v1518_v27 = vsel %vm7079_vm6, %v5864_v11, %v1517_v16  ;;  %v1519_v28 = vrot.slane %v1517_v16, 4  ;;  %v865_v33 = vshrl.u32 %v591_v12, 16  ;;  %v597_v11 = vld [vmem:[%s7020_s25 + $0x94] sm:$0xf] }
  0x54   : > { %v840_v30 = vsel %vm7093_vm7, %v835_v20, %v839_v4  ;;  %v854_v31 = vrot.slane %v852_v23, 4  ;;  %v857_v32 = vrot.slane %v855_v25, 5  ;;  %v863_v37 = vrot.slane %v861_v19, 5  ;;  %v598_v12 = vld [vmem:[%s7020_s25 + $0x98] sm:$0x1] }
  0x55   : > { %v850_v35 = vsel %vm7093_vm7, %v845_v26, %v849_v15  ;;  %v1521_v36 = vsel %vm7079_vm6, %v1519_v28, %v1520_v22  ;;  %v871_v18 = vshll.u32 %v592_v17, 16  ;;  %v867_v43 = vrot.slane %v865_v33, 4  ;;  %v1389_v25 = vld [vmem:[%s7020_s25 + $0x90] sm:$0xe] }
  0x56   : > { %v5832_v39 = vcombine.low %v840_v30, %v850_v35  ;;  %v5881_v40 = vcombine.low %v1518_v27, %v1521_v36  ;;  %v858_v41 = vor.u32 %v857_v32, %v854_v31  ;;  %v5865_v46 = vrot.slane %v1383_v21, 9  ;;  %v1390_v21 = vld [vmem:[%s7020_s25 + $0x94] sm:$0xf] }
  0x57   : > { %v873_v45 = vrot.slane %v871_v18, 5  ;;  %v1524_v47 = vrot.slane %v1384_v29, 5  ;;  %v1527_v48 = vrot.slane %v1385_v34, 5  ;;  %v868_v51 = vor.u32 %v867_v43, %v863_v37  ;;  %v1391_v29 = vld [vmem:[%s7020_s25 + $0x98] sm:$0x1] }
  0x58   : > { %6600 = vmatmul.mubr.msk.bf16.gmra.mxu1 %vm314_vm1, %v5832_v39  ;;  %6634 = vmatmul.mubr.msk.bf16.gmra.mxu0 %vm314_vm1, %v5881_v40  ;;  %v859_v50 = vrot.slane %v858_v41, 4  ;;  %v876_v52 = vshrl.u32 %v593_v38, 16  ;;  %v879_v53 = vshll.u32 %v593_v38, 16  ;;  %v885_v58 = vshll.u32 %v594_v44, 16  ;;  %v599_v34 = vld [vmem:[%s7020_s25 + $0x9c] sm:$0xf] }
  0x59   : > { %v1525_v56 = vsel %vm7079_vm6, %v5865_v46, %v1524_v47  ;;  %v1526_v57 = vrot.slane %v1524_v47, 4  ;;  %v889_v59 = vshrl.u32 %v594_v44, 16  ;;  %v869_v62 = vrot.slane %v868_v51, 4  ;;  %v600_v43 = vld [vmem:[%s7020_s25 + $0xa0] sm:$0xf] }
  0x5a   : > { %v864_v61 = vsel %vm7093_vm7, %v859_v50, %v863_v37  ;;  %v878_v63 = vrot.slane %v876_v52, 4  ;;  %v881_v0 = vrot.slane %v879_v53, 5  ;;  %v887_v3 = vrot.slane %v885_v58, 5  ;;  %v601_v44 = vld [vmem:[%s7020_s25 + $0xa4] sm:$0x1] }
  0x5b   : > { %v1528_v2 = vsel %vm7079_vm6, %v1526_v57, %v1527_v48  ;;  %v891_v4 = vrot.slane %v889_v59, 4  ;;  %v895_v5 = vshll.u32 %v595_v49, 16  ;;  %v874_v7 = vsel %vm7093_vm7, %v869_v62, %v873_v45  ;;  %v1392_v49 = vld [vmem:[%s7020_s25 + $0x9c] sm:$0xe] }
  0x5c   : > { %v5882_v8 = vcombine.low %v1525_v56, %v1528_v2  ;;  %v882_v9 = vor.u32 %v881_v0, %v878_v63  ;;  %v5866_v10 = vrot.slane %v1386_v54, 9  ;;  %v5833_v13 = vcombine.low %v864_v61, %v874_v7  ;;  %v1393_v54 = vld [vmem:[%s7020_s25 + $0xa0] sm:$0xf]  ;;  %v7301_v56 = vld [vmem:[%s8715_s1 + $0xc] sm:$0x3] }
  0x5d   : > { %v892_v14 = vor.u32 %v891_v4, %v887_v3  ;;  %v897_v15 = vrot.slane %v895_v5, 5  ;;  %v1531_v16 = vrot.slane %v1387_v60, 5  ;;  %v1534_v20 = vrot.slane %v1388_v1, 5  ;;  %v1394_v61 = vld [vmem:[%s7020_s25 + $0xa4] sm:$0x1]  ;;  %6862 = vmatprep.subr.msk.bf16.mxu0 %vm363_vm0, %v7301_v56 }
  0x5e   : > { %6637 = vmatprep.mubr.msk.bf16.mxu0 %vm314_vm1, %v5882_v8  ;;  %v883_v17 = vrot.slane %v882_v9, 4  ;;  %v900_v22 = vshrl.u32 %v596_v6, 16  ;;  %v903_v23 = vshll.u32 %v596_v6, 16  ;;  %6603 = vmatprep.mubr.msk.bf16.mxu1 %vm314_vm1, %v5833_v13  ;;  %v909_v19 = vshll.u32 %v597_v11, 16  ;;  %v602_v6 = vld [vmem:[%s7020_s25 + $0xa8] sm:$0xf] }
  0x5f   : > { %v893_v26 = vrot.slane %v892_v14, 4  ;;  %v1532_v27 = vsel %vm7079_vm6, %v5866_v10, %v1531_v16  ;;  %v1533_v28 = vrot.slane %v1531_v16, 4  ;;  %v913_v33 = vshrl.u32 %v597_v11, 16  ;;  %v603_v11 = vld [vmem:[%s7020_s25 + $0xac] sm:$0xf] }
  0x60   : > { %v888_v30 = vsel %vm7093_vm7, %v883_v17, %v887_v3  ;;  %v902_v31 = vrot.slane %v900_v22, 4  ;;  %v905_v32 = vrot.slane %v903_v23, 5  ;;  %v911_v37 = vrot.slane %v909_v19, 5 }
  0x61   : > { %v898_v35 = vsel %vm7093_vm7, %v893_v26, %v897_v15  ;;  %v1535_v36 = vsel %vm7079_vm6, %v1533_v28, %v1534_v20  ;;  %v919_v18 = vshll.u32 %v598_v12, 16  ;;  %v915_v41 = vrot.slane %v913_v33, 4  ;;  %v604_v12 = vld [vmem:[%s7020_s25 + $0xb0] sm:$0x1] }
  0x62   : > { %v5834_v38 = vcombine.low %v888_v30, %v898_v35  ;;  %v5883_v39 = vcombine.low %v1532_v27, %v1535_v36  ;;  %v906_v40 = vor.u32 %v905_v32, %v902_v31  ;;  %v5867_v46 = vrot.slane %v1389_v25, 9  ;;  %v1395_v25 = vld [vmem:[%s7020_s25 + $0xa8] sm:$0xe] }
  0x63   : > { %v921_v45 = vrot.slane %v919_v18, 5  ;;  %v1538_v47 = vrot.slane %v1390_v21, 5  ;;  %v1541_v48 = vrot.slane %v1391_v29, 5  ;;  %v916_v51 = vor.u32 %v915_v41, %v911_v37  ;;  %v1396_v21 = vld [vmem:[%s7020_s25 + $0xac] sm:$0xf] }
  0x64   : > { %6604 = vmatmul.mubr.msk.bf16.gmra.mxu1 %vm314_vm1, %v5834_v38  ;;  %6638 = vmatmul.mubr.msk.bf16.gmra.mxu0 %vm314_vm1, %v5883_v39  ;;  %v907_v50 = vrot.slane %v906_v40, 4  ;;  %v924_v52 = vshrl.u32 %v599_v34, 16  ;;  %v927_v53 = vshll.u32 %v599_v34, 16  ;;  %v933_v59 = vshll.u32 %v600_v43, 16  ;;  %v1397_v29 = vld [vmem:[%s7020_s25 + $0xb0] sm:$0x1] }
  0x65   : > { %v1539_v57 = vsel %vm7079_vm6, %v5867_v46, %v1538_v47  ;;  %v1540_v58 = vrot.slane %v1538_v47, 4  ;;  %v937_v60 = vshrl.u32 %v600_v43, 16  ;;  %v917_v63 = vrot.slane %v916_v51, 4  ;;  %v605_v34 = vld [vmem:[%s7020_s25 + $0xb4] sm:$0xf] }
  0x66   : > { %v912_v62 = vsel %vm7093_vm7, %v907_v50, %v911_v37  ;;  %v926_v0 = vrot.slane %v924_v52, 4  ;;  %v929_v1 = vrot.slane %v927_v53, 5  ;;  %v935_v3 = vrot.slane %v933_v59, 5  ;;  %v606_v43 = vld [vmem:[%s7020_s25 + $0xb8] sm:$0xf] }
  0x67   : > { %v1542_v2 = vsel %vm7079_vm6, %v1540_v58, %v1541_v48  ;;  %v939_v4 = vrot.slane %v937_v60, 4  ;;  %v943_v5 = vshll.u32 %v601_v44, 16  ;;  %v922_v7 = vsel %vm7093_vm7, %v917_v63, %v921_v45  ;;  %v607_v44 = vld [vmem:[%s7020_s25 + $0xbc] sm:$0x1] }
  0x68   : > { %v5884_v8 = vcombine.low %v1539_v57, %v1542_v2  ;;  %v930_v9 = vor.u32 %v929_v1, %v926_v0  ;;  %v5868_v10 = vrot.slane %v1392_v49, 9  ;;  %v5835_v13 = vcombine.low %v912_v62, %v922_v7  ;;  %v1398_v49 = vld [vmem:[%s7020_s25 + $0xb4] sm:$0xe]  ;;  %v1400_v1 = vld [vmem:[%s7020_s25 + $0xbc] sm:$0x1] }
  0x69   : > { %v940_v14 = vor.u32 %v939_v4, %v935_v3  ;;  %v945_v15 = vrot.slane %v943_v5, 5  ;;  %v1545_v16 = vrot.slane %v1393_v54, 5  ;;  %v1548_v20 = vrot.slane %v1394_v61, 5  ;;  %v1399_v54 = vld [vmem:[%s7020_s25 + $0xb8] sm:$0xf] }
  0x6a   : > { %6641 = vmatprep.mubr.msk.bf16.mxu0 %vm314_vm1, %v5884_v8  ;;  %v931_v17 = vrot.slane %v930_v9, 4  ;;  %v948_v22 = vshrl.u32 %v602_v6, 16  ;;  %v951_v23 = vshll.u32 %v602_v6, 16  ;;  %6607 = vmatprep.mubr.msk.bf16.mxu1 %vm314_vm1, %v5835_v13  ;;  %v957_v19 = vshll.u32 %v603_v11, 16  ;;  %v5969_v6 = vld [vmem:[%s7020_s25 + $0xc] sm:$0xf] }
  0x6b   : > { %v941_v26 = vrot.slane %v940_v14, 4  ;;  %v1546_v27 = vsel %vm7079_vm6, %v5868_v10, %v1545_v16  ;;  %v1547_v28 = vrot.slane %v1545_v16, 4  ;;  %v961_v33 = vshrl.u32 %v603_v11, 16  ;;  %v5970_v11 = vld [vmem:[%s7020_s25 + $0x10] sm:$0xf] }
  0x6c   : > { %v936_v30 = vsel %vm7093_vm7, %v931_v17, %v935_v3  ;;  %v950_v31 = vrot.slane %v948_v22, 4  ;;  %v953_v32 = vrot.slane %v951_v23, 5  ;;  %v959_v37 = vrot.slane %v957_v19, 5  ;;  %v5971_v16 = vld [vmem:[%s7020_s25 + $0x14] sm:$0x1] }
  0x6d   : > { %v946_v35 = vsel %vm7093_vm7, %v941_v26, %v945_v15  ;;  %v1549_v36 = vsel %vm7079_vm6, %v1547_v28, %v1548_v20  ;;  %v967_v18 = vshll.u32 %v604_v12, 16  ;;  %v963_v41 = vrot.slane %v961_v33, 4  ;;  %v5973_v19 = vld [vmem:[%s7020_s25 + $0x1c] sm:$0xf] }
  0x6e   : > { %v5836_v38 = vcombine.low %v936_v30, %v946_v35  ;;  %v5885_v39 = vcombine.low %v1546_v27, %v1549_v36  ;;  %v954_v40 = vor.u32 %v953_v32, %v950_v31  ;;  %v5869_v46 = vrot.slane %v1395_v25, 9  ;;  %v5972_v25 = vld [vmem:[%s7020_s25 + $0x18] sm:$0xf]  ;;  %v6906_v30 = vld [vmem:[%s7020_s25 + $0xc] sm:$0xff]  }
  0x6f   : > { %v969_v45 = vrot.slane %v967_v18, 5  ;;  %v1552_v47 = vrot.slane %v1396_v21, 5  ;;  %v1555_v48 = vrot.slane %v1397_v29, 5  ;;  %v964_v51 = vor.u32 %v963_v41, %v959_v37  ;;  %v5974_v18 = vld [vmem:[%s7020_s25 + $0x20] sm:$0x1] }
  0x70   : > { %6608 = vmatmul.mubr.msk.bf16.gmra.mxu1 %vm314_vm1, %v5836_v38  ;;  %6642 = vmatmul.mubr.msk.bf16.gmra.mxu0 %vm314_vm1, %v5885_v39  ;;  %v955_v50 = vrot.slane %v954_v40, 4  ;;  %v972_v52 = vshrl.u32 %v605_v34, 16  ;;  %v975_v53 = vshll.u32 %v605_v34, 16  ;;  %v981_v59 = vshll.u32 %v606_v43, 16 }
  0x71   : > { %v1553_v57 = vsel %vm7079_vm6, %v5869_v46, %v1552_v47  ;;  %v1554_v58 = vrot.slane %v1552_v47, 4  ;;  %v985_v60 = vshrl.u32 %v606_v43, 16  ;;  %v965_v62 = vrot.slane %v964_v51, 4  ;;  %v5975_v43 = vld [vmem:[%s7020_s25 + $0x24] sm:$0xf] }
  0x72   : > { %v960_v61 = vsel %vm7093_vm7, %v955_v50, %v959_v37  ;;  %v974_v63 = vrot.slane %v972_v52, 4  ;;  %v977_v0 = vrot.slane %v975_v53, 5  ;;  %v983_v3 = vrot.slane %v981_v59, 5  ;;  %v5977_v59 = vld [vmem:[%s7020_s25 + $0x2c] sm:$0x1] }
  0x73   : > { %v1556_v2 = vsel %vm7079_vm6, %v1554_v58, %v1555_v48  ;;  %v987_v4 = vrot.slane %v985_v60, 4  ;;  %v991_v5 = vshll.u32 %v607_v44, 16  ;;  %v970_v7 = vsel %vm7093_vm7, %v965_v62, %v969_v45  ;;  %v5976_v44 = vld [vmem:[%s7020_s25 + $0x28] sm:$0xf] }
  0x74   : > { %v5886_v8 = vcombine.low %v1553_v57, %v1556_v2  ;;  %v978_v9 = vor.u32 %v977_v0, %v974_v63  ;;  %v5870_v10 = vrot.slane %v1398_v49, 9  ;;  %v5837_v12 = vcombine.low %v960_v61, %v970_v7  ;;  %v6907_v0 = vld [vmem:[%s7020_s25 + $0x18] sm:$0xff]  }
  0x75   : > { %v988_v13 = vor.u32 %v987_v4, %v983_v3  ;;  %v993_v14 = vrot.slane %v991_v5, 5  ;;  %v1559_v15 = vrot.slane %v1399_v54, 5  ;;  %v1562_v20 = vrot.slane %v1400_v1, 5  ;;  %v5978_v5 = vld [vmem:[%s7020_s25 + $0x30] sm:$0xf] }
  0x76   : > { %6645 = vmatprep.mubr.msk.bf16.mxu0 %vm314_vm1, %v5886_v8  ;;  %v979_v17 = vrot.slane %v978_v9, 4  ;;  %v2397_v22 = vshrl.u32 %v5969_v6, 16  ;;  %v2400_v23 = vshll.u32 %v5969_v6, 16  ;;  %6611 = vmatprep.mubr.msk.bf16.mxu1 %vm314_vm1, %v5837_v12  ;;  %v2406_v28 = vshll.u32 %v5970_v11, 16 }
  0x77   : > { %v989_v21 = vrot.slane %v988_v13, 4  ;;  %v1560_v26 = vsel %vm7079_vm6, %v5870_v10, %v1559_v15  ;;  %v1561_v27 = vrot.slane %v1559_v15, 4  ;;  %v2410_v33 = vshrl.u32 %v5970_v11, 16  ;;  %v6908_v11 = vld [vmem:[%s7020_s25 + $0x24] sm:$0xff]  }
  0x78   : > { %v984_v29 = vsel %vm7093_vm7, %v979_v17, %v983_v3  ;;  %v2399_v31 = vrot.slane %v2397_v22, 4  ;;  %v2402_v32 = vrot.slane %v2400_v23, 5  ;;  %v2408_v36 = vrot.slane %v2406_v28, 5 }
  0x79   : > { %v994_v34 = vsel %vm7093_vm7, %v989_v21, %v993_v14  ;;  %v1563_v35 = vsel %vm7079_vm6, %v1561_v27, %v1562_v20  ;;  %v2416_v37 = vshll.u32 %v5971_v16, 16  ;;  %v2412_v41 = vrot.slane %v2410_v33, 4  ;;  %v5979_v14 = vld [vmem:[%s7020_s25 + $0x34] sm:$0xf] }
  0x7a   : > { %v5838_v38 = vcombine.low %v984_v29, %v994_v34  ;;  %v5887_v39 = vcombine.low %v1560_v26, %v1563_v35  ;;  %v2403_v40 = vor.u32 %v2402_v32, %v2399_v31  ;;  %v2421_v46 = vshrl.u32 %v5972_v25, 16  ;;  %v5982_v35 = vld [vmem:[%s7020_s25 + $0x40] sm:$0xf] }
  0x7b   : > { %v2418_v45 = vrot.slane %v2416_v37, 5  ;;  %v2424_v47 = vshll.u32 %v5972_v25, 16  ;;  %v2430_v48 = vshll.u32 %v5973_v19, 16  ;;  %v2413_v50 = vor.u32 %v2412_v41, %v2408_v36  ;;  %v5980_v25 = vld [vmem:[%s7020_s25 + $0x38] sm:$0x1] }
  0x7c   : > { %6612 = vmatmul.mubr.msk.bf16.gmra.mxu1 %vm314_vm1, %v5838_v38  ;;  %6646 = vmatmul.mubr.msk.bf16.gmra.mxu0 %vm314_vm1, %v5887_v39  ;;  %v2404_v49 = vrot.slane %v2403_v40, 4  ;;  %v2434_v51 = vshrl.u32 %v5973_v19, 16  ;;  %v2440_v52 = vshll.u32 %v5974_v18, 16  ;;  %v2423_v53 = vrot.slane %v2421_v46, 4  ;;  %v5983_v39 = vld [vmem:[%s7020_s25 + $0x44] sm:$0x1] }
  0x7d   : > { %6651 = vmatprep.mubr.msk.bf16.mxu1 %vm314_vm1, %v6906_v30  ;;  %v2426_v54 = vrot.slane %v2424_v47, 5  ;;  %v2432_v57 = vrot.slane %v2430_v48, 5  ;;  %v3871_v58 = vsel %vm363_vm0, %v7301_v56, 0  ;;  %v2414_v61 = vrot.slane %v2413_v50, 4  ;;  %v5981_v30 = vld [vmem:[%s7020_s25 + $0x3c] sm:$0xf] }
  0x7e   : > { %v2409_v60 = vsel %vm7093_vm7, %v2404_v49, %v2408_v36  ;;  %v2436_v62 = vrot.slane %v2434_v51, 4  ;;  %v2442_v63 = vrot.slane %v2440_v52, 5  ;;  %v2445_v2 = vshrl.u32 %v5975_v43, 16  ;;  %v5984_v49 = vld [vmem:[%s7020_s25 + $0x48] sm:$0xf]  ;;  %v6910_v52 = vld [vmem:[%s7020_s25 + $0x3c] sm:$0xff]  }
  0x7f   : > { %v2427_v1 = vor.u32 %v2426_v54, %v2423_v53  ;;  %v2448_v3 = vshll.u32 %v5975_v43, 16  ;;  %v2454_v4 = vshll.u32 %v5976_v44, 16  ;;  %v2419_v6 = vsel %vm7093_vm7, %v2414_v61, %v2418_v45  ;;  %v6909_v45 = vld [vmem:[%s7020_s25 + $0x30] sm:$0xff]  }
  0x80   : > { %v2437_v7 = vor.u32 %v2436_v62, %v2432_v57  ;;  %v2458_v56 = vshrl.u32 %v5976_v44, 16  ;;  %v2464_v8 = vshll.u32 %v5977_v59, 16  ;;  %v6018_v9 = vcombine.low %v2409_v60, %v2419_v6 }
  0x81   : > { %v2428_v10 = vrot.slane %v2427_v1, 4  ;;  %v2447_v12 = vrot.slane %v2445_v2, 4  ;;  %v2450_v13 = vrot.slane %v2448_v3, 5  ;;  %v2456_v16 = vrot.slane %v2454_v4, 5 }
  0x82   : > { %v2438_v15 = vrot.slane %v2437_v7, 4  ;;  %v2460_v17 = vrot.slane %v2458_v56, 4  ;;  %v2466_v20 = vrot.slane %v2464_v8, 5  ;;  %6685 = vmatprep.mubr.msk.bf16.mxu0 %vm314_vm1, %v6018_v9  ;;  %v2469_v21 = vshrl.u32 %v5978_v5, 16  ;;  %v5987_v7 = vld [vmem:[%s7020_s25 + $0x54] sm:$0xf] }
  0x83   : > { %v2433_v22 = vsel %vm7093_vm7, %v2428_v10, %v2432_v57  ;;  %v2451_v23 = vor.u32 %v2450_v13, %v2447_v12  ;;  %v2472_v26 = vshll.u32 %v5978_v5, 16  ;;  %v2478_v19 = vshll.u32 %v5979_v14, 16  ;;  %v5985_v57 = vld [vmem:[%s7020_s25 + $0x4c] sm:$0xf] }
  0x84   : > { %6652 = vmatmul.mubr.msk.bf16.vlgmr.msra.gmra.mxu1 %vm314_vm1, %v6907_v0  ;;  %v2443_v27 = vsel %vm7093_vm7, %v2438_v15, %v2442_v63  ;;  %v2461_v28 = vor.u32 %v2460_v17, %v2456_v16  ;;  %v2482_v29 = vshrl.u32 %v5979_v14, 16  ;;  %v2471_v33 = vrot.slane %v2469_v21, 4  ;;  %v5986_v0 = vld [vmem:[%s7020_s25 + $0x50] sm:$0x1]  ;;  %v6911_v13 = vld [vmem:[%s7020_s25 + $0x48] sm:$0xff]  }
  0x85   : > { %v6019_v31 = vcombine.low %v2433_v22, %v2443_v27  ;;  %6718 = vmatpush3.bf16.msra.mxu1 %v7068_v24  ;;  %6655 = vmatprep.mubr.msk.bf16.mxu1 %vm314_vm1, %v6908_v11  ;;  %v2452_v32 = vrot.slane %v2451_v23, 4  ;;  %v2474_v34 = vrot.slane %v2472_v26, 5  ;;  %v2480_v37 = vrot.slane %v2478_v19, 5  ;;  %v5988_v11 = vld [vmem:[%s7020_s25 + $0x58] sm:$0xf] }
  0x86   : > { %v2462_v36 = vrot.slane %v2461_v28, 4  ;;  %v2484_v18 = vrot.slane %v2482_v29, 4  ;;  %v2488_v38 = vshll.u32 %v5980_v25, 16  ;;  %v2493_v41 = vshrl.u32 %v5981_v30, 16  ;;  %v6912_v22 = vld [vmem:[%s7020_s25 + $0x54] sm:$0xff]  }
  0x87   : > { %6686 = vmatmul.mubr.msk.bf16.vlgmr.msra.gmra.mxu0 %vm314_vm1, %v6019_v31  ;;  %v2457_v40 = vsel %vm7093_vm7, %v2452_v32, %v2456_v16  ;;  %v2475_v24 = vor.u32 %v2474_v34, %v2471_v33  ;;  %v2496_v43 = vshll.u32 %v5981_v30, 16  ;;  %v2502_v48 = vshll.u32 %v5982_v35, 16  ;;  %v5989_v23 = vld [vmem:[%s7020_s25 + $0x5c] sm:$0x1]  ;;  %v5990_v29 = vld [vmem:[%s7020_s25 + $0x60] sm:$0xf] }
  0x88   : > { %6752 = vmatpush3.bf16.msra.mxu0 %v3871_v58  ;;  %v2467_v44 = vsel %vm7093_vm7, %v2462_v36, %v2466_v20  ;;  %v2485_v46 = vor.u32 %v2484_v18, %v2480_v37  ;;  %v2490_v47 = vrot.slane %v2488_v38, 5  ;;  %v2495_v53 = vrot.slane %v2493_v41, 4  ;;  %v5991_v34 = vld [vmem:[%s7020_s25 + $0x64] sm:$0xf]  ;;  %v5992_v41 = vld [vmem:[%s7020_s25 + $0x68] sm:$0x1] }
  0x89   : > { %v6020_v50 = vcombine.low %v2457_v40, %v2467_v44  ;;  %v2476_v51 = vrot.slane %v2475_v24, 4  ;;  %v2498_v54 = vrot.slane %v2496_v43, 5  ;;  %v2504_v60 = vrot.slane %v2502_v48, 5  ;;  %v5993_v43 = vld [vmem:[%s7020_s25 + $0x6c] sm:$0xf] }
  0x8a   : > { %v2486_v59 = vrot.slane %v2485_v46, 4  ;;  %v2506_v61 = vshrl.u32 %v5982_v35, 16  ;;  %v2512_v58 = vshll.u32 %v5983_v39, 16  ;;  %v2517_v1 = vshrl.u32 %v5984_v49, 16  ;;  %v5994_v48 = vld [vmem:[%s7020_s25 + $0x70] sm:$0xf] }
  0x8b   : > { %6689 = vmatprep.mubr.msk.bf16.mxu0 %vm314_vm1, %v6020_v50  ;;  %v2481_v62 = vsel %vm7093_vm7, %v2476_v51, %v2480_v37  ;;  %v2499_v63 = vor.u32 %v2498_v54, %v2495_v53  ;;  %v2520_v2 = vshll.u32 %v5984_v49, 16  ;;  %v2526_v6 = vshll.u32 %v5985_v57, 16 }
  0x8c   : > { %6656 = vmatmul.mubr.msk.bf16.gmra.mxu1 %vm314_vm1, %v6909_v45  ;;  %v2491_v3 = vsel %vm7093_vm7, %v2486_v59, %v2490_v47  ;;  %v2508_v4 = vrot.slane %v2506_v61, 4  ;;  %v2514_v5 = vrot.slane %v2512_v58, 5  ;;  %v2519_v9 = vrot.slane %v2517_v1, 4 }
  0x8d   : > { %v6021_v56 = vcombine.low %v2481_v62, %v2491_v3  ;;  %6659 = vmatprep.mubr.msk.bf16.mxu1 %vm314_vm1, %v6910_v52  ;;  %v2500_v8 = vrot.slane %v2499_v63, 4  ;;  %v2522_v10 = vrot.slane %v2520_v2, 5  ;;  %v2528_v14 = vrot.slane %v2526_v6, 5  ;;  %v6913_v63 = vld [vmem:[%s7020_s25 + $0x60] sm:$0xff]   ;;  %v5995_v3 = vld [vmem:[%s7020_s25 + $0x74] sm:$0x1] }
  0x8e   : > { %v2509_v12 = vor.u32 %v2508_v4, %v2504_v60  ;;  %v2530_v15 = vshrl.u32 %v5985_v57, 16  ;;  %v2536_v16 = vshll.u32 %v5986_v0, 16  ;;  %v2541_v25 = vshrl.u32 %v5987_v7, 16  ;;  %v6914_v6 = vld [vmem:[%s7020_s25 + $0x6c] sm:$0xff]  }
  0x8f   : > { %6690 = vmatmul.mubr.msk.bf16.gmra.mxu0 %vm314_vm1, %v6021_v56  ;;  %v2505_v17 = vsel %vm7093_vm7, %v2500_v8, %v2504_v60  ;;  %v2523_v20 = vor.u32 %v2522_v10, %v2519_v9  ;;  %v2544_v21 = vshll.u32 %v5987_v7, 16  ;;  %v2550_v19 = vshll.u32 %v5988_v11, 16  ;;  %v5996_v9 = vld [vmem:[%s7020_s25 + $0x78] sm:$0xf] }
  0x90   : > { %v2510_v26 = vrot.slane %v2509_v12, 4  ;;  %v2532_v27 = vrot.slane %v2530_v15, 4  ;;  %v2538_v28 = vrot.slane %v2536_v16, 5  ;;  %v2543_v31 = vrot.slane %v2541_v25, 4 }
  0x91   : > { %v2524_v30 = vrot.slane %v2523_v20, 4  ;;  %v2546_v32 = vrot.slane %v2544_v21, 5  ;;  %v2554_v33 = vshrl.u32 %v5988_v11, 16  ;;  %v2552_v37 = vrot.slane %v2550_v19, 5 }
  0x92   : > { %v2515_v35 = vsel %vm7093_vm7, %v2510_v26, %v2514_v5  ;;  %v2533_v36 = vor.u32 %v2532_v27, %v2528_v14  ;;  %v2560_v18 = vshll.u32 %v5989_v23, 16  ;;  %v2565_v46 = vshrl.u32 %v5990_v29, 16 }
  0x93   : > { %v6022_v38 = vcombine.low %v2505_v17, %v2515_v35  ;;  %v2529_v39 = vsel %vm7093_vm7, %v2524_v30, %v2528_v14  ;;  %v2547_v40 = vor.u32 %v2546_v32, %v2543_v31  ;;  %v2556_v24 = vrot.slane %v2554_v33, 4  ;;  %v5997_v14 = vld [vmem:[%s7020_s25 + $0x7c] sm:$0xf]  ;;  %v5999_v30 = vld [vmem:[%s7020_s25 + $0x84] sm:$0xf] }
  0x94   : > { %6660 = vmatmul.mubr.msk.bf16.gmra.mxu1 %vm314_vm1, %v6911_v13  ;;  %v2534_v44 = vrot.slane %v2533_v36, 4  ;;  %v2562_v45 = vrot.slane %v2560_v18, 5  ;;  %v2568_v47 = vshll.u32 %v5990_v29, 16  ;;  %v2574_v51 = vshll.u32 %v5991_v34, 16  ;;  %v7450_v31 = vld [vmem:[%s8715_s1 + $0xe] sm:$0x3] }
  0x95   : > { %6693 = vmatprep.mubr.msk.bf16.mxu0 %vm314_vm1, %v6022_v38  ;;  %6663 = vmatprep.mubr.msk.bf16.mxu1 %vm314_vm1, %v6912_v22  ;;  %v2548_v49 = vrot.slane %v2547_v40, 4  ;;  %v2557_v50 = vor.u32 %v2556_v24, %v2552_v37  ;;  %v2578_v52 = vshrl.u32 %v5991_v34, 16  ;;  %v2567_v54 = vrot.slane %v2565_v46, 4  ;;  %v5998_v22 = vld [vmem:[%s7020_s25 + $0x80] sm:$0x1]  ;;  %v6916_v46 = vld [vmem:[%s7020_s25 + $0x84] sm:$0xff]  }
  0x96   : > { %v2539_v53 = vsel %vm7093_vm7, %v2534_v44, %v2538_v28  ;;  %v2570_v57 = vrot.slane %v2568_v47, 5  ;;  %v2584_v59 = vshll.u32 %v5992_v41, 16  ;;  %v2576_v62 = vrot.slane %v2574_v51, 5  ;;  %v6000_v36 = vld [vmem:[%s7020_s25 + $0x88] sm:$0xf]  ;;  %6863 = vmatprep.subr.msk.bf16.mxu1 %vm363_vm0, %v7450_v31 }
  0x97   : > { %v6023_v60 = vcombine.low %v2529_v39, %v2539_v53  ;;  %v2553_v61 = vsel %vm7093_vm7, %v2548_v49, %v2552_v37  ;;  %v2558_v58 = vrot.slane %v2557_v50, 4  ;;  %v2580_v1 = vrot.slane %v2578_v52, 4  ;;  %v6915_v39 = vld [vmem:[%s7020_s25 + $0x78] sm:$0xff]   ;;  %v6001_v24 = vld [vmem:[%s7020_s25 + $0x8c] sm:$0x1] }
  0x98   : > { %v2571_v0 = vor.u32 %v2570_v57, %v2567_v54  ;;  %v2586_v2 = vrot.slane %v2584_v59, 5  ;;  %v2589_v4 = vshrl.u32 %v5993_v43, 16  ;;  %v2592_v7 = vshll.u32 %v5993_v43, 16  ;;  %v6002_v41 = vld [vmem:[%s7020_s25 + $0x90] sm:$0xf] }
  0x99   : > { %6694 = vmatmul.mubr.msk.bf16.gmra.mxu0 %vm314_vm1, %v6023_v60  ;;  %v2563_v5 = vsel %vm7093_vm7, %v2558_v58, %v2562_v45  ;;  %v2598_v56 = vshll.u32 %v5994_v48, 16  ;;  %v2602_v8 = vshrl.u32 %v5994_v48, 16  ;;  %v2581_v12 = vor.u32 %v2580_v1, %v2576_v62  ;;  %v7469_v52 = vld [vmem:[%s8715_s1 + $0x10] sm:$0x3]  ;;  %v6003_v60 = vld [vmem:[%s7020_s25 + $0x94] sm:$0xf] }
  0x9a   : > { %v6024_v10 = vcombine.low %v2553_v61, %v2563_v5  ;;  %v2572_v11 = vrot.slane %v2571_v0, 4  ;;  %v2591_v13 = vrot.slane %v2589_v4, 4  ;;  %v2594_v15 = vrot.slane %v2592_v7, 5  ;;  %6864 = vmatprep.subr.msk.bf16.mxu0 %vm363_vm0, %v7469_v52  ;;  %v6004_v0 = vld [vmem:[%s7020_s25 + $0x98] sm:$0x1] }
  0x9b   : > { %v2600_v16 = vrot.slane %v2598_v56, 5  ;;  %v2604_v17 = vrot.slane %v2602_v8, 4  ;;  %v2608_v20 = vshll.u32 %v5995_v3, 16  ;;  %v2582_v25 = vrot.slane %v2581_v12, 4  ;;  %v6005_v1 = vld [vmem:[%s7020_s25 + $0x9c] sm:$0xf] }
  0x9c   : > { %6697 = vmatprep.mubr.msk.bf16.mxu0 %vm314_vm1, %v6024_v10  ;;  %6664 = vmatmul.mubr.msk.bf16.gmra.mxu1 %vm314_vm1, %v6913_v63  ;;  %v2577_v23 = vsel %vm7093_vm7, %v2572_v11, %v2576_v62  ;;  %v2613_v21 = vshrl.u32 %v5996_v9, 16  ;;  %v2616_v26 = vshll.u32 %v5996_v9, 16  ;;  %v2595_v27 = vor.u32 %v2594_v15, %v2591_v13 }
  0x9d   : > { %6667 = vmatprep.mubr.msk.bf16.mxu1 %vm314_vm1, %v6914_v6  ;;  %v2605_v28 = vor.u32 %v2604_v17, %v2600_v16  ;;  %v2610_v19 = vrot.slane %v2608_v20, 5  ;;  %v2622_v29 = vshll.u32 %v5997_v14, 16  ;;  %v2587_v32 = vsel %vm7093_vm7, %v2582_v25, %v2586_v2  ;;  %v6918_v20 = vld [vmem:[%s7020_s25 + $0x9c] sm:$0xff]  }
  0x9e   : > { %v2615_v33 = vrot.slane %v2613_v21, 4  ;;  %v2618_v34 = vrot.slane %v2616_v26, 5  ;;  %v2626_v35 = vshrl.u32 %v5997_v14, 16  ;;  %v6025_v37 = vcombine.low %v2577_v23, %v2587_v32 }
  0x9f   : > { %v2596_v18 = vrot.slane %v2595_v27, 4  ;;  %v2606_v38 = vrot.slane %v2605_v28, 4  ;;  %v2624_v40 = vrot.slane %v2622_v29, 5  ;;  %v2632_v45 = vshll.u32 %v5998_v22, 16  ;;  %v6006_v22 = vld [vmem:[%s7020_s25 + $0xa0] sm:$0xf] }
  0xa0   : > { %v2619_v43 = vor.u32 %v2618_v34, %v2615_v33  ;;  %v2628_v44 = vrot.slane %v2626_v35, 4  ;;  %v2637_v47 = vshrl.u32 %v5999_v30, 16  ;;  %v2640_v50 = vshll.u32 %v5999_v30, 16  ;;  %v6007_v29 = vld [vmem:[%s7020_s25 + $0xa4] sm:$0x1] }
  0xa1   : > { %6698 = vmatmul.mubr.msk.bf16.gmra.mxu0 %vm314_vm1, %v6025_v37  ;;  %v2601_v48 = vsel %vm7093_vm7, %v2596_v18, %v2600_v16  ;;  %v2611_v49 = vsel %vm7093_vm7, %v2606_v38, %v2610_v19  ;;  %v2646_v51 = vshll.u32 %v6000_v36, 16  ;;  %v2634_v59 = vrot.slane %v2632_v45, 5  ;;  %v6917_v16 = vld [vmem:[%s7020_s25 + $0x90] sm:$0xff]  }
  0xa2   : > { %v6026_v53 = vcombine.low %v2601_v48, %v2611_v49  ;;  %v2620_v54 = vrot.slane %v2619_v43, 4  ;;  %v2629_v57 = vor.u32 %v2628_v44, %v2624_v40  ;;  %v2639_v61 = vrot.slane %v2637_v47, 4  ;;  %v6010_v48 = vld [vmem:[%s7020_s25 + $0xb0] sm:$0x1] }
  0xa3   : > { %v2642_v58 = vrot.slane %v2640_v50, 5  ;;  %v2648_v62 = vrot.slane %v2646_v51, 5  ;;  %v2650_v63 = vshrl.u32 %v6000_v36, 16  ;;  %v2656_v4 = vshll.u32 %v6001_v24, 16  ;;  %v6008_v36 = vld [vmem:[%s7020_s25 + $0xa8] sm:$0xf] }
  0xa4   : > { %6701 = vmatprep.mubr.msk.bf16.mxu0 %vm314_vm1, %v6026_v53  ;;  %6668 = vmatmul.mubr.msk.bf16.gmra.mxu1 %vm314_vm1, %v6915_v39  ;;  %v2625_v2 = vsel %vm7093_vm7, %v2620_v54, %v2624_v40  ;;  %v2630_v3 = vrot.slane %v2629_v57, 4  ;;  %v2661_v5 = vshrl.u32 %v6002_v41, 16  ;;  %v2664_v56 = vshll.u32 %v6002_v41, 16  ;;  %v6009_v40 = vld [vmem:[%s7020_s25 + $0xac] sm:$0xf] }
  0xa5   : > { %6671 = vmatprep.mubr.msk.bf16.mxu1 %vm314_vm1, %v6916_v46  ;;  %v2643_v6 = vor.u32 %v2642_v58, %v2639_v61  ;;  %v2652_v7 = vrot.slane %v2650_v63, 4  ;;  %v2670_v8 = vshll.u32 %v6003_v60, 16  ;;  %v2658_v10 = vrot.slane %v2656_v4, 5  ;;  %v6919_v53 = vld [vmem:[%s7020_s25 + $0xa8] sm:$0xff]   ;;  %v6012_v63 = vld [vmem:[%s7020_s25 + $0xb8] sm:$0xf] }
  0xa6   : > { %v2635_v9 = vsel %vm7093_vm7, %v2630_v3, %v2634_v59  ;;  %v2663_v11 = vrot.slane %v2661_v5, 4  ;;  %v2674_v12 = vshrl.u32 %v6003_v60, 16  ;;  %v2666_v17 = vrot.slane %v2664_v56, 5  ;;  %v6011_v59 = vld [vmem:[%s7020_s25 + $0xb4] sm:$0xf] }
  0xa7   : > { %v6027_v13 = vcombine.low %v2625_v2, %v2635_v9  ;;  %v2644_v14 = vrot.slane %v2643_v6, 4  ;;  %v2653_v15 = vor.u32 %v2652_v7, %v2648_v62  ;;  %v2672_v23 = vrot.slane %v2670_v8, 5  ;;  %v6920_v6 = vld [vmem:[%s7020_s25 + $0xb4] sm:$0xff]   ;;  %v6013_v7 = vld [vmem:[%s7020_s25 + $0xbc] sm:$0x1] }
  0xa8   : > { %v2676_v25 = vrot.slane %v2674_v12, 4  ;;  %v2680_v21 = vshll.u32 %v6004_v0, 16  ;;  %v2685_v26 = vshrl.u32 %v6005_v1, 16  ;;  %v2667_v19 = vor.u32 %v2666_v17, %v2663_v11 }
  0xa9   : > { %6702 = vmatmul.mubr.msk.bf16.gmra.mxu0 %vm314_vm1, %v6027_v13  ;;  %v2649_v27 = vsel %vm7093_vm7, %v2644_v14, %v2648_v62  ;;  %v2654_v28 = vrot.slane %v2653_v15, 4  ;;  %v2688_v30 = vshll.u32 %v6005_v1, 16  ;;  %v2694_v35 = vshll.u32 %v6006_v22, 16  ;;  %v6014_v13 = vld [vmem:[%s7020_s25 + $0xc0] sm:$0xf] }
  0xaa   : > { %v2677_v32 = vor.u32 %v2676_v25, %v2672_v23  ;;  %v2682_v33 = vrot.slane %v2680_v21, 5  ;;  %v2687_v34 = vrot.slane %v2685_v26, 4  ;;  %v2668_v18 = vrot.slane %v2667_v19, 4  ;;  %v6016_v26 = vld [vmem:[%s7020_s25 + $0xc8] sm:$0x1] }
  0xab   : > { %v2659_v37 = vsel %vm7093_vm7, %v2654_v28, %v2658_v10  ;;  %v2690_v38 = vrot.slane %v2688_v30, 5  ;;  %v2698_v39 = vshrl.u32 %v6006_v22, 16  ;;  %v2696_v43 = vrot.slane %v2694_v35, 5  ;;  %v6050_v30 = vld [vmem:[%s7020_s25 + $0xc] sm:$0xe] }
  0xac   : > { %v6028_v24 = vcombine.low %v2649_v27, %v2659_v37  ;;  %6672 = vmatmul.mubr.msk.bf16.gmra.mxu1 %vm314_vm1, %v6917_v16  ;;  %v2678_v41 = vrot.slane %v2677_v32, 4  ;;  %v2704_v44 = vshll.u32 %v6007_v29, 16  ;;  %v2673_v45 = vsel %vm7093_vm7, %v2668_v18, %v2672_v23  ;;  %v6051_v32 = vld [vmem:[%s7020_s25 + $0x10] sm:$0xf]  ;;  %v6052_v37 = vld [vmem:[%s7020_s25 + $0x14] sm:$0x1] }
  0xad   : > { %6675 = vmatprep.mubr.msk.bf16.mxu1 %vm314_vm1, %v6918_v20  ;;  %v2691_v46 = vor.u32 %v2690_v38, %v2687_v34  ;;  %v2700_v47 = vrot.slane %v2698_v39, 4  ;;  %v2709_v49 = vshrl.u32 %v6008_v36, 16  ;;  %v2712_v54 = vshll.u32 %v6008_v36, 16  ;;  %v6015_v20 = vld [vmem:[%s7020_s25 + $0xc4] sm:$0xf] }
  0xae   : > { %6705 = vmatprep.mubr.msk.bf16.mxu0 %vm314_vm1, %v6028_v24  ;;  %v2683_v50 = vsel %vm7093_vm7, %v2678_v41, %v2682_v33  ;;  %v2706_v51 = vrot.slane %v2704_v44, 5  ;;  %v2718_v57 = vshll.u32 %v6009_v40, 16  ;;  %v2722_v2 = vshrl.u32 %v6009_v40, 16  ;;  %v6053_v24 = vld [vmem:[%s7020_s25 + $0x18] sm:$0xe] }
  0xaf   : > { %v6029_v60 = vcombine.low %v2673_v45, %v2683_v50  ;;  %v2692_v61 = vrot.slane %v2691_v46, 4  ;;  %v2701_v58 = vor.u32 %v2700_v47, %v2696_v43  ;;  %v2711_v62 = vrot.slane %v2709_v49, 4  ;;  %v6054_v47 = vld [vmem:[%s7020_s25 + $0x1c] sm:$0xf] }
  0xb0   : > { %v2714_v0 = vrot.slane %v2712_v54, 5  ;;  %v2720_v1 = vrot.slane %v2718_v57, 5  ;;  %v2728_v3 = vshll.u32 %v6010_v48, 16  ;;  %v2733_v56 = vshrl.u32 %v6011_v59, 16  ;;  %v6055_v48 = vld [vmem:[%s7020_s25 + $0x20] sm:$0x1] }
  0xb1   : > { %6706 = vmatmul.mubr.msk.bf16.gmra.mxu0 %vm314_vm1, %v6029_v60  ;;  %v2697_v4 = vsel %vm7093_vm7, %v2692_v61, %v2696_v43  ;;  %v2702_v5 = vrot.slane %v2701_v58, 4  ;;  %v2736_v8 = vshll.u32 %v6011_v59, 16  ;;  %v2724_v10 = vrot.slane %v2722_v2, 4  ;;  %v6921_v43 = vld [vmem:[%s7020_s25 + $0xc0] sm:$0xff]   ;;  %v6057_v58 = vld [vmem:[%s7020_s25 + $0x28] sm:$0xf] }
  0xb2   : > { %v2715_v9 = vor.u32 %v2714_v0, %v2711_v62  ;;  %v2730_v11 = vrot.slane %v2728_v3, 5  ;;  %v2742_v12 = vshll.u32 %v6012_v63, 16  ;;  %v2735_v15 = vrot.slane %v2733_v56, 4  ;;  %v6056_v54 = vld [vmem:[%s7020_s25 + $0x24] sm:$0xe] }
  0xb3   : > { %v2707_v14 = vsel %vm7093_vm7, %v2702_v5, %v2706_v51  ;;  %v2738_v16 = vrot.slane %v2736_v8, 5  ;;  %v2746_v17 = vshrl.u32 %v6012_v63, 16  ;;  %v2725_v25 = vor.u32 %v2724_v10, %v2720_v1  ;;  %v6058_v2 = vld [vmem:[%s7020_s25 + $0x2c] sm:$0x1]  ;;  %v6059_v3 = vld [vmem:[%s7020_s25 + $0x30] sm:$0xe] }
  0xb4   : > { %v6030_v22 = vcombine.low %v2697_v4, %v2707_v14  ;;  %6676 = vmatmul.mubr.msk.bf16.gmra.mxu1 %vm314_vm1, %v6919_v53  ;;  %v2716_v23 = vrot.slane %v2715_v9, 4  ;;  %v2744_v21 = vrot.slane %v2742_v12, 5  ;;  %v2752_v19 = vshll.u32 %v6013_v7, 16  ;;  %v6061_v12 = vld [vmem:[%s7020_s25 + $0x38] sm:$0x1] }
  0xb5   : > { %6679 = vmatprep.mubr.msk.bf16.mxu1 %vm314_vm1, %v6920_v6  ;;  %v2739_v27 = vor.u32 %v2738_v16, %v2735_v15  ;;  %v2748_v28 = vrot.slane %v2746_v17, 4  ;;  %v2757_v29 = vshrl.u32 %v6014_v13, 16  ;;  %v2726_v34 = vrot.slane %v2725_v25, 4  ;;  %v6922_v16 = vld [vmem:[%s7020_s25 + $0x18] sm:$0xff]  }
  0xb6   : > { %6709 = vmatprep.mubr.msk.bf16.mxu0 %vm314_vm1, %v6030_v22  ;;  %v2721_v33 = vsel %vm7093_vm7, %v2716_v23, %v2720_v1  ;;  %v2760_v35 = vshll.u32 %v6014_v13, 16  ;;  %v2766_v36 = vshll.u32 %v6015_v20, 16  ;;  %v2754_v39 = vrot.slane %v2752_v19, 5  ;;  %v6062_v13 = vld [vmem:[%s7020_s25 + $0x3c] sm:$0xe] }
  0xb7   : > { %v2740_v18 = vrot.slane %v2739_v27, 4  ;;  %v2749_v38 = vor.u32 %v2748_v28, %v2744_v21  ;;  %v2759_v40 = vrot.slane %v2757_v29, 4  ;;  %v2731_v41 = vsel %vm7093_vm7, %v2726_v34, %v2730_v11  ;;  %v6060_v11 = vld [vmem:[%s7020_s25 + $0x34] sm:$0xf]  ;;  %v6063_v22 = vld [vmem:[%s7020_s25 + $0x40] sm:$0xf] }
  0xb8   : > { %v2762_v44 = vrot.slane %v2760_v35, 5  ;;  %v2768_v45 = vrot.slane %v2766_v36, 5  ;;  %v2770_v46 = vshrl.u32 %v6015_v20, 16  ;;  %v6031_v49 = vcombine.low %v2721_v33, %v2731_v41  ;;  %v6064_v23 = vld [vmem:[%s7020_s25 + $0x44] sm:$0x1] }
  0xb9   : > { %v2745_v50 = vsel %vm7093_vm7, %v2740_v18, %v2744_v21  ;;  %v2750_v51 = vrot.slane %v2749_v38, 4  ;;  %v2776_v53 = vshll.u32 %v6016_v26, 16  ;;  %v6098_v60 = vrot.slane %v6050_v30, 9  ;;  %v6066_v28 = vld [vmem:[%s7020_s25 + $0x4c] sm:$0xf] }
  0xba   : > { %v2763_v57 = vor.u32 %v2762_v44, %v2759_v40  ;;  %v2772_v59 = vrot.slane %v2770_v46, 4  ;;  %v3236_v61 = vrot.slane %v6051_v32, 5  ;;  %6710 = vmatmul.mubr.msk.bf16.gmra.mxu0 %vm314_vm1, %v6031_v49  ;;  %v3239_v0 = vrot.slane %v6052_v37, 5  ;;  %v6067_v32 = vld [vmem:[%s7020_s25 + $0x50] sm:$0x1] }
  0xbb   : > { %v2755_v62 = vsel %vm7093_vm7, %v2750_v51, %v2754_v39  ;;  %v2778_v63 = vrot.slane %v2776_v53, 5  ;;  %v6099_v1 = vrot.slane %v6053_v24, 9  ;;  %v3243_v8 = vrot.slane %v6054_v47, 5  ;;  %v6068_v37 = vld [vmem:[%s7020_s25 + $0x54] sm:$0xe] }
  0xbc   : > { %v6032_v4 = vcombine.low %v2745_v50, %v2755_v62  ;;  %6680 = vmatmul.mubr.msk.bf16.gmra.mxu1 %vm314_vm1, %v6921_v43  ;;  %v2764_v5 = vrot.slane %v2763_v57, 4  ;;  %v2773_v6 = vor.u32 %v2772_v59, %v2768_v45  ;;  %v3237_v7 = vsel %vm7079_vm6, %v6098_v60, %v3236_v61  ;;  %v6069_v18 = vld [vmem:[%s7020_s25 + $0x58] sm:$0xf]  ;;  %v6070_v41 = vld [vmem:[%s7020_s25 + $0x5c] sm:$0x1]  ;;  %v6923_v59 = vld [vmem:[%s7020_s25 + $0x24] sm:$0xff]  }
  0xbd   : > { %v3238_v56 = vrot.slane %v3236_v61, 4  ;;  %v3246_v9 = vrot.slane %v6055_v48, 5  ;;  %v4661_v10 = vsel %vm363_vm0, %v7450_v31, 0  ;;  %v7552_v17 = vsel %vm363_vm0, %v7469_v52, 0  ;;  %v6065_v31 = vld [vmem:[%s7020_s25 + $0x48] sm:$0xe] }
  0xbe   : > { %6713 = vmatprep.mubr.msk.bf16.mxu0 %vm314_vm1, %v6032_v4  ;;  %v2769_v14 = vsel %vm7093_vm7, %v2764_v5, %v2768_v45  ;;  %v2774_v15 = vrot.slane %v2773_v6, 4  ;;  %v6100_v20 = vrot.slane %v6056_v54, 9  ;;  %v3244_v21 = vsel %vm7079_vm6, %v6099_v1, %v3243_v8  ;;  %v6071_v43 = vld [vmem:[%s7020_s25 + $0x60] sm:$0xe]  ;;  %v6072_v53 = vld [vmem:[%s7020_s25 + $0x64] sm:$0xf] }
  0xbf   : > { %v3240_v25 = vsel %vm7079_vm6, %v3238_v56, %v3239_v0  ;;  %v3245_v26 = vrot.slane %v3243_v8, 4  ;;  %v3250_v27 = vrot.slane %v6057_v58, 5  ;;  %v3253_v29 = vrot.slane %v6058_v2, 5  ;;  %v6073_v54 = vld [vmem:[%s7020_s25 + $0x68] sm:$0x1] }
  0xc0   : > { %v2779_v19 = vsel %vm7093_vm7, %v2774_v15, %v2778_v63  ;;  %v6115_v52 = vcombine.low %v3237_v7, %v3240_v25  ;;  %v6101_v30 = vrot.slane %v6059_v3, 9  ;;  %v3257_v39 = vrot.slane %v6060_v11, 5  ;;  %v6074_v57 = vld [vmem:[%s7020_s25 + $0x6c] sm:$0xe]  ;;  %v6075_v63 = vld [vmem:[%s7020_s25 + $0x70] sm:$0xf] }
  0xc1   : > { %v6033_v33 = vcombine.low %v2769_v14, %v2779_v19  ;;  %v3247_v34 = vsel %vm7079_vm6, %v3245_v26, %v3246_v9  ;;  %v3251_v35 = vsel %vm7079_vm6, %v6100_v20, %v3250_v27  ;;  %v3252_v36 = vrot.slane %v3250_v27, 4  ;;  %v6076_v0 = vld [vmem:[%s7020_s25 + $0x74] sm:$0x1]  ;;  %v6077_v1 = vld [vmem:[%s7020_s25 + $0x78] sm:$0xe] }
  0xc2   : > { %6719 = vmatprep.mubr.msk.bf16.mxu1 %vm314_vm1, %v6115_v52  ;;  %v6116_v38 = vcombine.low %v3244_v21, %v3247_v34  ;;  %v3260_v40 = vrot.slane %v6061_v12, 5  ;;  %v6102_v24 = vrot.slane %v6062_v13, 9  ;;  %v3264_v45 = vrot.slane %v6063_v22, 5  ;;  %v6078_v6 = vld [vmem:[%s7020_s25 + $0x7c] sm:$0xf]  ;;  %v6924_v12 = vld [vmem:[%s7020_s25 + $0x30] sm:$0xff]  }
  0xc3   : > { %6714 = vmatmul.mubr.msk.bf16.gmra.mxu0 %vm314_vm1, %v6033_v33  ;;  %v3254_v44 = vsel %vm7079_vm6, %v3252_v36, %v3253_v29  ;;  %v3267_v46 = vrot.slane %v6064_v23, 5  ;;  %v6103_v47 = vrot.slane %v6065_v31, 9  ;;  %v7581_v49 = vsel %vm7079_vm6, %v6101_v30, %v3257_v39  ;;  %v6080_v11 = vld [vmem:[%s7020_s25 + $0x84] sm:$0xe]  ;;  %v6081_v20 = vld [vmem:[%s7020_s25 + $0x88] sm:$0xf] }
  0xc4   : > { %6753 = vmatprep.mubr.msk.bf16.mxu0 %vm314_vm1, %v6922_v16  ;;  %6720 = vmatmul.mubr.msk.bf16.vlgmr.msra.gmra.mxu1 %vm314_vm1, %v6116_v38  ;;  %v6117_v48 = vcombine.low %v3251_v35, %v3254_v44  ;;  %v3259_v50 = vrot.slane %v3257_v39, 4  ;;  %v3271_v51 = vrot.slane %v6066_v28, 5  ;;  %v3265_v60 = vsel %vm7079_vm6, %v6102_v24, %v3264_v45  ;;  %v6082_v21 = vld [vmem:[%s7020_s25 + $0x8c] sm:$0x1]  ;;  %v6083_v52 = vld [vmem:[%s7020_s25 + $0x90] sm:$0xe] }
  0xc5   : > { %6786 = vmatpush3.bf16.msra.mxu1 %v4661_v10  ;;  %v3266_v61 = vrot.slane %v3264_v45, 4  ;;  %v3274_v58 = vrot.slane %v6067_v32, 5  ;;  %v6104_v62 = vrot.slane %v6068_v37, 9  ;;  %v3278_v5 = vrot.slane %v6069_v18, 5  ;;  %v6079_v10 = vld [vmem:[%s7020_s25 + $0x80] sm:$0x1] }
  0xc6   : > { %6723 = vmatprep.mubr.msk.bf16.mxu1 %vm314_vm1, %v6117_v48  ;;  %v3261_v2 = vsel %vm7079_vm6, %v3259_v50, %v3260_v40  ;;  %v7597_v3 = vsel %vm7079_vm6, %v6103_v47, %v3271_v51  ;;  %v3273_v4 = vrot.slane %v3271_v51, 4  ;;  %v3281_v8 = vrot.slane %v6070_v41, 5  ;;  %v6084_v35 = vld [vmem:[%s7020_s25 + $0x94] sm:$0xf]  ;;  %v7634_v36 = vld [vmem:[%s7020_s25 + $0x98] sm:$0x1] }
  0xc7   : > { %v6118_v7 = vcombine.low %v7581_v49, %v3261_v2  ;;  %v3268_v56 = vsel %vm7079_vm6, %v3266_v61, %v3267_v46  ;;  %v6105_v9 = vrot.slane %v6071_v43, 9  ;;  %v7612_v15 = vsel %vm7079_vm6, %v6104_v62, %v3278_v5  ;;  %v6086_v37 = vld [vmem:[%s7020_s25 + $0x9c] sm:$0xe]  ;;  %v6087_v41 = vld [vmem:[%s7020_s25 + $0xa0] sm:$0xf] }
  0xc8   : > { %v6119_v13 = vcombine.low %v3265_v60, %v3268_v56  ;;  %v7608_v14 = vsel %vm7079_vm6, %v3273_v4, %v3274_v58  ;;  %v3280_v16 = vrot.slane %v3278_v5, 4  ;;  %v3285_v23 = vrot.slane %v6072_v53, 5  ;;  %v6088_v43 = vld [vmem:[%s7020_s25 + $0xa4] sm:$0x1]  ;;  %v6089_v44 = vld [vmem:[%s7020_s25 + $0xa8] sm:$0xe] }
  0xc9   : > { %v6120_v22 = vcombine.low %v7597_v3, %v7608_v14  ;;  %v3288_v31 = vrot.slane %v6073_v54, 5  ;;  %v6106_v25 = vrot.slane %v6074_v57, 9  ;;  %v3292_v27 = vrot.slane %v6075_v63, 5  ;;  %v6090_v49 = vld [vmem:[%s7020_s25 + $0xac] sm:$0xf]  ;;  %v6925_v61 = vld [vmem:[%s7020_s25 + $0x3c] sm:$0xff]  }
  0xca   : > { %v7620_v26 = vsel %vm7079_vm6, %v3280_v16, %v3281_v8  ;;  %v3295_v28 = vrot.slane %v6076_v0, 5  ;;  %v6107_v19 = vrot.slane %v6077_v1, 9  ;;  %v7628_v30 = vsel %vm7079_vm6, %v6105_v9, %v3285_v23  ;;  %v6092_v60 = vld [vmem:[%s7020_s25 + $0xb4] sm:$0xe]  ;;  %v6093_v2 = vld [vmem:[%s7020_s25 + $0xb8] sm:$0xf] }
  0xcb   : > { %6754 = vmatmul.mubr.msk.bf16.vlgmr.msra.gmra.mxu0 %vm314_vm1, %v6923_v59  ;;  %v6121_v29 = vcombine.low %v7612_v15, %v7620_v26  ;;  %v3287_v32 = vrot.slane %v3285_v23, 4  ;;  %v3299_v34 = vrot.slane %v6078_v6, 5  ;;  %v7641_v18 = vsel %vm7079_vm6, %v6106_v25, %v3292_v27  ;;  %v6091_v59 = vld [vmem:[%s7020_s25 + $0xb0] sm:$0x1]  ;;  %v6926_v4 = vld [vmem:[%s7020_s25 + $0x48] sm:$0xff]   ;;  %v6927_v26 = vld [vmem:[%s7020_s25 + $0x54] sm:$0xff]  }
  0xcc   : > { %6820 = vmatpush3.bf16.msra.mxu0 %v7552_v17  ;;  %6757 = vmatprep.mubr.msk.bf16.mxu0 %vm314_vm1, %v6924_v12  ;;  %v3294_v38 = vrot.slane %v3292_v27, 4  ;;  %v3302_v40 = vrot.slane %v6079_v10, 5  ;;  %v6108_v24 = vrot.slane %v6080_v11, 9  ;;  %v3306_v48 = vrot.slane %v6081_v20, 5  ;;  %v6094_v9 = vld [vmem:[%s7020_s25 + $0xbc] sm:$0x1] }
  0xcd   : > { %6724 = vmatmul.mubr.msk.bf16.gmra.mxu1 %vm314_vm1, %v6118_v7  ;;  %v7651_v17 = vsel %vm7079_vm6, %v3287_v32, %v3288_v31  ;;  %v7655_v45 = vsel %vm7079_vm6, %v6107_v19, %v3299_v34  ;;  %v3301_v46 = vrot.slane %v3299_v34, 4  ;;  %v3309_v54 = vrot.slane %v6082_v21, 5  ;;  %v6095_v20 = vld [vmem:[%s7020_s25 + $0xc0] sm:$0xe]  ;;  %v6293_v15 = vld [vmem:[%s7020_s25 + $0x18] sm:$0xe] }
  0xce   : > { %6727 = vmatprep.mubr.msk.bf16.mxu1 %vm314_vm1, %v6119_v13  ;;  %v6122_v50 = vcombine.low %v7628_v30, %v7651_v17  ;;  %v7665_v51 = vsel %vm7079_vm6, %v3294_v38, %v3295_v28  ;;  %v6109_v57 = vrot.slane %v6083_v52, 9  ;;  %v7682_v0 = vsel %vm7079_vm6, %v6108_v24, %v3306_v48  ;;  %v6096_v28 = vld [vmem:[%s7020_s25 + $0xc4] sm:$0xf]  ;;  %v6217_v14 = vld [vmem:[%s7020_s25 + $0x2c] sm:$0x1] }
  0xcf   : > { %v6123_v58 = vcombine.low %v7641_v18, %v7665_v51  ;;  %v7676_v62 = vsel %vm7079_vm6, %v3301_v46, %v3302_v40  ;;  %v3308_v1 = vrot.slane %v3306_v48, 4  ;;  %v3313_v7 = vrot.slane %v6084_v35, 5  ;;  %v6218_v51 = vld [vmem:[%s7020_s25 + $0x30] sm:$0xf] }
  0xd0   : > { %v3316_v56 = vrot.slane %v7634_v36, 5  ;;  %v6110_v8 = vrot.slane %v6086_v37, 9  ;;  %v3320_v12 = vrot.slane %v6087_v41, 5  ;;  %v3323_v13 = vrot.slane %v6088_v43, 5  ;;  %v6097_v41 = vld [vmem:[%s7020_s25 + $0xc8] sm:$0x1] }
  0xd1   : > { %v7696_v11 = vsel %vm7079_vm6, %v3308_v1, %v3309_v54  ;;  %v6111_v16 = vrot.slane %v6089_v44, 9  ;;  %v7705_v25 = vsel %vm7079_vm6, %v6109_v57, %v3313_v7  ;;  %v3315_v21 = vrot.slane %v3313_v7, 4  ;;  %v6212_v43 = vld [vmem:[%s7020_s25 + $0x18] sm:$0xf]  ;;  %v6213_v57 = vld [vmem:[%s7020_s25 + $0x1c] sm:$0xf] }
  0xd2   : > { %v3327_v27 = vrot.slane %v6090_v49, 5  ;;  %v7713_v52 = vsel %vm7079_vm6, %v6110_v8, %v3320_v12  ;;  %v3322_v32 = vrot.slane %v3320_v12, 4  ;;  %v3330_v34 = vrot.slane %v6091_v59, 5  ;;  %v6928_v8 = vld [vmem:[%s7020_s25 + $0x60] sm:$0xff]  }
  0xd3   : > { %6758 = vmatmul.mubr.msk.bf16.gmra.mxu0 %vm314_vm1, %v6925_v61  ;;  %v6112_v35 = vrot.slane %v6092_v60, 9  ;;  %v7720_v37 = vsel %vm7079_vm6, %v3315_v21, %v3316_v56  ;;  %v3334_v24 = vrot.slane %v6093_v2, 5  ;;  %v3337_v49 = vrot.slane %v6094_v9, 5  ;;  %v6214_v61 = vld [vmem:[%s7020_s25 + $0x20] sm:$0x1] }
  0xd4   : > { %v7630_v33 = vpop.f32.mrf.mxu0  ;;  %6761 = vmatprep.mubr.msk.bf16.mxu0 %vm314_vm1, %v6926_v4  ;;  %v7724_v38 = vsel %vm7079_vm6, %v6111_v16, %v3327_v27  ;;  %v3329_v40 = vrot.slane %v3327_v27, 4  ;;  %v7738_v48 = vsel %vm7079_vm6, %v3322_v32, %v3323_v13  ;;  %v6113_v54 = vrot.slane %v6095_v20, 9  ;;  %v6294_v56 = vld [vmem:[%s7020_s25 + $0x1c] sm:$0xf]  ;;  %v6295_v21 = vld [vmem:[%s7020_s25 + $0x20] sm:$0x1] }
  0xd5   : > { %v7643_v39 = vpop.f32.mrf.mxu1  ;;  %6728 = vmatmul.mubr.msk.bf16.gmra.mxu1 %vm314_vm1, %v6120_v22  ;;  %v7755_v59 = vsel %vm7079_vm6, %v6112_v35, %v3334_v24  ;;  %v3336_v60 = vrot.slane %v3334_v24, 4  ;;  %v3341_v2 = vrot.slane %v6096_v28, 5  ;;  %v3344_v4 = vrot.slane %v6097_v41, 5 }
  0xd6   : > { %v7657_v47 = vpop.f32.mrf.mxu0  ;;  %6731 = vmatprep.mubr.msk.bf16.mxu1 %vm314_vm1, %v6121_v29  ;;  %v7751_v22 = vsel %vm7079_vm6, %v3329_v40, %v3330_v34  ;;  %v4179_v7 = vshrl.u32 %v6212_v43, 16  ;;  %v4182_v13 = vshll.u32 %v6212_v43, 16  ;;  %v4188_v16 = vshll.u32 %v6213_v57, 16 }
  0xd7   : > { %v7667_v53 = vpop.f32.mrf.mxu1  ;;  %v7770_v12 = vsel %vm7079_vm6, %v3336_v60, %v3337_v49  ;;  %v4192_v20 = vshrl.u32 %v6213_v57, 16  ;;  %v7779_v32 = vsel %vm7079_vm6, %v6113_v54, %v3341_v2  ;;  %v3343_v34 = vrot.slane %v3341_v2, 4  ;;  %v6215_v57 = vld [vmem:[%s7020_s25 + $0x24] sm:$0xf] }
  0xd8   : > { %v7678_v63 = vpop.f32.mrf.mxu0  ;;  %v4181_v35 = vrot.slane %v4179_v7, 4  ;;  %v4184_v24 = vrot.slane %v4182_v13, 5  ;;  %v4190_v41 = vrot.slane %v4188_v16, 5  ;;  %v4198_v49 = vshll.u32 %v6214_v61, 16  ;;  %v6216_v7 = vld [vmem:[%s7020_s25 + $0x28] sm:$0xf] }
  0xd9   : > { %v7688_v6 = vpop.f32.mrf.mxu1  ;;  %v4194_v43 = vrot.slane %v4192_v20, 4  ;;  %v7789_v28 = vsel %vm7079_vm6, %v3343_v34, %v3344_v4  ;;  %v6341_v54 = vrot.slane %v6293_v15, 9  ;;  %v5018_v29 = vrot.slane %v6294_v56, 5  ;;  %v6296_v34 = vld [vmem:[%s7020_s25 + $0x24] sm:$0xe] }
  0xda   : > { %v7692_v10 = vpop.f32.mrf.mxu0  ;;  %v5021_v2 = vrot.slane %v6295_v21, 5  ;;  %v4200_v20 = vrot.slane %v4198_v49, 5  ;;  %v4206_v21 = vshll.u32 %v6215_v57, 16  ;;  %v6298_v49 = vld [vmem:[%s7020_s25 + $0x2c] sm:$0x1]  ;;  %v4222_v18 = vshll.u32 %v6217_v14, 16 }
  0xdb   : > { %v7699_v23 = vpop.f32.mrf.mxu1  ;;  %6762 = vmatmul.mubr.msk.bf16.gmra.mxu0 %vm314_vm1, %v6927_v26  ;;  %v4185_v26 = vor.u32 %v4184_v24, %v4181_v35  ;;  %v4195_v16 = vor.u32 %v4194_v43, %v4190_v41  ;;  %v7806_v4 = vsel %vm7079_vm6, %v6341_v54, %v5018_v29  ;;  %v5020_v56 = vrot.slane %v5018_v29, 4  ;;  %v6297_v35 = vld [vmem:[%s7020_s25 + $0x28] sm:$0xf]  ;;  %v6929_v29 = vld [vmem:[%s7020_s25 + $0x6c] sm:$0xff]  }
  0xdc   : > { %8722 = vst [vmem:[#allocation3_spill] sm:$0xff] %v7699_v23  ;;  %v7709_v19 = vpop.f32.mrf.mxu0  ;;  %6765 = vmatprep.mubr.msk.bf16.mxu0 %vm314_vm1, %v6928_v8  ;;  %v4203_v8 = vshrl.u32 %v6215_v57, 16  ;;  %v4212_v24 = vshll.u32 %v6216_v7, 16  ;;  %v4216_v43 = vshrl.u32 %v6216_v7, 16  ;;  %v4208_v44 = vrot.slane %v4206_v21, 5 }
  0xdd   : > { %v7716_v36 = vpop.f32.mrf.mxu1  ;;  %6732 = vmatmul.mubr.msk.bf16.gmra.mxu1 %vm314_vm1, %v6122_v50  ;;  %v4186_v17 = vrot.slane %v4185_v26, 4  ;;  %v4196_v50 = vrot.slane %v4195_v16, 4  ;;  %v7822_v57 = vsel %vm7079_vm6, %v5020_v56, %v5021_v2  ;;  %v6219_v2 = vld [vmem:[%s7020_s25 + $0x34] sm:$0xf] }
  0xde   : > { %8723 = vst [vmem:[#allocation4_spill] sm:$0xff] %v7716_v36  ;;  %v7734_v46 = vpop.f32.mrf.mxu0  ;;  %6735 = vmatprep.mubr.msk.bf16.mxu1 %vm314_vm1, %v6123_v58  ;;  %v4205_v61 = vrot.slane %v4203_v8, 4  ;;  %v6930_v58 = vld [vmem:[%s7020_s25 + $0x78] sm:$0xff]   ;;  %v4214_v5 = vrot.slane %v4212_v24, 5  ;;  %v4218_v21 = vrot.slane %v4216_v43, 4 }
  0xdf   : > { %v7745_v3 = vpop.f32.mrf.mxu1  ;;  %v4191_v26 = vsel %vm7093_vm7, %v4186_v17, %v4190_v41  ;;  %v4201_v7 = vsel %vm7093_vm7, %v4196_v50, %v4200_v20  ;;  %v5025_v41 = vrot.slane %v6297_v35, 5  ;;  %v5028_v17 = vrot.slane %v6298_v49, 5  ;;  %v6220_v20 = vld [vmem:[%s7020_s25 + $0x38] sm:$0x1] }
  0xe0   : > { %8724 = vst [vmem:[#allocation5_spill] sm:$0xff] %v7745_v3  ;;  %v7760_v1 = vpop.f32.mrf.mxu0  ;;  %v7837_v8 = vcombine.low %v4191_v26, %v4201_v7  ;;  %v4209_v14 = vor.u32 %v4208_v44, %v4205_v61  ;;  %v4227_v50 = vshrl.u32 %v6218_v51, 16  ;;  %v4230_v26 = vshll.u32 %v6218_v51, 16  ;;  %v6299_v44 = vld [vmem:[%s7020_s25 + $0x30] sm:$0xe] }
  0xe1   : > { %v7766_v9 = vpop.f32.mrf.mxu1  ;;  %v4236_v7 = vshll.u32 %v6219_v2, 16  ;;  %v5027_v35 = vrot.slane %v5025_v41, 4  ;;  %v4240_v49 = vshrl.u32 %v6219_v2, 16  ;;  %v8733_v2 = vcombine.low %v7682_v0, %v7696_v11 }
  0xe2   : > { %8725 = vst [vmem:[#allocation6_spill] sm:$0xff] %v7766_v9  ;;  %v7773_v27 = vpop.f32.mrf.mxu0  ;;  %v4210_v16 = vrot.slane %v4209_v14, 4  ;;  %v4229_v43 = vrot.slane %v4227_v50, 4 }
  0xe3   : > { %v7781_v40 = vpop.f32.mrf.mxu1  ;;  %6766 = vmatmul.mubr.msk.bf16.gmra.mxu0 %vm314_vm1, %v6929_v29  ;;  %v6300_v29 = vld [vmem:[%s7020_s25 + $0x34] sm:$0xf] }
  0xe4   : > { %8726 = vst [vmem:[#allocation7_spill] sm:$0xff] %v7781_v40  ;;  %v7785_v60 = vpop.f32.mrf.mxu0  ;;  %v4219_v40 = vor.u32 %v4218_v21, %v4214_v5  ;;  %6769 = vmatprep.mubr.msk.bf16.mxu0 %vm314_vm1, %v6930_v58  ;;  %v4215_v58 = vsel %vm7093_vm7, %v4210_v16, %v4214_v5  ;;  %v4232_v21 = vrot.slane %v4230_v26, 5  ;;  %v6343_v5 = vrot.slane %v6299_v44, 9  ;;  %v6931_v16 = vld [vmem:[%s7020_s25 + $0x84] sm:$0xff]  }
  0xe5   : > { %v7793_v13 = vpop.f32.mrf.mxu1 }
  0xe6   : > { %8727 = vst [vmem:[#allocation8_spill] sm:$0xff] %v7793_v13  ;;  %v7802_v15 = vpop.f32.mrf.mxu0  ;;  %v6342_v13 = vrot.slane %v6296_v34, 9  ;;  %v4220_v14 = vrot.slane %v4219_v40, 4  ;;  %v6221_v40 = vld [vmem:[%s7020_s25 + $0x3c] sm:$0xf]  ;;  %v4233_v11 = vor.u32 %v4232_v21, %v4229_v43 }
  0xe7   : > { %v7814_v30 = vpop.f32.mrf.mxu1 }
  0xe8   : > { %8728 = vst [vmem:[#allocation9_spill] sm:$0xff] %v7814_v30  ;;  %v7818_v54 = vpop.f32.mrf.mxu0  ;;  %v4224_v30 = vrot.slane %v4222_v18, 5  ;;  %v7851_v34 = vsel %vm7079_vm6, %v6342_v13, %v5025_v41  ;;  %v8732_v18 = vcombine.low %v7655_v45, %v7676_v62  ;;  %v4238_v13 = vrot.slane %v4236_v7, 5  ;;  %v6301_v41 = vld [vmem:[%s7020_s25 + $0x38] sm:$0x1] }
  0xe9   : > { %v7826_v31 = vpop.f32.mrf.mxu1  ;;  %v7871_v45 = vsel %vm7079_vm6, %v5027_v35, %v5028_v17  ;;  %v4242_v62 = vrot.slane %v4240_v49, 4  ;;  %v5035_v49 = vrot.slane %v6301_v41, 5  ;;  %v4234_v3 = vrot.slane %v4233_v11, 4  ;;  %v6302_v41 = vld [vmem:[%s7020_s25 + $0x3c] sm:$0xe] }
  0xea   : > { %8729 = vst [vmem:[#allocation10_spill] sm:$0xff] %v7826_v31  ;;  %v7835_v56 = vpop.f32.mrf.mxu0  ;;  %6736 = vmatmul.mubr.msk.bf16.gmra.mxu1 %vm314_vm1, %v8732_v18  ;;  %v4246_v18 = vshll.u32 %v6220_v20, 16  ;;  %v4225_v7 = vsel %vm7093_vm7, %v4220_v14, %v4224_v30 }
  0xeb   : > { %v7839_v31 = vpop.f32.mrf.mxu1  ;;  %6739 = vmatprep.mubr.msk.bf16.mxu1 %vm314_vm1, %v8733_v2  ;;  %v5032_v2 = vrot.slane %v6300_v29, 5  ;;  %v7885_v20 = vcombine.low %v4215_v58, %v4225_v7  ;;  %v4243_v44 = vor.u32 %v4242_v62, %v4238_v13  ;;  %v4251_v29 = vshrl.u32 %v6221_v40, 16  ;;  %6770 = vmatmul.mubr.msk.bf16.gmra.mxu0 %vm314_vm1, %v6931_v16 }
  0xec   : > { %8730 = vst [vmem:[#allocation11_spill] sm:$0xff] %v7839_v31  ;;  %v7843_v24 = vpop.f32.mrf.mxu0  ;;  %v4248_v35 = vrot.slane %v4246_v18, 5  ;;  %v6223_v31 = vld [vmem:[%s7020_s25 + $0x44] sm:$0x1]  ;;  %v4254_v58 = vshll.u32 %v6221_v40, 16  ;;  %v4239_v11 = vsel %vm7093_vm7, %v4234_v3, %v4238_v13  ;;  %v6344_v16 = vrot.slane %v6302_v41, 9 }
  0xed   : > { %v7847_v61 = vpop.f32.mrf.mxu1  ;;  %v7892_v30 = vsel %vm7079_vm6, %v6343_v5, %v5032_v2  ;;  %v5034_v43 = vrot.slane %v5032_v2, 4  ;;  %v4244_v21 = vrot.slane %v4243_v44, 4  ;;  %v4253_v2 = vrot.slane %v4251_v29, 4  ;;  %v6224_v13 = vld [vmem:[%s7020_s25 + $0x48] sm:$0xf] }
  0xee   : > { %8731 = vst [vmem:[#allocation12_spill] sm:$0xff] %v7847_v61  ;;  %v7858_v51 = vpop.f32.mrf.mxu0  ;;  %v6932_v61 = vld [vmem:[%s7020_s25 + $0x90] sm:$0xff]   ;;  %v4270_v0 = vshll.u32 %v6223_v31, 16  ;;  %v4256_v44 = vrot.slane %v4254_v58, 5 }
  0xef   : > { %v7867_v50 = vpop.f32.mrf.mxu1  ;;  %v7902_v5 = vsel %vm7079_vm6, %v5034_v43, %v5035_v49  ;;  %6773 = vmatprep.mubr.msk.bf16.mxu0 %vm314_vm1, %v6932_v61  ;;  %v8737_v49 = vcombine.low %v7705_v25, %v7720_v37 }
  0xf0   : > { %8734 = vst [vmem:[#allocation13_spill] sm:$0xff] %v7867_v50  ;;  %v7875_v26 = vpop.f32.mrf.mxu0  ;;  %v6222_v50 = vld [vmem:[%s7020_s25 + $0x40] sm:$0xf]  ;;  %v4272_v29 = vrot.slane %v4270_v0, 5  ;;  %v4275_v0 = vshrl.u32 %v6224_v13, 16 }
  0xf1   : > { %v7883_v17 = vpop.f32.mrf.mxu1  ;;  %v4260_v7 = vshll.u32 %v6222_v50, 16  ;;  %v4264_v62 = vshrl.u32 %v6222_v50, 16  ;;  %v4249_v50 = vsel %vm7093_vm7, %v4244_v21, %v4248_v35  ;;  %v8738_v21 = vcombine.low %v7713_v52, %v7738_v48 }
  0xf2   : > { %8735 = vst [vmem:[#allocation14_spill] sm:$0xff] %v7883_v17  ;;  %v7888_v9 = vpop.f32.mrf.mxu0  ;;  %v6303_v17 = vld [vmem:[%s7020_s25 + $0x40] sm:$0xf]  ;;  %6740 = vmatmul.mubr.msk.bf16.gmra.mxu1 %vm314_vm1, %v8737_v49  ;;  %v7917_v43 = vcombine.low %v4239_v11, %v4249_v50  ;;  %v6225_v50 = vld [vmem:[%s7020_s25 + $0x4c] sm:$0xf] }
  0xf3   : > { %v7894_v14 = vpop.f32.mrf.mxu1  ;;  %v4262_v3 = vrot.slane %v4260_v7, 5  ;;  %v4266_v35 = vrot.slane %v4264_v62, 4  ;;  %6743 = vmatprep.mubr.msk.bf16.mxu1 %vm314_vm1, %v8738_v21  ;;  %v4257_v7 = vor.u32 %v4256_v44, %v4253_v2  ;;  %v5039_v25 = vrot.slane %v6303_v17, 5  ;;  %v6933_v49 = vld [vmem:[%s7020_s25 + $0x9c] sm:$0xff]   ;;  %v6934_v62 = vld [vmem:[%s7020_s25 + $0xa8] sm:$0xff]  }
  0xf4   : > { %8736 = vst [vmem:[#allocation15_spill] sm:$0xff] %v7894_v14  ;;  %v6619_v18 = vpop.f32.mrf.mxu0  ;;  %v6304_v14 = vld [vmem:[%s7020_s25 + $0x44] sm:$0x1]  ;;  %v4277_v44 = vrot.slane %v4275_v0, 4  ;;  %6774 = vmatmul.mubr.msk.bf16.gmra.mxu0 %vm314_vm1, %v6933_v49 }
  0xf5   : > { %v6585_v40 = vpop.f32.mrf.mxu1  ;;  %v5042_v37 = vrot.slane %v6304_v14, 5  ;;  %v4258_v52 = vrot.slane %v4257_v7, 4  ;;  %v7931_v48 = vsel %vm7079_vm6, %v6344_v16, %v5039_v25  ;;  %v5041_v17 = vrot.slane %v5039_v25, 4  ;;  %v6226_v16 = vld [vmem:[%s7020_s25 + $0x50] sm:$0x1]  ;;  %6777 = vmatprep.mubr.msk.bf16.mxu0 %vm314_vm1, %v6934_v62 }
  0xf6   : > { %v1291_v31 = vadd.f32 %v6585_v40, %v7630_v33  ;;  %v1699_v61 = vpop.f32.mrf.mxu0  ;;  %v4267_v40 = vor.u32 %v4266_v35, %v4262_v3  ;;  %v4278_v14 = vshll.u32 %v6224_v13, 16  ;;  %v4284_v13 = vshll.u32 %v6225_v50, 16  ;;  %v6306_v25 = vld [vmem:[%s7020_s25 + $0x4c] sm:$0xf] }
  0xf7   : > { %v1130_v58 = vpop.f32.mrf.mxu1  ;;  %v4263_v35 = vsel %vm7093_vm7, %v4258_v52, %v4262_v3  ;;  %v7940_v21 = vsel %vm7079_vm6, %v5041_v17, %v5042_v37  ;;  %v6307_v37 = vld [vmem:[%s7020_s25 + $0x50] sm:$0x1]  ;;  %v6227_v17 = vld [vmem:[%s7020_s25 + $0x54] sm:$0xf]  ;;  %v4294_v62 = vshll.u32 %v6226_v16, 16 }
  0xf8   : > { %v7924_v36 = vadd.f32 %v6619_v18, %v1291_v31  ;;  %v1289_v33 = vadd.f32 %v1130_v58, %v7657_v47  ;;  %v6620_v11 = vpop.f32.mrf.mxu0  ;;  %v4268_v2 = vrot.slane %v4267_v40, 4  ;;  %v4280_v58 = vrot.slane %v4278_v14, 5 }
  0xf9   : > { %v6586_v23 = vpop.f32.mrf.mxu1  ;;  %v6361_v3 = vcombine.low %v7931_v48, %v7940_v21  ;;  %v4286_v49 = vrot.slane %v4284_v13, 5  ;;  %v4296_v16 = vrot.slane %v4294_v62, 5  ;;  %v6228_v13 = vld [vmem:[%s7020_s25 + $0x58] sm:$0xf] }
  0xfa   : > { %v7933_v41 = vadd.f32 %v1699_v61, %v1289_v33  ;;  %v1292_v18 = vadd.f32 %v6586_v23, %v7678_v63  ;;  %v1702_v47 = vpop.f32.mrf.mxu0  ;;  %v6305_v61 = vld [vmem:[%s7020_s25 + $0x48] sm:$0xe]  ;;  %v4273_v7 = vsel %vm7093_vm7, %v4268_v2, %v4272_v29  ;;  %v4281_v52 = vor.u32 %v4280_v58, %v4277_v44  ;;  %v6935_v58 = vld [vmem:[%s7020_s25 + $0xb4] sm:$0xff]  }
  0xfb   : > { %v1133_v31 = vpop.f32.mrf.mxu1  ;;  %v7955_v0 = vcombine.low %v4263_v35, %v4273_v7  ;;  %v8740_v2 = vcombine.low %v7755_v59, %v7770_v12 }
  0xfc   : > { %v7945_v63 = vadd.f32 %v6620_v11, %v1292_v18  ;;  %v1290_v23 = vadd.f32 %v1133_v31, %v7692_v10  ;;  %v6623_v40 = vpop.f32.mrf.mxu0  ;;  %v4288_v11 = vshrl.u32 %v6225_v50, 16  ;;  %v8739_v10 = vcombine.low %v7724_v38, %v7751_v22  ;;  %6778 = vmatmul.mubr.msk.bf16.gmra.mxu0 %vm314_vm1, %v6935_v58 }
  0xfd   : > { %v6589_v33 = vpop.f32.mrf.mxu1  ;;  %v6345_v18 = vrot.slane %v6305_v61, 9  ;;  %v4282_v31 = vrot.slane %v4281_v52, 4  ;;  %v5046_v38 = vrot.slane %v6306_v25, 5  ;;  %v5049_v22 = vrot.slane %v6307_v37, 5  ;;  %v6229_v52 = vld [vmem:[%s7020_s25 + $0x5c] sm:$0x1] }
  0xfe   : > { %6744 = vmatmul.mubr.msk.bf16.gmra.mxu1 %vm314_vm1, %v8739_v10  ;;  %v7962_v29 = vadd.f32 %v1702_v47, %v1290_v23  ;;  %v1295_v14 = vadd.f32 %v6589_v33, %v7709_v19  ;;  %v1715_v44 = vpop.f32.mrf.mxu0  ;;  %v4290_v35 = vrot.slane %v4288_v11, 4  ;;  %v4299_v61 = vshrl.u32 %v6227_v17, 16  ;;  %v6936_v23 = vld [vmem:[%s7020_s25 + $0xc0] sm:$0xff]  }
  0xff   : > { %6747 = vmatprep.mubr.msk.bf16.mxu1 %vm314_vm1, %v8740_v2  ;;  %v1146_v50 = vpop.f32.mrf.mxu1  ;;  %v4287_v7 = vsel %vm7093_vm7, %v4282_v31, %v4286_v49  ;;  %v7979_v25 = vsel %vm7079_vm6, %v6345_v18, %v5046_v38  ;;  %v5048_v37 = vrot.slane %v5046_v38, 4  ;;  %v4302_v10 = vshll.u32 %v6227_v17, 16  ;;  %v6309_v31 = vld [vmem:[%s7020_s25 + $0x58] sm:$0xf]  ;;  %v6310_v38 = vld [vmem:[%s7020_s25 + $0x5c] sm:$0x1]  ;;  %6781 = vmatprep.mubr.msk.bf16.mxu0 %vm314_vm1, %v6936_v23 }
 0x100   : > { %v7970_v47 = vadd.f32 %v6623_v40, %v1295_v14  ;;  %v1293_v19 = vadd.f32 %v1146_v50, %v7734_v46  ;;  %v6624_v12 = vpop.f32.mrf.mxu0  ;;  %v4291_v33 = vor.u32 %v4290_v35, %v4286_v49  ;;  %v4301_v11 = vrot.slane %v4299_v61, 4  ;;  %v6308_v14 = vld [vmem:[%s7020_s25 + $0x54] sm:$0xe] }
 0x101   : > { %v6590_v59 = vpop.f32.mrf.mxu1  ;;  %v7988_v49 = vsel %vm7079_vm6, %v5048_v37, %v5049_v22  ;;  %v4308_v50 = vshll.u32 %v6228_v13, 16  ;;  %v4312_v18 = vshrl.u32 %v6228_v13, 16  ;;  %v4304_v35 = vrot.slane %v4302_v10, 5 }
 0x102   : > { %v7981_v40 = vadd.f32 %v1715_v44, %v1293_v19  ;;  %v1296_v46 = vadd.f32 %v6590_v59, %v7760_v1  ;;  %v4292_v2 = vrot.slane %v4291_v33, 4  ;;  %v6362_v17 = vcombine.low %v7979_v25, %v7988_v49  ;;  %v6230_v19 = vld [vmem:[%s7020_s25 + $0x60] sm:$0xf]  ;;  %v1718_v22 = vpop.f32.mrf.mxu0 }
 0x103   : > { %v1149_v62 = vpop.f32.mrf.mxu1  ;;  %v4310_v61 = vrot.slane %v4308_v50, 5  ;;  %v4314_v59 = vrot.slane %v4312_v18, 4  ;;  %v4318_v58 = vshll.u32 %v6229_v52, 16  ;;  %v6346_v23 = vrot.slane %v6308_v14, 9 }
 0x104   : > { %v7992_v44 = vadd.f32 %v6624_v12, %v1296_v46  ;;  %v1294_v1 = vadd.f32 %v1149_v62, %v7773_v27  ;;  %v4297_v13 = vsel %vm7093_vm7, %v4292_v2, %v4296_v16  ;;  %v6231_v12 = vld [vmem:[%s7020_s25 + $0x64] sm:$0xf]  ;;  %v8741_v27 = vcombine.low %v7779_v32, %v7789_v28  ;;  %v6937_v2 = vld [vmem:[%s7020_s25 + $0xcc] sm:$0xff]  }
 0x105   : > { %v8009_v37 = vcombine.low %v4287_v7, %v4297_v13  ;;  %v4305_v46 = vor.u32 %v4304_v35, %v4301_v11  ;;  %v4315_v10 = vor.u32 %v4314_v59, %v4310_v61  ;;  %v4320_v16 = vrot.slane %v4318_v58, 5  ;;  %v6311_v59 = vld [vmem:[%s7020_s25 + $0x60] sm:$0xe]  ;;  %6782 = vmatmul.mubr.msk.bf16.gmra.mxu0 %vm314_vm1, %v6937_v2 }
 0x106   : > { %6748 = vmatmul.mubr.msk.bf16.gmra.mxu1 %vm314_vm1, %v8741_v27  ;;  %v8007_v33 = vadd.f32 %v1718_v22, %v1294_v1  ;;  %v5053_v62 = vrot.slane %v6309_v31, 5  ;;  %v5056_v52 = vrot.slane %v6310_v38, 5  ;;  %v4323_v28 = vshrl.u32 %v6230_v19, 16  ;;  %v6593_v1 = vpop.f32.mrf.mxu1  ;;  %v6627_v22 = vpop.f32.mrf.mxu0  ;;  %v6232_v38 = vld [vmem:[%s7020_s25 + $0x68] sm:$0x1] }
 0x107   : > { %6787 = vmatprep.mubr.msk.bf16.mxu1 %vm314_vm1, %v7837_v8  ;;  %v4306_v50 = vrot.slane %v4305_v46, 4  ;;  %v4326_v32 = vshll.u32 %v6230_v19, 16  ;;  %v4332_v18 = vshll.u32 %v6231_v12, 16  ;;  %v4316_v7 = vrot.slane %v4315_v10, 4 }
 0x108   : > { %v8016_v11 = vsel %vm7079_vm6, %v6346_v23, %v5053_v62  ;;  %v5055_v8 = vrot.slane %v5053_v62, 4  ;;  %v4336_v14 = vshrl.u32 %v6231_v12, 16  ;;  %v1299_v31 = vadd.f32 %v6593_v1, %v7785_v60  ;;  %v1162_v46 = vpop.f32.mrf.mxu1  ;;  %v1731_v23 = vpop.f32.mrf.mxu0  ;;  %v6312_v60 = vld [vmem:[%s7020_s25 + $0x64] sm:$0xf]  ;;  %v6313_v62 = vld [vmem:[%s7020_s25 + $0x68] sm:$0x1] }
 0x109   : > { %v4311_v35 = vsel %vm7093_vm7, %v4306_v50, %v4310_v61  ;;  %v4325_v13 = vrot.slane %v4323_v28, 4  ;;  %v4328_v19 = vrot.slane %v4326_v32, 5  ;;  %v4321_v58 = vsel %vm7093_vm7, %v4316_v7, %v4320_v16  ;;  %v6233_v32 = vld [vmem:[%s7020_s25 + $0x6c] sm:$0xf] }
 0x10a   : > { %v8027_v27 = vsel %vm7079_vm6, %v5055_v8, %v5056_v52  ;;  %v4334_v12 = vrot.slane %v4332_v18, 5  ;;  %v4338_v10 = vrot.slane %v4336_v14, 4  ;;  %v8032_v61 = vadd.f32 %v6627_v22, %v1299_v31  ;;  %v6594_v18 = vpop.f32.mrf.mxu1  ;;  %v6628_v1 = vpop.f32.mrf.mxu0 }
 0x10b   : > { %v8034_v50 = vcombine.low %v4311_v35, %v4321_v58  ;;  %v6363_v28 = vcombine.low %v8016_v11, %v8027_v27  ;;  %v1297_v16 = vadd.f32 %v1162_v46, %v7802_v15  ;;  %v8742_v52 = vcombine.low %v7806_v4, %v7822_v57 }
 0x10c   : > { %v4329_v7 = vor.u32 %v4328_v19, %v4325_v13  ;;  %v4339_v2 = vor.u32 %v4338_v10, %v4334_v12  ;;  %v4342_v22 = vshll.u32 %v6232_v38, 16  ;;  %v6347_v8 = vrot.slane %v6311_v59, 9  ;;  %v1165_v57 = vpop.f32.mrf.mxu1  ;;  %v6234_v19 = vld [vmem:[%s7020_s25 + $0x70] sm:$0xf]  ;;  %v1734_v10 = vpop.f32.mrf.mxu0 }
 0x10d   : > { %6821 = vmatprep.mubr.msk.bf16.mxu0 %vm314_vm1, %v8742_v52  ;;  %v8046_v14 = vadd.f32 %v1731_v23, %v1297_v16  ;;  %v1300_v15 = vadd.f32 %v6594_v18, %v7818_v54  ;;  %v5060_v31 = vrot.slane %v6312_v60, 5  ;;  %v5063_v4 = vrot.slane %v6313_v62, 5  ;;  %v6235_v23 = vld [vmem:[%s7020_s25 + $0x74] sm:$0x1]  ;;  %v6315_v18 = vld [vmem:[%s7020_s25 + $0x70] sm:$0xf] }
 0x10e   : > { %6788 = vmatmul.mubr.msk.bf16.vlgmr.msra.gmra.mxu1 %vm314_vm1, %v7885_v20  ;;  %v4330_v35 = vrot.slane %v4329_v7, 4  ;;  %v4340_v13 = vrot.slane %v4339_v2, 4  ;;  %v4344_v38 = vrot.slane %v4342_v22, 5  ;;  %v4347_v59 = vshrl.u32 %v6233_v32, 16 }
 0x10f   : > { %6791 = vmatprep.mubr.msk.bf16.mxu1 %vm314_vm1, %v7917_v43  ;;  %v8052_v20 = vadd.f32 %v6628_v1, %v1300_v15  ;;  %v1298_v58 = vadd.f32 %v1165_v57, %v7835_v56  ;;  %v8057_v54 = vsel %vm7079_vm6, %v6347_v8, %v5060_v31  ;;  %v5062_v46 = vrot.slane %v5060_v31, 4  ;;  %v6314_v43 = vld [vmem:[%s7020_s25 + $0x6c] sm:$0xe]  ;;  %v6316_v56 = vld [vmem:[%s7020_s25 + $0x74] sm:$0x1] }
 0x110   : > { %v4335_v60 = vsel %vm7093_vm7, %v4330_v35, %v4334_v12  ;;  %v4345_v62 = vsel %vm7093_vm7, %v4340_v13, %v4344_v38  ;;  %v4349_v16 = vrot.slane %v4347_v59, 4  ;;  %v4350_v52 = vshll.u32 %v6233_v32, 16  ;;  %v6236_v8 = vld [vmem:[%s7020_s25 + $0x78] sm:$0xf] }
 0x111   : > { %v8067_v1 = vadd.f32 %v1734_v10, %v1298_v58  ;;  %v8069_v7 = vcombine.low %v4335_v60, %v4345_v62  ;;  %v8073_v2 = vsel %vm7079_vm6, %v5062_v46, %v5063_v4  ;;  %v4356_v22 = vshll.u32 %v6234_v19, 16  ;;  %v6237_v58 = vld [vmem:[%s7020_s25 + $0x7c] sm:$0xf]  ;;  %v6597_v46 = vpop.f32.mrf.mxu1  ;;  %v6631_v10 = vpop.f32.mrf.mxu0 }
 0x112   : > { %v6364_v12 = vcombine.low %v8057_v54, %v8073_v2  ;;  %v4352_v15 = vrot.slane %v4350_v52, 5  ;;  %v4360_v31 = vshrl.u32 %v6234_v19, 16  ;;  %v4366_v57 = vshll.u32 %v6235_v23, 16 }
 0x113   : > { %v8743_v32 = vcombine.low %v7851_v34, %v7871_v45  ;;  %v4358_v35 = vrot.slane %v4356_v22, 5  ;;  %v6348_v13 = vrot.slane %v6314_v43, 9  ;;  %v5067_v38 = vrot.slane %v6315_v18, 5  ;;  %v1178_v52 = vpop.f32.mrf.mxu1  ;;  %v1747_v18 = vpop.f32.mrf.mxu0 }
 0x114   : > { %v5070_v59 = vrot.slane %v6316_v56, 5  ;;  %v8744_v4 = vcombine.low %v7892_v30, %v7902_v5  ;;  %v4353_v19 = vor.u32 %v4352_v15, %v4349_v16  ;;  %v4362_v23 = vrot.slane %v4360_v31, 4  ;;  %v6238_v56 = vld [vmem:[%s7020_s25 + $0x80] sm:$0x1] }
 0x115   : > { %6822 = vmatmul.mubr.msk.bf16.vlgmr.msra.gmra.mxu0 %vm314_vm1, %v8743_v32  ;;  %v4368_v60 = vrot.slane %v4366_v57, 5  ;;  %v4371_v62 = vshrl.u32 %v6236_v8, 16  ;;  %v1303_v34 = vadd.f32 %v6597_v46, %v7843_v24  ;;  %v8092_v45 = vsel %vm7079_vm6, %v6348_v13, %v5067_v38  ;;  %v6317_v57 = vld [vmem:[%s7020_s25 + $0x78] sm:$0xe]  ;;  %v6318_v32 = vld [vmem:[%s7020_s25 + $0x7c] sm:$0xf]  ;;  %v6632_v46 = vpop.f32.mrf.mxu0 }
 0x116   : > { %6825 = vmatprep.mubr.msk.bf16.mxu0 %vm314_vm1, %v8744_v4  ;;  %6792 = vmatmul.mubr.msk.bf16.gmra.mxu1 %vm314_vm1, %v7955_v0  ;;  %v5069_v30 = vrot.slane %v5067_v38, 4  ;;  %v4374_v5 = vshll.u32 %v6236_v8, 16  ;;  %v4354_v43 = vrot.slane %v4353_v19, 4  ;;  %v4363_v16 = vor.u32 %v4362_v23, %v4358_v35  ;;  %v6598_v4 = vpop.f32.mrf.mxu1 }
 0x117   : > { %6795 = vmatprep.mubr.msk.bf16.mxu1 %vm314_vm1, %v8009_v37  ;;  %v4373_v22 = vrot.slane %v4371_v62, 4  ;;  %v4380_v0 = vshll.u32 %v6237_v58, 16  ;;  %v8097_v15 = vadd.f32 %v6631_v10, %v1303_v34  ;;  %v1301_v31 = vadd.f32 %v1178_v52, %v7858_v51  ;;  %v6319_v62 = vld [vmem:[%s7020_s25 + $0x80] sm:$0x1] }
 0x118   : > { %v8101_v24 = vsel %vm7079_vm6, %v5069_v30, %v5070_v59  ;;  %v4376_v8 = vrot.slane %v4374_v5, 5  ;;  %v4359_v37 = vsel %vm7093_vm7, %v4354_v43, %v4358_v35  ;;  %v4364_v13 = vrot.slane %v4363_v16, 4  ;;  %v1181_v34 = vpop.f32.mrf.mxu1  ;;  %v6239_v16 = vld [vmem:[%s7020_s25 + $0x84] sm:$0xf] }
 0x119   : > { %v6365_v38 = vcombine.low %v8092_v45, %v8101_v24  ;;  %v4382_v10 = vrot.slane %v4380_v0, 5  ;;  %v8110_v19 = vadd.f32 %v1747_v18, %v1301_v31  ;;  %v1304_v59 = vadd.f32 %v6598_v4, %v7875_v26  ;;  %v6320_v31 = vld [vmem:[%s7020_s25 + $0x84] sm:$0xe]  ;;  %v6322_v4 = vld [vmem:[%s7020_s25 + $0x8c] sm:$0x1] }
 0x11a   : > { %v4377_v51 = vor.u32 %v4376_v8, %v4373_v22  ;;  %v4384_v23 = vshrl.u32 %v6237_v58, 16  ;;  %v4369_v35 = vsel %vm7093_vm7, %v4364_v13, %v4368_v60  ;;  %v4390_v30 = vshll.u32 %v6238_v56, 16  ;;  %v6240_v22 = vld [vmem:[%s7020_s25 + $0x88] sm:$0xf]  ;;  %v6241_v60 = vld [vmem:[%s7020_s25 + $0x8c] sm:$0x1]  ;;  %v1750_v56 = vpop.f32.mrf.mxu0 }
 0x11b   : > { %v6349_v5 = vrot.slane %v6317_v57, 9  ;;  %v5074_v43 = vrot.slane %v6318_v32, 5  ;;  %v6268_v52 = vcombine.low %v4359_v37, %v4369_v35  ;;  %v8121_v26 = vadd.f32 %v6632_v46, %v1304_v59  ;;  %v6321_v8 = vld [vmem:[%s7020_s25 + $0x88] sm:$0xf] }
 0x11c   : > { %v1302_v58 = vadd.f32 %v1181_v34, %v7888_v9  ;;  %v4378_v18 = vrot.slane %v4377_v51, 4  ;;  %v4386_v0 = vrot.slane %v4384_v23, 4  ;;  %v4392_v48 = vrot.slane %v4390_v30, 5  ;;  %v6242_v23 = vld [vmem:[%s7020_s25 + $0x90] sm:$0xf]  ;;  %v6601_v34 = vpop.f32.mrf.mxu1 }
 0x11d   : > { %6826 = vmatmul.mubr.msk.bf16.gmra.mxu0 %vm314_vm1, %v6361_v3  ;;  %v8132_v21 = vsel %vm7079_vm6, %v6349_v5, %v5074_v43  ;;  %v5076_v3 = vrot.slane %v5074_v43, 4  ;;  %v5077_v49 = vrot.slane %v6319_v62, 5  ;;  %v4398_v32 = vshll.u32 %v6239_v16, 16 }
 0x11e   : > { %6829 = vmatprep.mubr.msk.bf16.mxu0 %vm314_vm1, %v6362_v17  ;;  %6796 = vmatmul.mubr.msk.bf16.gmra.mxu1 %vm314_vm1, %v8034_v50  ;;  %v8137_v9 = vadd.f32 %v1750_v56, %v1302_v58  ;;  %v4383_v25 = vsel %vm7093_vm7, %v4378_v18, %v4382_v10  ;;  %v4395_v17 = vshrl.u32 %v6239_v16, 16  ;;  %v4387_v57 = vor.u32 %v4386_v0, %v4382_v10  ;;  %v1194_v56 = vpop.f32.mrf.mxu1 }
 0x11f   : > { %6799 = vmatprep.mubr.msk.bf16.mxu1 %vm314_vm1, %v8069_v7  ;;  %v4404_v37 = vshll.u32 %v6240_v22, 16  ;;  %v4408_v13 = vshrl.u32 %v6240_v22, 16  ;;  %v8147_v50 = vsel %vm7079_vm6, %v5076_v3, %v5077_v49  ;;  %v4414_v59 = vshll.u32 %v6241_v60, 16  ;;  %v6635_v7 = vpop.f32.mrf.mxu0  ;;  %v6243_v3 = vld [vmem:[%s7020_s25 + $0x94] sm:$0xf] }
 0x120   : > { %v4397_v46 = vrot.slane %v4395_v17, 4  ;;  %v6350_v51 = vrot.slane %v6320_v31, 9  ;;  %v4388_v62 = vrot.slane %v4387_v57, 4  ;;  %v6366_v35 = vcombine.low %v8132_v21, %v8147_v50  ;;  %v6602_v27 = vpop.f32.mrf.mxu1  ;;  %v6327_v21 = vld [vmem:[%s7020_s25 + $0xa0] sm:$0xf] }
 0x121   : > { %v4400_v10 = vrot.slane %v4398_v32, 5  ;;  %v4406_v30 = vrot.slane %v4404_v37, 5  ;;  %v1307_v5 = vadd.f32 %v6601_v34, %v7643_v39  ;;  %v4410_v43 = vrot.slane %v4408_v13, 4  ;;  %v1763_v0 = vpop.f32.mrf.mxu0  ;;  %v6244_v13 = vld [vmem:[%s7020_s25 + $0x98] sm:$0x1]  ;;  %v8745_v34 = vld [vmem:[#allocation3_spill] sm:$0xff] }
 0x122   : > { %v4416_v16 = vrot.slane %v4414_v59, 5  ;;  %v5081_v58 = vrot.slane %v6321_v8, 5  ;;  %v4393_v18 = vsel %vm7093_vm7, %v4388_v62, %v4392_v48  ;;  %v5084_v60 = vrot.slane %v6322_v4, 5  ;;  %v6323_v59 = vld [vmem:[%s7020_s25 + $0x90] sm:$0xe] }
 0x123   : > { %v4401_v22 = vor.u32 %v4400_v10, %v4397_v46  ;;  %v4419_v31 = vshrl.u32 %v6242_v23, 16  ;;  %v6269_v49 = vcombine.low %v4383_v25, %v4393_v18  ;;  %v8160_v39 = vadd.f32 %v6635_v7, %v1307_v5  ;;  %v6325_v10 = vld [vmem:[%s7020_s25 + $0x98] sm:$0x1]  ;;  %v6328_v50 = vld [vmem:[%s7020_s25 + $0xa4] sm:$0x1] }
 0x124   : > { %v4411_v17 = vor.u32 %v4410_v43, %v4406_v30  ;;  %v8164_v8 = vsel %vm7079_vm6, %v6350_v51, %v5081_v58  ;;  %v5083_v57 = vrot.slane %v5081_v58, 4  ;;  %v1305_v11 = vadd.f32 %v1194_v56, %v7667_v53 }
 0x125   : > { %6830 = vmatmul.mubr.msk.bf16.gmra.mxu0 %vm314_vm1, %v6363_v28  ;;  %v4402_v48 = vrot.slane %v4401_v22, 4  ;;  %v6636_v28 = vpop.f32.mrf.mxu0  ;;  %v4421_v25 = vrot.slane %v4419_v31, 4  ;;  %v1308_v37 = vadd.f32 %v6602_v27, %v7688_v6  ;;  %v4422_v54 = vshll.u32 %v6242_v23, 16  ;;  %v6324_v6 = vld [vmem:[%s7020_s25 + $0x94] sm:$0xf] }
 0x126   : > { %6833 = vmatprep.mubr.msk.bf16.mxu0 %vm314_vm1, %v6364_v12  ;;  %6800 = vmatmul.mubr.msk.bf16.gmra.mxu1 %vm314_vm1, %v6268_v52  ;;  %v4412_v32 = vrot.slane %v4411_v17, 4  ;;  %v4428_v2 = vshll.u32 %v6243_v3, 16  ;;  %v8179_v12 = vsel %vm7079_vm6, %v5083_v57, %v5084_v60  ;;  %v8181_v4 = vadd.f32 %v1763_v0, %v1305_v11  ;;  %v1197_v52 = vpop.f32.mrf.mxu1 }
 0x127   : > { %6803 = vmatprep.mubr.msk.bf16.mxu1 %vm314_vm1, %v6269_v49  ;;  %v4407_v53 = vsel %vm7093_vm7, %v4402_v48, %v4406_v30  ;;  %v4432_v46 = vshrl.u32 %v6243_v3, 16  ;;  %v6367_v23 = vcombine.low %v8164_v8, %v8179_v12  ;;  %v8189_v62 = vadd.f32 %v6636_v28, %v1308_v37  ;;  %v6245_v30 = vld [vmem:[%s7020_s25 + $0x9c] sm:$0xf]  ;;  %v1766_v43 = vpop.f32.mrf.mxu0  ;;  %v6246_v3 = vld [vmem:[%s7020_s25 + $0xa0] sm:$0xf] }
 0x128   : > { %v4417_v51 = vsel %vm7093_vm7, %v4412_v32, %v4416_v16  ;;  %v1306_v7 = vadd.f32 %v1197_v52, %v8745_v34  ;;  %v4424_v58 = vrot.slane %v4422_v54, 5  ;;  %v4430_v18 = vrot.slane %v4428_v2, 5  ;;  %v6247_v28 = vld [vmem:[%s7020_s25 + $0xa4] sm:$0x1]  ;;  %v6326_v54 = vld [vmem:[%s7020_s25 + $0x9c] sm:$0xe] }
 0x129   : > { %v6270_v5 = vcombine.low %v4407_v53, %v4417_v51  ;;  %v4434_v22 = vrot.slane %v4432_v46, 4  ;;  %v4438_v56 = vshll.u32 %v6244_v13, 16  ;;  %v6351_v0 = vrot.slane %v6323_v59, 9  ;;  %v6605_v13 = vpop.f32.mrf.mxu1  ;;  %v6639_v45 = vpop.f32.mrf.mxu0  ;;  %v8746_v53 = vld [vmem:[#allocation4_spill] sm:$0xff] }
 0x12a   : > { %v8194_v60 = vadd.f32 %v1766_v43, %v1306_v7  ;;  %v5088_v16 = vrot.slane %v6324_v6, 5  ;;  %v4425_v31 = vor.u32 %v4424_v58, %v4421_v25  ;;  %v5091_v17 = vrot.slane %v6325_v10, 5 }
 0x12b   : > { %v4435_v49 = vor.u32 %v4434_v22, %v4430_v18  ;;  %v4443_v48 = vshrl.u32 %v6245_v30, 16  ;;  %v4440_v57 = vrot.slane %v4438_v56, 5  ;;  %v4446_v32 = vshll.u32 %v6245_v30, 16  ;;  %v1210_v7 = vpop.f32.mrf.mxu1  ;;  %v1779_v10 = vpop.f32.mrf.mxu0  ;;  %v6248_v22 = vld [vmem:[%s7020_s25 + $0xa8] sm:$0xf] }
 0x12c   : > { %v5089_v11 = vsel %vm7079_vm6, %v6351_v0, %v5088_v16  ;;  %v5090_v27 = vrot.slane %v5088_v16, 4  ;;  %v4426_v25 = vrot.slane %v4425_v31, 4  ;;  %v1311_v52 = vadd.f32 %v6605_v13, %v8746_v53  ;;  %v6249_v13 = vld [vmem:[%s7020_s25 + $0xac] sm:$0xf]  ;;  %v6250_v53 = vld [vmem:[%s7020_s25 + $0xb0] sm:$0x1] }
 0x12d   : > { %6834 = vmatmul.mubr.msk.bf16.gmra.mxu0 %vm314_vm1, %v6365_v38  ;;  %v4436_v37 = vrot.slane %v4435_v49, 4  ;;  %v4445_v24 = vrot.slane %v4443_v48, 4  ;;  %v4452_v38 = vshll.u32 %v6246_v3, 16  ;;  %v4448_v46 = vrot.slane %v4446_v32, 5  ;;  %v6606_v31 = vpop.f32.mrf.mxu1  ;;  %v8747_v48 = vld [vmem:[#allocation5_spill] sm:$0xff] }
 0x12e   : > { %6837 = vmatprep.mubr.msk.bf16.mxu0 %vm314_vm1, %v6366_v35  ;;  %6804 = vmatmul.mubr.msk.bf16.gmra.mxu1 %vm314_vm1, %v6270_v5  ;;  %v5092_v2 = vsel %vm7079_vm6, %v5090_v27, %v5091_v17  ;;  %v4456_v59 = vshrl.u32 %v6246_v3, 16  ;;  %v4431_v35 = vsel %vm7093_vm7, %v4426_v25, %v4430_v18  ;;  %v8219_v5 = vadd.f32 %v6639_v45, %v1311_v52  ;;  %v6640_v18 = vpop.f32.mrf.mxu0 }
 0x12f   : > { %v4441_v6 = vsel %vm7093_vm7, %v4436_v37, %v4440_v57  ;;  %v6368_v51 = vcombine.low %v5089_v11, %v5092_v2  ;;  %v4454_v34 = vrot.slane %v4452_v38, 5  ;;  %v4449_v43 = vor.u32 %v4448_v46, %v4445_v24  ;;  %v8748_v11 = vld [vmem:[#allocation6_spill] sm:$0xff]  ;;  %v8749_v46 = vld [vmem:[#allocation7_spill] sm:$0xff] }
 0x130   : > { %v6271_v30 = vcombine.low %v4431_v35, %v4441_v6  ;;  %v4458_v58 = vrot.slane %v4456_v59, 4  ;;  %v4462_v56 = vshll.u32 %v6247_v28, 16  ;;  %v6352_v0 = vrot.slane %v6326_v54, 9  ;;  %v1213_v28 = vpop.f32.mrf.mxu1  ;;  %v1782_v12 = vpop.f32.mrf.mxu0 }
 0x131   : > { %v5095_v16 = vrot.slane %v6327_v21, 5  ;;  %v5098_v3 = vrot.slane %v6328_v50, 5  ;;  %v4450_v49 = vrot.slane %v4449_v43, 4  ;;  %v1309_v57 = vadd.f32 %v1210_v7, %v8747_v48  ;;  %v6329_v21 = vld [vmem:[%s7020_s25 + $0xa8] sm:$0xe] }
 0x132   : > { %6807 = vmatprep.mubr.msk.bf16.mxu1 %vm314_vm1, %v6271_v30  ;;  %v4459_v17 = vor.u32 %v4458_v58, %v4454_v34  ;;  %v1312_v27 = vadd.f32 %v6606_v31, %v8748_v11  ;;  %v4464_v32 = vrot.slane %v4462_v56, 5  ;;  %v4467_v45 = vshrl.u32 %v6248_v22, 16  ;;  %v6330_v50 = vld [vmem:[%s7020_s25 + $0xac] sm:$0xf]  ;;  %v6251_v30 = vld [vmem:[%s7020_s25 + $0xb4] sm:$0xf]  ;;  %v6609_v48 = vpop.f32.mrf.mxu1 }
 0x133   : > { %v5096_v25 = vsel %vm7079_vm6, %v6352_v0, %v5095_v16  ;;  %v5097_v37 = vrot.slane %v5095_v16, 4  ;;  %v4455_v24 = vsel %vm7093_vm7, %v4450_v49, %v4454_v34  ;;  %v8234_v54 = vadd.f32 %v1779_v10, %v1309_v57  ;;  %v6331_v10 = vld [vmem:[%s7020_s25 + $0xb0] sm:$0x1]  ;;  %v6252_v31 = vld [vmem:[%s7020_s25 + $0xb8] sm:$0xf]  ;;  %v6643_v57 = vpop.f32.mrf.mxu0 }
 0x134   : > { %v4460_v38 = vrot.slane %v4459_v17, 4  ;;  %v8236_v2 = vadd.f32 %v6640_v18, %v1312_v27  ;;  %v1310_v8 = vadd.f32 %v1213_v28, %v8749_v46  ;;  %v4470_v59 = vshll.u32 %v6248_v22, 16  ;;  %v1226_v46 = vpop.f32.mrf.mxu1 }
 0x135   : > { %6838 = vmatmul.mubr.msk.bf16.gmra.mxu0 %vm314_vm1, %v6367_v23  ;;  %v5099_v52 = vsel %vm7079_vm6, %v5097_v37, %v5098_v3  ;;  %v4469_v23 = vrot.slane %v4467_v45, 4  ;;  %v4476_v34 = vshll.u32 %v6249_v13, 16  ;;  %v4480_v7 = vshrl.u32 %v6249_v13, 16  ;;  %v8750_v37 = vld [vmem:[#allocation8_spill] sm:$0xff]  ;;  %v6253_v13 = vld [vmem:[%s7020_s25 + $0xbc] sm:$0x1] }
 0x136   : > { %6841 = vmatprep.mubr.msk.bf16.mxu0 %vm314_vm1, %v6368_v51  ;;  %v4465_v35 = vsel %vm7093_vm7, %v4460_v38, %v4464_v32  ;;  %v6369_v6 = vcombine.low %v5096_v25, %v5099_v52  ;;  %v8249_v43 = vadd.f32 %v1782_v12, %v1310_v8  ;;  %v4472_v58 = vrot.slane %v4470_v59, 5  ;;  %v6332_v52 = vld [vmem:[%s7020_s25 + $0xb4] sm:$0xe]  ;;  %v1795_v8 = vpop.f32.mrf.mxu0 }
 0x137   : > { %v6272_v51 = vcombine.low %v4455_v24, %v4465_v35  ;;  %v4486_v56 = vshll.u32 %v6250_v53, 16  ;;  %v4478_v0 = vrot.slane %v4476_v34, 5  ;;  %v4482_v16 = vrot.slane %v4480_v7, 4  ;;  %v6334_v35 = vld [vmem:[%s7020_s25 + $0xbc] sm:$0x1] }
 0x138   : > { %v6353_v22 = vrot.slane %v6329_v21, 9  ;;  %v5102_v3 = vrot.slane %v6330_v50, 5  ;;  %v4473_v18 = vor.u32 %v4472_v58, %v4469_v23  ;;  %v5105_v17 = vrot.slane %v6331_v10, 5  ;;  %v6333_v50 = vld [vmem:[%s7020_s25 + $0xb8] sm:$0xf]  ;;  %v6644_v58 = vpop.f32.mrf.mxu0 }
 0x139   : > { %6808 = vmatmul.mubr.msk.bf16.gmra.mxu1 %vm314_vm1, %v6272_v51  ;;  %v4488_v49 = vrot.slane %v4486_v56, 5  ;;  %v4491_v11 = vshrl.u32 %v6251_v30, 16  ;;  %v4483_v27 = vor.u32 %v4482_v16, %v4478_v0  ;;  %v1315_v28 = vadd.f32 %v6609_v48, %v8750_v37  ;;  %v6610_v51 = vpop.f32.mrf.mxu1  ;;  %v6254_v48 = vld [vmem:[%s7020_s25 + $0xc0] sm:$0xf] }
 0x13a   : > { %v5103_v32 = vsel %vm7079_vm6, %v6353_v22, %v5102_v3  ;;  %v5104_v25 = vrot.slane %v5102_v3, 4  ;;  %v4474_v45 = vrot.slane %v4473_v18, 4  ;;  %v4494_v38 = vshll.u32 %v6251_v30, 16 }
 0x13b   : > { %v4493_v24 = vrot.slane %v4491_v11, 4  ;;  %v4500_v53 = vshll.u32 %v6252_v31, 16  ;;  %v4484_v12 = vrot.slane %v4483_v27, 4  ;;  %v8261_v59 = vadd.f32 %v6643_v57, %v1315_v28  ;;  %v8751_v27 = vld [vmem:[#allocation9_spill] sm:$0xff] }
 0x13c   : > { %v5106_v23 = vsel %vm7079_vm6, %v5104_v25, %v5105_v17  ;;  %v4504_v21 = vshrl.u32 %v6252_v31, 16  ;;  %v4479_v34 = vsel %vm7093_vm7, %v4474_v45, %v4478_v0  ;;  %v4496_v10 = vrot.slane %v4494_v38, 5  ;;  %v1229_v0 = vpop.f32.mrf.mxu1  ;;  %v8752_v25 = vld [vmem:[#allocation10_spill] sm:$0xff]  ;;  %v8753_v45 = vld [vmem:[#allocation11_spill] sm:$0xff]  ;;  %v1798_v38 = vpop.f32.mrf.mxu0 }
 0x13d   : > { %6842 = vmatmul.mubr.msk.bf16.gmra.mxu0 %vm314_vm1, %v6369_v6  ;;  %v6370_v7 = vcombine.low %v5103_v32, %v5106_v23  ;;  %v4502_v30 = vrot.slane %v4500_v53, 5  ;;  %v4489_v6 = vsel %vm7093_vm7, %v4484_v12, %v4488_v49  ;;  %v4510_v16 = vshll.u32 %v6253_v13, 16  ;;  %v6255_v53 = vld [vmem:[%s7020_s25 + $0xc4] sm:$0xf] }
 0x13e   : > { %v4506_v56 = vrot.slane %v4504_v21, 4  ;;  %v6354_v22 = vrot.slane %v6332_v52, 9  ;;  %v6273_v3 = vcombine.low %v4479_v34, %v4489_v6  ;;  %v4497_v31 = vor.u32 %v4496_v10, %v4493_v24  ;;  %v6337_v6 = vld [vmem:[%s7020_s25 + $0xc8] sm:$0x1] }
 0x13f   : > { %6845 = vmatprep.mubr.msk.bf16.mxu0 %vm314_vm1, %v6370_v7  ;;  %v5109_v18 = vrot.slane %v6333_v50, 5  ;;  %v5112_v17 = vrot.slane %v6334_v35, 5  ;;  %v4512_v11 = vrot.slane %v4510_v16, 5  ;;  %v1313_v32 = vadd.f32 %v1226_v46, %v8751_v27  ;;  %v6256_v46 = vld [vmem:[%s7020_s25 + $0xc8] sm:$0x1] }
 0x140   : > { %v4507_v57 = vor.u32 %v4506_v56, %v4502_v30  ;;  %v1316_v49 = vadd.f32 %v6610_v51, %v8752_v25  ;;  %6811 = vmatprep.mubr.msk.bf16.mxu1 %vm314_vm1, %v6273_v3  ;;  %v4498_v37 = vrot.slane %v4497_v31, 4  ;;  %v1314_v24 = vadd.f32 %v1229_v0, %v8753_v45  ;;  %v6335_v50 = vld [vmem:[%s7020_s25 + $0xc0] sm:$0xe]  ;;  %v6336_v51 = vld [vmem:[%s7020_s25 + $0xc4] sm:$0xf]  ;;  %v6647_v0 = vpop.f32.mrf.mxu0 }
 0x141   : > { %v5110_v28 = vsel %vm7079_vm6, %v6354_v22, %v5109_v18  ;;  %v5111_v13 = vrot.slane %v5109_v18, 4  ;;  %v8278_v12 = vadd.f32 %v1795_v8, %v1313_v32  ;;  %v4515_v21 = vshrl.u32 %v6254_v48, 16  ;;  %v6613_v18 = vpop.f32.mrf.mxu1  ;;  %v6258_v25 = vld [vmem:[%s7020_s25 + $0xd0] sm:$0xf] }
 0x142   : > { %v4508_v52 = vrot.slane %v4507_v57, 4  ;;  %v8280_v23 = vadd.f32 %v6644_v58, %v1316_v49  ;;  %v4503_v35 = vsel %vm7093_vm7, %v4498_v37, %v4502_v30  ;;  %v8288_v7 = vadd.f32 %v1798_v38, %v1314_v24  ;;  %v6257_v57 = vld [vmem:[%s7020_s25 + $0xcc] sm:$0xf]  ;;  %v1811_v24 = vpop.f32.mrf.mxu0 }
 0x143   : > { %v5113_v34 = vsel %vm7079_vm6, %v5111_v13, %v5112_v17  ;;  %v4518_v10 = vshll.u32 %v6254_v48, 16  ;;  %v4517_v56 = vrot.slane %v4515_v21, 4  ;;  %v4524_v16 = vshll.u32 %v6255_v53, 16  ;;  %v1242_v45 = vpop.f32.mrf.mxu1 }
 0x144   : > { %v4513_v8 = vsel %vm7093_vm7, %v4508_v52, %v4512_v11  ;;  %v6371_v58 = vcombine.low %v5110_v28, %v5113_v34  ;;  %v4528_v31 = vshrl.u32 %v6255_v53, 16  ;;  %v4534_v30 = vshll.u32 %v6256_v46, 16  ;;  %v8754_v28 = vld [vmem:[#allocation12_spill] sm:$0xff]  ;;  %v6259_v52 = vld [vmem:[%s7020_s25 + $0xd4] sm:$0x1] }
 0x145   : > { %v6274_v22 = vcombine.low %v4503_v35, %v4513_v8  ;;  %v4520_v3 = vrot.slane %v4518_v10, 5  ;;  %v4526_v17 = vrot.slane %v4524_v16, 5  ;;  %v6355_v48 = vrot.slane %v6335_v50, 9  ;;  %v6614_v8 = vpop.f32.mrf.mxu1 }
 0x146   : > { %6846 = vmatmul.mubr.msk.bf16.gmra.mxu0 %vm314_vm1, %v6371_v58  ;;  %v5116_v27 = vrot.slane %v6336_v51, 5  ;;  %v5119_v32 = vrot.slane %v6337_v6, 5  ;;  %v4530_v49 = vrot.slane %v4528_v31, 4  ;;  %v4536_v37 = vrot.slane %v4534_v30, 5  ;;  %v6338_v51 = vld [vmem:[%s7020_s25 + $0xcc] sm:$0xe]  ;;  %v6648_v58 = vpop.f32.mrf.mxu0 }
 0x147   : > { %6812 = vmatmul.mubr.msk.bf16.gmra.mxu1 %vm314_vm1, %v6274_v22  ;;  %v4521_v11 = vor.u32 %v4520_v3, %v4517_v56  ;;  %v1319_v13 = vadd.f32 %v6613_v18, %v8754_v28  ;;  %v4539_v46 = vshrl.u32 %v6257_v57, 16  ;;  %v4542_v21 = vshll.u32 %v6257_v57, 16  ;;  %v6339_v6 = vld [vmem:[%s7020_s25 + $0xd0] sm:$0xf]  ;;  %v6340_v31 = vld [vmem:[%s7020_s25 + $0xd4] sm:$0x1] }
 0x148   : > { %v5117_v38 = vsel %vm7079_vm6, %v6355_v48, %v5116_v27  ;;  %v5118_v53 = vrot.slane %v5116_v27, 4  ;;  %v4531_v35 = vor.u32 %v4530_v49, %v4526_v17  ;;  %v4548_v10 = vshll.u32 %v6258_v25, 16 }
 0x149   : > { %v4522_v50 = vrot.slane %v4521_v11, 4  ;;  %v8302_v34 = vadd.f32 %v6647_v0, %v1319_v13  ;;  %v4541_v16 = vrot.slane %v4539_v46, 4  ;;  %v4544_v22 = vrot.slane %v4542_v21, 5  ;;  %v1245_v0 = vpop.f32.mrf.mxu1  ;;  %v1814_v13 = vpop.f32.mrf.mxu0 }
 0x14a   : > { %v5120_v56 = vsel %vm7079_vm6, %v5118_v53, %v5119_v32  ;;  %v4552_v3 = vshrl.u32 %v6258_v25, 16  ;;  %v4532_v18 = vrot.slane %v4531_v35, 4  ;;  %v4550_v48 = vrot.slane %v4548_v10, 5  ;;  %v8756_v53 = vld [vmem:[#allocation13_spill] sm:$0xff] }
 0x14b   : > { %8755 = vst [vmem:[#allocation3_spill] sm:$0xff] %v8302_v34  ;;  %v4527_v30 = vsel %vm7093_vm7, %v4522_v50, %v4526_v17  ;;  %v6372_v57 = vcombine.low %v5117_v38, %v5120_v56  ;;  %v4545_v27 = vor.u32 %v4544_v22, %v4541_v16  ;;  %v4558_v49 = vshll.u32 %v6259_v52, 16  ;;  %v6653_v21 = vpop.f32.mrf.mxu1  ;;  %v8757_v56 = vld [vmem:[#allocation14_spill] sm:$0xff]  ;;  %v8758_v22 = vld [vmem:[#allocation15_spill] sm:$0xff] }
 0x14c   : > { %v4554_v11 = vrot.slane %v4552_v3, 4  ;;  %v6356_v28 = vrot.slane %v6338_v51, 9  ;;  %v4537_v34 = vsel %vm7093_vm7, %v4532_v18, %v4536_v37  ;;  %v5123_v32 = vrot.slane %v6339_v6, 5 }
 0x14d   : > { %6849 = vmatprep.mubr.msk.bf16.mxu0 %vm314_vm1, %v6372_v57  ;;  %v5126_v25 = vrot.slane %v6340_v31, 5  ;;  %v1317_v46 = vadd.f32 %v1242_v45, %v8756_v53  ;;  %v6275_v17 = vcombine.low %v4527_v30, %v4537_v34  ;;  %v4546_v50 = vrot.slane %v4545_v27, 4  ;;  %v2125_v37 = vpop.f32.mrf.mxu1  ;;  %v6687_v31 = vpop.f32.mrf.mxu0 }
 0x14e   : > { %v4555_v38 = vor.u32 %v4554_v11, %v4550_v48  ;;  %v4560_v35 = vrot.slane %v4558_v49, 5  ;;  %v5124_v10 = vsel %vm7079_vm6, %v6356_v28, %v5123_v32  ;;  %v5125_v52 = vrot.slane %v5123_v32, 4 }
 0x14f   : > { %v8317_v51 = vadd.f32 %v1811_v24, %v1317_v46  ;;  %v1320_v16 = vadd.f32 %v6614_v8, %v8757_v56  ;;  %6815 = vmatprep.mubr.msk.bf16.mxu1 %vm314_vm1, %v6275_v17  ;;  %v4551_v6 = vsel %vm7093_vm7, %v4546_v50, %v4550_v48  ;;  %v1318_v34 = vadd.f32 %v1245_v0, %v8758_v22  ;;  %v6654_v8 = vpop.f32.mrf.mxu1  ;;  %v2915_v0 = vpop.f32.mrf.mxu0 }
 0x150   : > { %v4556_v45 = vrot.slane %v4555_v38, 4  ;;  %v2286_v3 = vadd.f32 %v6653_v21, %v7924_v36  ;;  %v5127_v30 = vsel %vm7079_vm6, %v5125_v52, %v5126_v25  ;;  %v2284_v24 = vadd.f32 %v2125_v37, %v7933_v41 }
 0x151   : > { %v8327_v18 = vadd.f32 %v6648_v58, %v1320_v16  ;;  %v6373_v27 = vcombine.low %v5124_v10, %v5127_v30  ;;  %v8332_v11 = vadd.f32 %v1814_v13, %v1318_v34  ;;  %v2287_v42 = vadd.f32 %v6654_v8, %v7945_v63  ;;  %v2128_v28 = vpop.f32.mrf.mxu1  ;;  %v6688_v58 = vpop.f32.mrf.mxu0 }
 0x152   : > { %v4561_v57 = vsel %vm7093_vm7, %v4556_v45, %v4560_v35  ;;  %v8334_v48 = vadd.f32 %v6687_v31, %v2286_v3  ;;  %v8336_v36 = vadd.f32 %v2915_v0, %v2284_v24  ;;  %v2285_v41 = vadd.f32 %v2128_v28, %v7962_v29 }
 0x153   : > { %v6276_v49 = vcombine.low %v4551_v6, %v4561_v57  ;;  %6850 = vmatmul.mubr.msk.bf16.gmra.mxu0 %vm314_vm1, %v6373_v27  ;;  %v8342_v55 = vadd.f32 %v6688_v58, %v2287_v42  ;;  %v6657_v13 = vpop.f32.mrf.mxu1  ;;  %v2918_v32 = vpop.f32.mrf.mxu0 }
 0x154   : > { %v2290_v25 = vadd.f32 %v6657_v13, %v7970_v47  ;;  %v8345_v53 = vadd.f32 %v2918_v32, %v2285_v41 }
 0x155   : > { %6816 = vmatmul.mubr.msk.bf16.gmra.mxu1 %vm314_vm1, %v6276_v49  ;;  %v2141_v46 = vpop.f32.mrf.mxu1  ;;  %v6691_v21 = vpop.f32.mrf.mxu0 }
 0x156   : > { %v2288_v63 = vadd.f32 %v2141_v46, %v7981_v40  ;;  %v8348_v17 = vadd.f32 %v6691_v21, %v2290_v25 }
 0x157   : > { %v6658_v50 = vpop.f32.mrf.mxu1  ;;  %v2931_v38 = vpop.f32.mrf.mxu0 }
 0x158   : > { %v2291_v29 = vadd.f32 %v6658_v50, %v7992_v44  ;;  %v8351_v35 = vadd.f32 %v2931_v38, %v2288_v63 }
 0x159   : > { %v2144_v10 = vpop.f32.mrf.mxu1  ;;  %v6692_v52 = vpop.f32.mrf.mxu0 }
 0x15a   : > { %v2289_v56 = vadd.f32 %v2144_v10, %v8007_v33  ;;  %v8354_v16 = vadd.f32 %v6692_v52, %v2291_v29 }
 0x15b   : > { %v6661_v47 = vpop.f32.mrf.mxu1  ;;  %v2934_v37 = vpop.f32.mrf.mxu0 }
 0x15c   : > { %v2294_v6 = vadd.f32 %v6661_v47, %v8032_v61  ;;  %v8357_v45 = vadd.f32 %v2934_v37, %v2289_v56 }
 0x15d   : > { %v2157_v40 = vpop.f32.mrf.mxu1  ;;  %v6695_v3 = vpop.f32.mrf.mxu0 }
 0x15e   : > { %v2292_v22 = vadd.f32 %v2157_v40, %v8046_v14  ;;  %v8361_v31 = vadd.f32 %v6695_v3, %v2294_v6 }
 0x15f   : > { %v6662_v34 = vpop.f32.mrf.mxu1  ;;  %v2947_v24 = vpop.f32.mrf.mxu0 }
 0x160   : > { %v2295_v44 = vadd.f32 %v6662_v34, %v8052_v20  ;;  %v8364_v8 = vadd.f32 %v2947_v24, %v2292_v22 }
 0x161   : > { %v2160_v30 = vpop.f32.mrf.mxu1  ;;  %v6696_v27 = vpop.f32.mrf.mxu0 }
 0x162   : > { %v2293_v33 = vadd.f32 %v2160_v30, %v8067_v1  ;;  %v8367_v0 = vadd.f32 %v6696_v27, %v2295_v44 }
 0x163   : > { %v6665_v57 = vpop.f32.mrf.mxu1  ;;  %v2950_v14 = vpop.f32.mrf.mxu0 }
 0x164   : > { %v2298_v61 = vadd.f32 %v6665_v57, %v8097_v15  ;;  %v8370_v28 = vadd.f32 %v2950_v14, %v2293_v33 }
 0x165   : > { %v2173_v49 = vpop.f32.mrf.mxu1  ;;  %v6699_v58 = vpop.f32.mrf.mxu0 }
 0x166   : > { %v2296_v42 = vadd.f32 %v2173_v49, %v8110_v19  ;;  %v8373_v13 = vadd.f32 %v6699_v58, %v2298_v61 }
 0x167   : > { %v6666_v20 = vpop.f32.mrf.mxu1  ;;  %v2963_v32 = vpop.f32.mrf.mxu0 }
 0x168   : > { %v2299_v41 = vadd.f32 %v6666_v20, %v8121_v26  ;;  %v8376_v46 = vadd.f32 %v2963_v32, %v2296_v42 }
 0x169   : > { %v2176_v1 = vpop.f32.mrf.mxu1  ;;  %v6700_v21 = vpop.f32.mrf.mxu0 }
 0x16a   : > { %v2297_v25 = vadd.f32 %v2176_v1, %v8137_v9  ;;  %v8379_v50 = vadd.f32 %v6700_v21, %v2299_v41 }
 0x16b   : > { %v6669_v15 = vpop.f32.mrf.mxu1  ;;  %v2966_v38 = vpop.f32.mrf.mxu0 }
 0x16c   : > { %v2302_v63 = vadd.f32 %v6669_v15, %v8160_v39  ;;  %v8382_v10 = vadd.f32 %v2966_v38, %v2297_v25 }
 0x16d   : > { %v2189_v19 = vpop.f32.mrf.mxu1  ;;  %v6703_v52 = vpop.f32.mrf.mxu0 }
 0x16e   : > { %v2300_v29 = vadd.f32 %v2189_v19, %v8181_v4  ;;  %8759 = vst [vmem:[#allocation4_spill] sm:$0xff] %v8382_v10  ;;  %v8385_v47 = vadd.f32 %v6703_v52, %v2302_v63 }
 0x16f   : > { %v6670_v26 = vpop.f32.mrf.mxu1  ;;  %v2979_v37 = vpop.f32.mrf.mxu0 }
 0x170   : > { %v2303_v56 = vadd.f32 %v6670_v26, %v8189_v62  ;;  %8760 = vst [vmem:[#allocation5_spill] sm:$0xff] %v8385_v47  ;;  %v8388_v40 = vadd.f32 %v2979_v37, %v2300_v29 }
 0x171   : > { %v2192_v9 = vpop.f32.mrf.mxu1  ;;  %v6704_v22 = vpop.f32.mrf.mxu0 }
 0x172   : > { %v2301_v6 = vadd.f32 %v2192_v9, %v8194_v60  ;;  %8761 = vst [vmem:[#allocation6_spill] sm:$0xff] %v8388_v40  ;;  %v8391_v3 = vadd.f32 %v6704_v22, %v2303_v56 }
 0x173   : > { %v6673_v39 = vpop.f32.mrf.mxu1  ;;  %v2982_v44 = vpop.f32.mrf.mxu0 }
 0x174   : > { %v2306_v34 = vadd.f32 %v6673_v39, %v8219_v5  ;;  %8762 = vst [vmem:[#allocation7_spill] sm:$0xff] %v8391_v3  ;;  %v8394_v24 = vadd.f32 %v2982_v44, %v2301_v6 }
 0x175   : > { %v2205_v4 = vpop.f32.mrf.mxu1  ;;  %v6707_v33 = vpop.f32.mrf.mxu0 }
 0x176   : > { %v2304_v30 = vadd.f32 %v2205_v4, %v8234_v54  ;;  %8763 = vst [vmem:[#allocation8_spill] sm:$0xff] %v8394_v24  ;;  %v8397_v27 = vadd.f32 %v6707_v33, %v2306_v34 }
 0x177   : > { %v6674_v62 = vpop.f32.mrf.mxu1  ;;  %v2995_v61 = vpop.f32.mrf.mxu0 }
 0x178   : > { %v2307_v57 = vadd.f32 %v6674_v62, %v8236_v2  ;;  %8764 = vst [vmem:[#allocation9_spill] sm:$0xff] %v8397_v27  ;;  %v8400_v14 = vadd.f32 %v2995_v61, %v2304_v30 }
 0x179   : > { %v2208_v60 = vpop.f32.mrf.mxu1  ;;  %v6708_v42 = vpop.f32.mrf.mxu0 }
 0x17a   : > { %v2305_v49 = vadd.f32 %v2208_v60, %v8249_v43  ;;  %8765 = vst [vmem:[#allocation10_spill] sm:$0xff] %v8400_v14  ;;  %v8403_v58 = vadd.f32 %v6708_v42, %v2307_v57 }
 0x17b   : > { %v6677_v5 = vpop.f32.mrf.mxu1  ;;  %v2998_v41 = vpop.f32.mrf.mxu0 }
 0x17c   : > { %v2310_v20 = vadd.f32 %v6677_v5, %v8261_v59  ;;  %8766 = vst [vmem:[#allocation11_spill] sm:$0xff] %v8403_v58  ;;  %v8406_v32 = vadd.f32 %v2998_v41, %v2305_v49  ;;  %v8768_v59 = vld [vmem:[#allocation3_spill] sm:$0xff] }
 0x17d   : > { %v2221_v54 = vpop.f32.mrf.mxu1  ;;  %v6711_v21 = vpop.f32.mrf.mxu0 }
 0x17e   : > { %v2308_v1 = vadd.f32 %v2221_v54, %v8278_v12  ;;  %8767 = vst [vmem:[#allocation12_spill] sm:$0xff] %v8406_v32  ;;  %v8410_v63 = vadd.f32 %v6711_v21, %v2310_v20 }
 0x17f   : > { %v6678_v2 = vpop.f32.mrf.mxu1  ;;  %v3011_v38 = vpop.f32.mrf.mxu0 }
 0x180   : > { %v2311_v25 = vadd.f32 %v6678_v2, %v8280_v23  ;;  %v8413_v26 = vadd.f32 %v3011_v38, %v2308_v1 }
 0x181   : > { %v2224_v15 = vpop.f32.mrf.mxu1  ;;  %v6712_v56 = vpop.f32.mrf.mxu0 }
 0x182   : > { %v2309_v43 = vadd.f32 %v2224_v15, %v8288_v7  ;;  %v8416_v9 = vadd.f32 %v6712_v56, %v2311_v25 }
 0x183   : > { %v6681_v19 = vpop.f32.mrf.mxu1  ;;  %v3014_v23 = vpop.f32.mrf.mxu0 }
 0x184   : > { %v2314_v29 = vadd.f32 %v6681_v19, %v8768_v59  ;;  %v8419_v39 = vadd.f32 %v3014_v23, %v2309_v43 }
 0x185   : > { %v2237_v52 = vpop.f32.mrf.mxu1  ;;  %v6715_v22 = vpop.f32.mrf.mxu0 }
 0x186   : > { %v2312_v12 = vadd.f32 %v2237_v52, %v8317_v51  ;;  %v8422_v4 = vadd.f32 %v6715_v22, %v2314_v29 }
 0x187   : > { %v6682_v37 = vpop.f32.mrf.mxu1  ;;  %v3027_v30 = vpop.f32.mrf.mxu0 }
 0x188   : > { %v2315_v6 = vadd.f32 %v6682_v37, %v8327_v18  ;;  %v8426_v62 = vadd.f32 %v3027_v30, %v2312_v12 }
 0x189   : > { %v2240_v7 = vpop.f32.mrf.mxu1  ;;  %v6716_v33 = vpop.f32.mrf.mxu0 }
 0x18a   : > { %v2313_v34 = vadd.f32 %v2240_v7, %v8332_v11  ;;  %v8430_v57 = vadd.f32 %v6716_v33, %v2315_v6 }
 0x18b   : > { %v8424_v44 = vpop.f32.mrf.mxu1  ;;  %v3030_v18 = vpop.f32.mrf.mxu0 }
 0x18c   : > { %v8434_v61 = vadd.f32 %v3030_v18, %v2313_v34 }
 0x18d   : > { %v8428_v51 = vpop.f32.mrf.mxu1  ;;  %v8438_v11 = vpop.f32.mrf.mxu0 }
 0x18f   : > { %v8432_v60 = vpop.f32.mrf.mxu1  ;;  %v8440_v5 = vpop.f32.mrf.mxu0 }
 0x191   : > { %v8436_v49 = vpop.f32.mrf.mxu1  ;;  %v8444_v20 = vpop.f32.mrf.mxu0 }
 0x193   : > { %v8442_v42 = vpop.f32.mrf.mxu1  ;;  %v8448_v41 = vpop.f32.mrf.mxu0 }
 0x195   : > { %v8446_v54 = vpop.f32.mrf.mxu1  ;;  %v8452_v2 = vpop.f32.mrf.mxu0 }
 0x197   : > { %v8450_v1 = vpop.f32.mrf.mxu1  ;;  %v8456_v15 = vpop.f32.mrf.mxu0 }
 0x199   : > { %v8454_v25 = vpop.f32.mrf.mxu1  ;;  %v8460_v43 = vpop.f32.mrf.mxu0 }
 0x19b   : > { %v8458_v21 = vpop.f32.mrf.mxu1  ;;  %v8464_v38 = vpop.f32.mrf.mxu0 }
 0x19d   : > { %v8462_v19 = vpop.f32.mrf.mxu1  ;;  %v8468_v29 = vpop.f32.mrf.mxu0 }
 0x19f   : > { %v8466_v59 = vpop.f32.mrf.mxu1  ;;  %v8472_v56 = vpop.f32.mrf.mxu0 }
 0x1a1   : > { %v8470_v52 = vpop.f32.mrf.mxu1  ;;  %v8476_v37 = vpop.f32.mrf.mxu0 }
 0x1a3   : > { %v8474_v12 = vpop.f32.mrf.mxu1  ;;  %v8480_v6 = vpop.f32.mrf.mxu0 }
 0x1a5   : > { %v8478_v23 = vpop.f32.mrf.mxu1  ;;  %v8484_v22 = vpop.f32.mrf.mxu0 }
 0x1a6   : > { %8770 = vst [vmem:[#allocation14_spill] sm:$0xff] %v8484_v22 }
 0x1a7   : > { %v8482_v7 = vpop.f32.mrf.mxu1  ;;  %v8488_v30 = vpop.f32.mrf.mxu0 }
 0x1a8   : > { %8769 = vst [vmem:[#allocation13_spill] sm:$0xff] %v8482_v7  ;;  %8772 = vst [vmem:[#allocation3_spill] sm:$0xff] %v8488_v30 }
 0x1a9   : > { %v8486_v34 = vpop.f32.mrf.mxu1  ;;  %v8492_v18 = vpop.f32.mrf.mxu0 }
 0x1aa   : > { %8771 = vst [vmem:[#allocation15_spill] sm:$0xff] %v8486_v34  ;;  %8774 = vst [vmem:[#allocation17_spill] sm:$0xff] %v8492_v18 }
 0x1ab   : > { %v8490_v33 = vpop.f32.mrf.mxu1  ;;  %v8496_v58 = vpop.f32.mrf.mxu0 }
 0x1ac   : > { %8773 = vst [vmem:[#allocation16_spill] sm:$0xff] %v8490_v33  ;;  %8776 = vst [vmem:[#allocation19_spill] sm:$0xff] %v8496_v58 }
 0x1ad   : > { %v8494_v32 = vpop.f32.mrf.mxu1  ;;  %v8500_v27 = vpop.f32.mrf.mxu0 }
 0x1ae   : > { %8775 = vst [vmem:[#allocation18_spill] sm:$0xff] %v8494_v32  ;;  %8778 = vst [vmem:[#allocation21_spill] sm:$0xff] %v8500_v27 }
 0x1af   : > { %v8498_v14 = vpop.f32.mrf.mxu1  ;;  %v8504_v3 = vpop.f32.mrf.mxu0 }
 0x1b0   : > { %8777 = vst [vmem:[#allocation20_spill] sm:$0xff] %v8498_v14  ;;  %8780 = vst [vmem:[#allocation23_spill] sm:$0xff] %v8504_v3 }
 0x1b1   : > { %v8502_v24 = vpop.f32.mrf.mxu1  ;;  %v8508_v47 = vpop.f32.mrf.mxu0 }
 0x1b2   : > { %8779 = vst [vmem:[#allocation22_spill] sm:$0xff] %v8502_v24  ;;  %8782 = vst [vmem:[#allocation25_spill] sm:$0xff] %v8508_v47 }
 0x1b3   : > { %v8506_v40 = vpop.f32.mrf.mxu1  ;;  %v8512_v33 = vpop.f32.mrf.mxu0 }
 0x1b4   : > { %8781 = vst [vmem:[#allocation24_spill] sm:$0xff] %v8506_v40  ;;  %8784 = vst [vmem:[#allocation27_spill] sm:$0xff] %v8512_v33 }
 0x1b5   : > { %v8510_v34 = vpop.f32.mrf.mxu1  ;;  %v8516_v32 = vpop.f32.mrf.mxu0 }
 0x1b6   : > { %8783 = vst [vmem:[#allocation26_spill] sm:$0xff] %v8510_v34  ;;  %8786 = vst [vmem:[#allocation29_spill] sm:$0xff] %v8516_v32 }
 0x1b7   : > { %v8514_v18 = vpop.f32.mrf.mxu1  ;;  %v8520_v14 = vpop.f32.mrf.mxu0 }
 0x1b8   : > { %8785 = vst [vmem:[#allocation28_spill] sm:$0xff] %v8514_v18  ;;  %8788 = vst [vmem:[#allocation31_spill] sm:$0xff] %v8520_v14 }
 0x1b9   : > { %v8518_v58 = vpop.f32.mrf.mxu1  ;;  %v8523_v3 = vpop.f32.mrf.mxu0 }
 0x1ba   : > { %8787 = vst [vmem:[#allocation30_spill] sm:$0xff] %v8518_v58  ;;  %8789 = vst [vmem:[#allocation32_spill] sm:$0xff] %v8523_v3 }
 0x1bb   : > { %v8526_v10 = vpop.f32.mrf.mxu0 }
 0x1bc   : > { %8790 = vst [vmem:[#allocation33_spill] sm:$0xff] %v8526_v10 }
 0x1bd   : > { %v6779_v18 = vpop.f32.mrf.mxu0 }
 0x1be   : > { %v6745_v27 = vpop.f32.mrf.mxu1 }
 0x1bf   : > { %v3666_v24 = vadd.f32 %v6745_v27, %v8410_v63  ;;  %v4003_v14 = vpop.f32.mrf.mxu0 }
 0x1c0   : > { %v3577_v40 = vpop.f32.mrf.mxu1 }
 0x1c1   : > { %v3664_v47 = vadd.f32 %v3577_v40, %v8413_v26  ;;  %v8529_v32 = vadd.f32 %v6779_v18, %v3666_v24  ;;  %v6780_v63 = vpop.f32.mrf.mxu0  ;;  %v3642_v24 = vadd.f32 %v8424_v44, %v8334_v48  ;;  %v3643_v48 = vadd.f32 %v8432_v60, %v8342_v55 }
 0x1c2   : > { %v6746_v34 = vpop.f32.mrf.mxu1 }
 0x1c3   : > { %v3667_v33 = vadd.f32 %v6746_v34, %v8416_v9  ;;  %v8532_v7 = vadd.f32 %v4003_v14, %v3664_v47  ;;  %v4006_v10 = vpop.f32.mrf.mxu0  ;;  %v3640_v14 = vadd.f32 %v8428_v51, %v8336_v36  ;;  %v3641_v51 = vadd.f32 %v8436_v49, %v8345_v53 }
 0x1c4   : > { %v3580_v30 = vpop.f32.mrf.mxu1  ;;  %v4069_v55 = vadd.f32 %v8444_v20, %v3643_v48  ;;  %v3647_v20 = vadd.f32 %v8450_v1, %v8354_v16 }
 0x1c5   : > { %v3665_v58 = vadd.f32 %v3580_v30, %v8419_v39  ;;  %v8535_v40 = vadd.f32 %v6780_v63, %v3667_v33  ;;  %v6783_v30 = vpop.f32.mrf.mxu0 }
 0x1c6   : > { %v6749_v22 = vpop.f32.mrf.mxu1 }
 0x1c7   : > { %v3670_v27 = vadd.f32 %v6749_v22, %v8422_v4  ;;  %v8540_v34 = vadd.f32 %v4006_v10, %v3665_v58  ;;  %v4019_v33 = vpop.f32.mrf.mxu0 }
 0x1c8   : > { %v3593_v3 = vpop.f32.mrf.mxu1 }
 0x1c9   : > { %v3668_v26 = vadd.f32 %v3593_v3, %v8426_v62  ;;  %v8545_v4 = vadd.f32 %v6783_v30, %v3670_v27  ;;  %v4068_v62 = vadd.f32 %v8438_v11, %v3642_v24  ;;  %v6784_v58 = vpop.f32.mrf.mxu0 }
 0x1ca   : > { %v6750_v9 = vpop.f32.mrf.mxu1 }
 0x1cb   : > { %v3671_v39 = vadd.f32 %v6750_v9, %v8430_v57  ;;  %v8551_v10 = vadd.f32 %v4019_v33, %v3668_v26  ;;  %v4066_v57 = vadd.f32 %v8440_v5, %v3640_v14  ;;  %v4022_v11 = vpop.f32.mrf.mxu0  ;;  %v3644_v5 = vadd.f32 %v8446_v54, %v8351_v35  ;;  %v8568_v9 = vld [vmem:[%s8716_s2] ss:$0 sm:$0xff] }
 0x1cc   : > { %v3596_v47 = vpop.f32.mrf.mxu1  ;;  %v3645_v14 = vadd.f32 %v8454_v25, %v8357_v45  ;;  %v3650_v45 = vadd.f32 %v8458_v21, %v8361_v31  ;;  %v3648_v25 = vadd.f32 %v8462_v19, %v8364_v8 }
 0x1cd   : > { %v3669_v22 = vadd.f32 %v3596_v47, %v8434_v61  ;;  %v8554_v18 = vadd.f32 %v6784_v58, %v3671_v39  ;;  %v3646_v61 = vadd.f32 %v8442_v42, %v8348_v17  ;;  %v4067_v17 = vadd.f32 %v8448_v41, %v3641_v51 }
 0x1ce   : > { %v6789_v3 = vpop.f32.mrf.mxu1  ;;  %v4070_v47 = vadd.f32 %v8456_v15, %v3644_v5  ;;  %v4073_v15 = vadd.f32 %v8460_v43, %v3647_v20  ;;  %v4071_v51 = vadd.f32 %v8464_v38, %v3645_v14  ;;  %v3651_v43 = vadd.f32 %v8466_v59, %v8367_v0 }
 0x1cf   : > { %v4858_v36 = vadd.f32 %v6789_v3, %v4068_v62  ;;  %v8561_v60 = vadd.f32 %v4022_v11, %v3669_v22  ;;  %v4072_v42 = vadd.f32 %v8452_v2, %v3646_v61  ;;  %v3649_v38 = vadd.f32 %v8470_v52, %v8370_v28 }
 0x1d0   : > { %v4697_v44 = vpop.f32.mrf.mxu1 }
 0x1d1   : > { %v4856_v63 = vadd.f32 %v4697_v44, %v4066_v57 }
 0x1d2   : > { %v6790_v27 = vpop.f32.mrf.mxu1 }
 0x1d3   : > { %v4859_v24 = vadd.f32 %v6790_v27, %v4069_v55  ;;  %v4076_v55 = vadd.f32 %v8468_v29, %v3650_v45 }
 0x1d4   : > { %v4700_v53 = vpop.f32.mrf.mxu1 }
 0x1d5   : > { %v6823_v26 = vpop.f32.mrf.mxu0  ;;  %v4857_v33 = vadd.f32 %v4700_v53, %v4067_v17 }
 0x1d6   : > { %v5424_v49 = vadd.f32 %v6823_v26, %v4858_v36  ;;  %v6793_v30 = vpop.f32.mrf.mxu1  ;;  %v3654_v26 = vadd.f32 %v8474_v12, %v8373_v13  ;;  %v4077_v13 = vadd.f32 %v8476_v37, %v3651_v43  ;;  %v3652_v12 = vadd.f32 %v8478_v23, %v8376_v46  ;;  %v8796_v43 = vld [vmem:[#allocation5_spill] sm:$0xff] }
 0x1d7   : > { %v5263_v39 = vpop.f32.mrf.mxu0  ;;  %v4862_v3 = vadd.f32 %v6793_v30, %v4072_v42 }
 0x1d8   : > { %v5527_v35 = vadd.f32 %v8568_v9, %v5424_v49  ;;  %v5422_v54 = vadd.f32 %v5263_v39, %v4856_v63  ;;  %v4713_v41 = vpop.f32.mrf.mxu1  ;;  %v4074_v63 = vadd.f32 %v8472_v56, %v3648_v25  ;;  %v8792_v25 = vld [vmem:[#allocation14_spill] sm:$0xff] }
 0x1d9   : > { %v6824_v22 = vpop.f32.mrf.mxu0  ;;  %v4860_v48 = vadd.f32 %v4713_v41, %v4070_v47  ;;  %v8791_v41 = vld [vmem:[#allocation13_spill] sm:$0xff] }
 0x1da   : > { %vm5559_vm8 = vcmp.ge.f32.partialorder %v5527_v35, 0.0  ;;  %v5591_v16 = vmul.f32 0.1, %v5527_v35  ;;  %v5525_v1 = vadd.f32 %v8568_v9, %v5422_v54  ;;  %v5425_v2 = vadd.f32 %v6824_v22, %v4859_v24  ;;  %v6794_v58 = vpop.f32.mrf.mxu1 }
 0x1db   : > { %v5266_v62 = vpop.f32.mrf.mxu0  ;;  %v4863_v21 = vadd.f32 %v6794_v58, %v4073_v15 }
 0x1dc   : > { %v5623_v44 = vsel %vm5559_vm8, %v5527_v35, %v5591_v16  ;;  %vm5557_vm9 = vcmp.ge.f32.partialorder %v5525_v1, 0.0  ;;  %v5589_v57 = vmul.f32 0.1, %v5525_v1  ;;  %v5528_v36 = vadd.f32 %v8568_v9, %v5425_v2  ;;  %v4716_v11 = vpop.f32.mrf.mxu1 }
 0x1dd   : > { %5655 = vst [vmem:[%s8582_s20 + $0x10] sm:$0xff] %v5623_v44  ;;  %v5423_v61 = vadd.f32 %v5266_v62, %v4857_v33  ;;  %v6827_v31 = vpop.f32.mrf.mxu0  ;;  %v4861_v17 = vadd.f32 %v4716_v11, %v4071_v51  ;;  %v3655_v16 = vadd.f32 %v8791_v41, %v8379_v50  ;;  %v4080_v62 = vadd.f32 %v8792_v25, %v3654_v26  ;;  %v8794_v44 = vld [vmem:[#allocation4_spill] sm:$0xff]  ;;  %v8798_v26 = vld [vmem:[#allocation17_spill] sm:$0xff] }
 0x1de   : > { %v5621_v8 = vsel %vm5557_vm9, %v5525_v1, %v5589_v57  ;;  %vm5560_vm10 = vcmp.ge.f32.partialorder %v5528_v36, 0.0  ;;  %v5592_v19 = vmul.f32 0.1, %v5528_v36  ;;  %v5428_v27 = vadd.f32 %v6827_v31, %v4862_v3  ;;  %v6797_v5 = vpop.f32.mrf.mxu1  ;;  %v8795_v57 = vld [vmem:[#allocation15_spill] sm:$0xff] }
 0x1df   : > { %5653 = vst [vmem:[%s8582_s20] sm:$0xff] %v5621_v8  ;;  %v5526_v0 = vadd.f32 %v8568_v9, %v5423_v61  ;;  %v5279_v59 = vpop.f32.mrf.mxu0  ;;  %v4866_v42 = vadd.f32 %v6797_v5, %v4076_v55  ;;  %v4075_v3 = vadd.f32 %v8480_v6, %v3649_v38  ;;  %v3653_v6 = vadd.f32 %v8795_v57, %v8794_v44  ;;  %v8797_v61 = vld [vmem:[#allocation16_spill] sm:$0xff] }
 0x1e0   : > { %v5624_v53 = vsel %vm5560_vm10, %v5528_v36, %v5592_v19  ;;  %v5531_v49 = vadd.f32 %v8568_v9, %v5428_v27  ;;  %v5426_v24 = vadd.f32 %v5279_v59, %v4860_v48  ;;  %v4729_v28 = vpop.f32.mrf.mxu1  ;;  %v8793_v48 = vld [vmem:[#allocation3_spill] sm:$0xff]  ;;  %v3658_v31 = vadd.f32 %v8797_v61, %v8796_v43  ;;  %v8806_v61 = vld [vmem:[#allocation25_spill] sm:$0xff] }
 0x1e1   : > { %5656 = vst [vmem:[%s8582_s20 + $0x18] sm:$0xff] %v5624_v53  ;;  %vm5558_vm11 = vcmp.ge.f32.partialorder %v5526_v0, 0.0  ;;  %v5590_v29 = vmul.f32 0.1, %v5526_v0  ;;  %v6828_v56 = vpop.f32.mrf.mxu0  ;;  %v4864_v54 = vadd.f32 %v4729_v28, %v4074_v63  ;;  %v4078_v58 = vadd.f32 %v8793_v48, %v3652_v12 }
 0x1e2   : > { %vm5563_vm12 = vcmp.ge.f32.partialorder %v5531_v49, 0.0  ;;  %v5595_v52 = vmul.f32 0.1, %v5531_v49  ;;  %v5529_v20 = vadd.f32 %v8568_v9, %v5426_v24  ;;  %v5429_v39 = vadd.f32 %v6828_v56, %v4863_v21  ;;  %v6798_v47 = vpop.f32.mrf.mxu1  ;;  %v8800_v24 = vld [vmem:[#allocation18_spill] sm:$0xff] }
 0x1e3   : > { %v5622_v30 = vsel %vm5558_vm11, %v5526_v0, %v5590_v29  ;;  %v5282_v35 = vpop.f32.mrf.mxu0  ;;  %v4867_v46 = vadd.f32 %v6798_v47, %v4077_v13  ;;  %v4081_v53 = vadd.f32 %v8798_v26, %v3655_v16  ;;  %v8803_v16 = vld [vmem:[#allocation7_spill] sm:$0xff]  ;;  %v8810_v26 = vld [vmem:[#allocation24_spill] sm:$0xff] }
 0x1e4   : > { %5654 = vst [vmem:[%s8582_s20 + $0x8] sm:$0xff] %v5622_v30  ;;  %v5627_v14 = vsel %vm5563_vm12, %v5531_v49, %v5595_v52  ;;  %vm5561_vm13 = vcmp.ge.f32.partialorder %v5529_v20, 0.0  ;;  %v5593_v22 = vmul.f32 0.1, %v5529_v20  ;;  %v5532_v33 = vadd.f32 %v8568_v9, %v5429_v39  ;;  %v4732_v23 = vpop.f32.mrf.mxu1  ;;  %v8799_v49 = vld [vmem:[#allocation6_spill] sm:$0xff] }
 0x1e5   : > { %5659 = vst [vmem:[%s8582_s20 + $0x30] sm:$0xff] %v5627_v14  ;;  %v5427_v37 = vadd.f32 %v5282_v35, %v4861_v17  ;;  %v6831_v1 = vpop.f32.mrf.mxu0  ;;  %v4865_v55 = vadd.f32 %v4732_v23, %v4075_v3  ;;  %v3656_v29 = vadd.f32 %v8800_v24, %v8799_v49  ;;  %v8802_v3 = vld [vmem:[#allocation21_spill] sm:$0xff] }
 0x1e6   : > { %v5625_v2 = vsel %vm5561_vm13, %v5529_v20, %v5593_v22  ;;  %vm5564_vm14 = vcmp.ge.f32.partialorder %v5532_v33, 0.0  ;;  %v5596_v15 = vmul.f32 0.1, %v5532_v33  ;;  %v5432_v45 = vadd.f32 %v6831_v1, %v4866_v42  ;;  %v6801_v51 = vpop.f32.mrf.mxu1  ;;  %v8801_v22 = vld [vmem:[#allocation19_spill] sm:$0xff] }
 0x1e7   : > { %5657 = vst [vmem:[%s8582_s20 + $0x20] sm:$0xff] %v5625_v2  ;;  %v5530_v50 = vadd.f32 %v8568_v9, %v5427_v37  ;;  %v5295_v36 = vpop.f32.mrf.mxu0  ;;  %v4870_v63 = vadd.f32 %v6801_v51, %v4080_v62  ;;  %v4084_v41 = vadd.f32 %v8802_v3, %v3658_v31  ;;  %v8804_v37 = vld [vmem:[#allocation20_spill] sm:$0xff] }
 0x1e8   : > { %v5628_v21 = vsel %vm5564_vm14, %v5532_v33, %v5596_v15  ;;  %v5535_v11 = vadd.f32 %v8568_v9, %v5432_v45  ;;  %v5430_v8 = vadd.f32 %v5295_v36, %v4864_v54  ;;  %v4745_v38 = vpop.f32.mrf.mxu1  ;;  %v4079_v33 = vadd.f32 %v8801_v22, %v3653_v6  ;;  %v8805_v15 = vld [vmem:[#allocation23_spill] sm:$0xff] }
 0x1e9   : > { %5660 = vst [vmem:[%s8582_s20 + $0x38] sm:$0xff] %v5628_v21  ;;  %vm5562_vm15 = vcmp.ge.f32.partialorder %v5530_v50, 0.0  ;;  %v5594_v19 = vmul.f32 0.1, %v5530_v50  ;;  %v6832_v27 = vpop.f32.mrf.mxu0  ;;  %v4868_v42 = vadd.f32 %v4745_v38, %v4078_v58  ;;  %v3659_v1 = vadd.f32 %v8804_v37, %v8803_v16  ;;  %v8807_v21 = vld [vmem:[#allocation8_spill] sm:$0xff] }
 0x1ea   : > { %vm5567_vm0 = vcmp.ge.f32.partialorder %v5535_v11, 0.0  ;;  %v5599_v0 = vmul.f32 0.1, %v5535_v11  ;;  %v5533_v59 = vadd.f32 %v8568_v9, %v5430_v8  ;;  %v5433_v5 = vadd.f32 %v6832_v27, %v4867_v46  ;;  %v6802_v28 = vpop.f32.mrf.mxu1 }
 0x1eb   : > { %v5626_v56 = vsel %vm5562_vm15, %v5530_v50, %v5594_v19  ;;  %v5298_v17 = vpop.f32.mrf.mxu0  ;;  %v4871_v30 = vadd.f32 %v6802_v28, %v4081_v53  ;;  %v4082_v45 = vadd.f32 %v8805_v15, %v3656_v29  ;;  %v4085_v31 = vadd.f32 %v8806_v61, %v3659_v1 }
 0x1ec   : > { %5658 = vst [vmem:[%s8582_s20 + $0x28] sm:$0xff] %v5626_v56  ;;  %v5631_v52 = vsel %vm5567_vm0, %v5535_v11, %v5599_v0  ;;  %vm5565_vm1 = vcmp.ge.f32.partialorder %v5533_v59, 0.0  ;;  %v5597_v20 = vmul.f32 0.1, %v5533_v59  ;;  %v5536_v39 = vadd.f32 %v8568_v9, %v5433_v5  ;;  %v4748_v35 = vpop.f32.mrf.mxu1  ;;  %v8808_v11 = vld [vmem:[#allocation22_spill] sm:$0xff]  ;;  %v8809_v5 = vld [vmem:[#allocation9_spill] sm:$0xff] }
 0x1ed   : > { %5663 = vst [vmem:[%s8582_s20 + $0x50] sm:$0xff] %v5631_v52  ;;  %v5431_v13 = vadd.f32 %v5298_v17, %v4865_v55  ;;  %v6835_v12 = vpop.f32.mrf.mxu0  ;;  %v4869_v57 = vadd.f32 %v4748_v35, %v4079_v33  ;;  %v3657_v8 = vadd.f32 %v8808_v11, %v8807_v21  ;;  %v3662_v53 = vadd.f32 %v8810_v26, %v8809_v5  ;;  %v8811_v52 = vld [vmem:[#allocation27_spill] sm:$0xff] }
 0x1ee   : > { %v5629_v54 = vsel %vm5565_vm1, %v5533_v59, %v5597_v20  ;;  %vm5568_vm2 = vcmp.ge.f32.partialorder %v5536_v39, 0.0  ;;  %v5600_v47 = vmul.f32 0.1, %v5536_v39  ;;  %v5436_v14 = vadd.f32 %v6835_v12, %v4870_v63  ;;  %v6805_v2 = vpop.f32.mrf.mxu1 }
 0x1ef   : > { %5661 = vst [vmem:[%s8582_s20 + $0x40] sm:$0xff] %v5629_v54  ;;  %v5534_v46 = vadd.f32 %v8568_v9, %v5431_v13  ;;  %v5311_v23 = vpop.f32.mrf.mxu0  ;;  %v4874_v6 = vadd.f32 %v6805_v2, %v4084_v41  ;;  %v4083_v20 = vadd.f32 %v8811_v52, %v3657_v8  ;;  %v8813_v13 = vld [vmem:[#allocation26_spill] sm:$0xff]  ;;  %v8814_v54 = vld [vmem:[#allocation11_spill] sm:$0xff]  ;;  %v8816_v41 = vld [vmem:[#allocation29_spill] sm:$0xff] }
 0x1f0   : > { %v5632_v25 = vsel %vm5568_vm2, %v5536_v39, %v5600_v47  ;;  %v5539_v62 = vadd.f32 %v8568_v9, %v5436_v14  ;;  %v5434_v48 = vadd.f32 %v5311_v23, %v4868_v42  ;;  %v4761_v50 = vpop.f32.mrf.mxu1  ;;  %v8812_v39 = vld [vmem:[#allocation10_spill] sm:$0xff]  ;;  %v8815_v47 = vld [vmem:[#allocation28_spill] sm:$0xff]  ;;  %v4088_v16 = vadd.f32 %v8816_v41, %v3662_v53 }
 0x1f1   : > { %5664 = vst [vmem:[%s8582_s20 + $0x58] sm:$0xff] %v5632_v25  ;;  %vm5566_vm3 = vcmp.ge.f32.partialorder %v5534_v46, 0.0  ;;  %v5598_v58 = vmul.f32 0.1, %v5534_v46  ;;  %v6836_v44 = vpop.f32.mrf.mxu0  ;;  %v4872_v55 = vadd.f32 %v4761_v50, %v4082_v45  ;;  %v3660_v12 = vadd.f32 %v8813_v13, %v8812_v39  ;;  %v8817_v25 = vld [vmem:[#allocation31_spill] sm:$0xff] }
 0x1f2   : > { %vm5571_vm4 = vcmp.ge.f32.partialorder %v5539_v62, 0.0  ;;  %v5603_v36 = vmul.f32 0.1, %v5539_v62  ;;  %v5537_v51 = vadd.f32 %v8568_v9, %v5434_v48  ;;  %v5437_v43 = vadd.f32 %v6836_v44, %v4871_v30  ;;  %v6806_v63 = vpop.f32.mrf.mxu1  ;;  %v8818_v48 = vld [vmem:[#allocation12_spill] sm:$0xff] }
 0x1f3   : > { %v5630_v19 = vsel %vm5566_vm3, %v5534_v46, %v5598_v58  ;;  %v5314_v27 = vpop.f32.mrf.mxu0  ;;  %v4875_v29 = vadd.f32 %v6806_v63, %v4085_v31  ;;  %v3663_v14 = vadd.f32 %v8815_v47, %v8814_v54  ;;  %v8819_v58 = vld [vmem:[#allocation30_spill] sm:$0xff]  ;;  %v8820_v31 = vld [vmem:[#allocation32_spill] sm:$0xff] }
 0x1f4   : > { %5662 = vst [vmem:[%s8582_s20 + $0x48] sm:$0xff] %v5630_v19  ;;  %v5635_v38 = vsel %vm5571_vm4, %v5539_v62, %v5603_v36  ;;  %vm5569_vm5 = vcmp.ge.f32.partialorder %v5537_v51, 0.0  ;;  %v5601_v0 = vmul.f32 0.1, %v5537_v51  ;;  %v5540_v59 = vadd.f32 %v8568_v9, %v5437_v43  ;;  %v4764_v28 = vpop.f32.mrf.mxu1 }
 0x1f5   : > { %5667 = vst [vmem:[%s8582_s20 + $0x70] sm:$0xff] %v5635_v38  ;;  %v5435_v49 = vadd.f32 %v5314_v27, %v4869_v57  ;;  %v6839_v24 = vpop.f32.mrf.mxu0  ;;  %v4873_v46 = vadd.f32 %v4764_v28, %v4083_v20  ;;  %v4086_v62 = vadd.f32 %v8817_v25, %v3660_v12  ;;  %v3661_v44 = vadd.f32 %v8819_v58, %v8818_v48 }
 0x1f6   : > { %v5633_v56 = vsel %vm5569_vm5, %v5537_v51, %v5601_v0  ;;  %vm5572_vm6 = vcmp.ge.f32.partialorder %v5540_v59, 0.0  ;;  %v5604_v17 = vmul.f32 0.1, %v5540_v59  ;;  %v5440_v42 = vadd.f32 %v6839_v24, %v4874_v6  ;;  %v8821_v0 = vld [vmem:[#allocation33_spill] sm:$0xff] }
 0x1f7   : > { %5665 = vst [vmem:[%s8582_s20 + $0x60] sm:$0xff] %v5633_v56  ;;  %v5538_v30 = vadd.f32 %v8568_v9, %v5435_v49  ;;  %v5327_v35 = vpop.f32.mrf.mxu0  ;;  %v4089_v21 = vadd.f32 %v8820_v31, %v3663_v14 }
 0x1f8   : > { %v5636_v22 = vsel %vm5572_vm6, %v5540_v59, %v5604_v17  ;;  %v5543_v33 = vadd.f32 %v8568_v9, %v5440_v42  ;;  %v5438_v3 = vadd.f32 %v5327_v35, %v4872_v55  ;;  %v4087_v59 = vadd.f32 %v8821_v0, %v3661_v44 }
 0x1f9   : > { %5668 = vst [vmem:[%s8582_s20 + $0x78] sm:$0xff] %v5636_v22  ;;  %vm5570_vm7 = vcmp.ge.f32.partialorder %v5538_v30, 0.0  ;;  %v5602_v37 = vmul.f32 0.1, %v5538_v30  ;;  %v6840_v1 = vpop.f32.mrf.mxu0  ;;  %v6809_v45 = vpop.f32.mrf.mxu1 }
 0x1fa   : > { %vm5575_vm8 = vcmp.ge.f32.partialorder %v5543_v33, 0.0  ;;  %v5607_v23 = vmul.f32 0.1, %v5543_v33  ;;  %v5541_v2 = vadd.f32 %v8568_v9, %v5438_v3  ;;  %v5441_v15 = vadd.f32 %v6840_v1, %v4875_v29 }
 0x1fb   : > { %v5634_v57 = vsel %vm5570_vm7, %v5538_v30, %v5602_v37  ;;  %v5330_v6 = vpop.f32.mrf.mxu0  ;;  %v4878_v50 = vadd.f32 %v6809_v45, %v4088_v16  ;;  %v4777_v61 = vpop.f32.mrf.mxu1 }
 0x1fc   : > { %5666 = vst [vmem:[%s8582_s20 + $0x68] sm:$0xff] %v5634_v57  ;;  %v5639_v36 = vsel %vm5575_vm8, %v5543_v33, %v5607_v23  ;;  %vm5573_vm9 = vcmp.ge.f32.partialorder %v5541_v2, 0.0  ;;  %v5605_v51 = vmul.f32 0.1, %v5541_v2  ;;  %v5544_v43 = vadd.f32 %v8568_v9, %v5441_v15 }
 0x1fd   : > { %5671 = vst [vmem:[%s8582_s20 + $0x90] sm:$0xff] %v5639_v36  ;;  %v5439_v11 = vadd.f32 %v5330_v6, %v4873_v46  ;;  %v6843_v8 = vpop.f32.mrf.mxu0  ;;  %v4876_v19 = vadd.f32 %v4777_v61, %v4086_v62  ;;  %v6810_v38 = vpop.f32.mrf.mxu1 }
 0x1fe   : > { %v5637_v27 = vsel %vm5573_vm9, %v5541_v2, %v5605_v51  ;;  %vm5576_vm10 = vcmp.ge.f32.partialorder %v5544_v43, 0.0  ;;  %v5608_v55 = vmul.f32 0.1, %v5544_v43  ;;  %v5444_v63 = vadd.f32 %v6843_v8, %v4878_v50 }
 0x1ff   : > { %5669 = vst [vmem:[%s8582_s20 + $0x80] sm:$0xff] %v5637_v27  ;;  %v5542_v5 = vadd.f32 %v8568_v9, %v5439_v11  ;;  %v5343_v26 = vpop.f32.mrf.mxu0  ;;  %v4879_v53 = vadd.f32 %v6810_v38, %v4089_v21  ;;  %v4780_v56 = vpop.f32.mrf.mxu1 }
 0x200   : > { %v5640_v49 = vsel %vm5576_vm10, %v5544_v43, %v5608_v55  ;;  %v5547_v24 = vadd.f32 %v8568_v9, %v5444_v63  ;;  %v5442_v29 = vadd.f32 %v5343_v26, %v4876_v19  ;;  %v4877_v28 = vadd.f32 %v4780_v56, %v4087_v59 }
 0x201   : > { %5672 = vst [vmem:[%s8582_s20 + $0x98] sm:$0xff] %v5640_v49  ;;  %vm5574_vm11 = vcmp.ge.f32.partialorder %v5542_v5, 0.0  ;;  %v5606_v17 = vmul.f32 0.1, %v5542_v5  ;;  %v6844_v42 = vpop.f32.mrf.mxu0 }
 0x202   : > { %vm5579_vm12 = vcmp.ge.f32.partialorder %v5547_v24, 0.0  ;;  %v5611_v52 = vmul.f32 0.1, %v5547_v24  ;;  %v5545_v20 = vadd.f32 %v8568_v9, %v5442_v29  ;;  %v5445_v39 = vadd.f32 %v6844_v42, %v4879_v53 }
 0x203   : > { %v5638_v13 = vsel %vm5574_vm11, %v5542_v5, %v5606_v17  ;;  %v5346_v12 = vpop.f32.mrf.mxu0 }
 0x204   : > { %5670 = vst [vmem:[%s8582_s20 + $0x88] sm:$0xff] %v5638_v13  ;;  %v5643_v30 = vsel %vm5579_vm12, %v5547_v24, %v5611_v52  ;;  %vm5577_vm13 = vcmp.ge.f32.partialorder %v5545_v20, 0.0  ;;  %v5609_v35 = vmul.f32 0.1, %v5545_v20  ;;  %v5548_v54 = vadd.f32 %v8568_v9, %v5445_v39 }
 0x205   : > { %5675 = vst [vmem:[%s8582_s20 + $0xb0] sm:$0xff] %v5643_v30  ;;  %v5443_v47 = vadd.f32 %v5346_v12, %v4877_v28 }
 0x206   : > { %v5641_v14 = vsel %vm5577_vm13, %v5545_v20, %v5609_v35  ;;  %vm5580_vm14 = vcmp.ge.f32.partialorder %v5548_v54, 0.0  ;;  %v5612_v22 = vmul.f32 0.1, %v5548_v54  ;;  %v6847_v3 = vpop.f32.mrf.mxu0 }
 0x207   : > { %5673 = vst [vmem:[%s8582_s20 + $0xa0] sm:$0xff] %v5641_v14  ;;  %v5546_v33 = vadd.f32 %v8568_v9, %v5443_v47  ;;  %v6813_v16 = vpop.f32.mrf.mxu1 }
 0x208   : > { %v5644_v41 = vsel %vm5580_vm14, %v5548_v54, %v5612_v22  ;;  %v4882_v1 = vadd.f32 %v6813_v16, %v8529_v32  ;;  %v5359_v46 = vpop.f32.mrf.mxu0 }
 0x209   : > { %5676 = vst [vmem:[%s8582_s20 + $0xb8] sm:$0xff] %v5644_v41  ;;  %vm5578_vm15 = vcmp.ge.f32.partialorder %v5546_v33, 0.0  ;;  %v5610_v37 = vmul.f32 0.1, %v5546_v33  ;;  %v4793_v23 = vpop.f32.mrf.mxu1 }
 0x20a   : > { %v5448_v15 = vadd.f32 %v6847_v3, %v4882_v1  ;;  %v4880_v45 = vadd.f32 %v4793_v23, %v8532_v7  ;;  %v6848_v44 = vpop.f32.mrf.mxu0 }
 0x20b   : > { %v5642_v2 = vsel %vm5578_vm15, %v5546_v33, %v5610_v37  ;;  %v6814_v25 = vpop.f32.mrf.mxu1 }
 0x20c   : > { %5674 = vst [vmem:[%s8582_s20 + $0xa8] sm:$0xff] %v5642_v2  ;;  %v5551_v62 = vadd.f32 %v8568_v9, %v5448_v15  ;;  %v5446_v48 = vadd.f32 %v5359_v46, %v4880_v45  ;;  %v4883_v58 = vadd.f32 %v6814_v25, %v8535_v40  ;;  %v5362_v61 = vpop.f32.mrf.mxu0 }
 0x20d   : > { %v4796_v57 = vpop.f32.mrf.mxu1 }
 0x20e   : > { %vm5583_vm0 = vcmp.ge.f32.partialorder %v5551_v62, 0.0  ;;  %v5615_v6 = vmul.f32 0.1, %v5551_v62  ;;  %v5549_v32 = vadd.f32 %v8568_v9, %v5446_v48  ;;  %v5449_v50 = vadd.f32 %v6848_v44, %v4883_v58 }
 0x20f   : > { %v4881_v36 = vadd.f32 %v4796_v57, %v8540_v34 }
 0x210   : > { %v5647_v7 = vsel %vm5583_vm0, %v5551_v62, %v5615_v6  ;;  %vm5581_vm1 = vcmp.ge.f32.partialorder %v5549_v32, 0.0  ;;  %v5613_v51 = vmul.f32 0.1, %v5549_v32  ;;  %v5552_v43 = vadd.f32 %v8568_v9, %v5449_v50 }
 0x211   : > { %5679 = vst [vmem:[%s8582_s20 + $0xd0] sm:$0xff] %v5647_v7  ;;  %v5447_v31 = vadd.f32 %v5362_v61, %v4881_v36 }
 0x212   : > { %v5645_v40 = vsel %vm5581_vm1, %v5549_v32, %v5613_v51  ;;  %vm5584_vm2 = vcmp.ge.f32.partialorder %v5552_v43, 0.0  ;;  %v5616_v21 = vmul.f32 0.1, %v5552_v43 }
 0x213   : > { %5677 = vst [vmem:[%s8582_s20 + $0xc0] sm:$0xff] %v5645_v40  ;;  %v5550_v11 = vadd.f32 %v8568_v9, %v5447_v31  ;;  %v6851_v19 = vpop.f32.mrf.mxu0 }
 0x214   : > { %v5648_v8 = vsel %vm5584_vm2, %v5552_v43, %v5616_v21 }
 0x215   : > { %5680 = vst [vmem:[%s8582_s20 + $0xd8] sm:$0xff] %v5648_v8  ;;  %vm5582_vm3 = vcmp.ge.f32.partialorder %v5550_v11, 0.0  ;;  %v5614_v34 = vmul.f32 0.1, %v5550_v11  ;;  %v6817_v27 = vpop.f32.mrf.mxu1  ;;  %v5375_v63 = vpop.f32.mrf.mxu0 }
 0x216   : > { %v4886_v55 = vadd.f32 %v6817_v27, %v8545_v4 }
 0x217   : > { %v5646_v38 = vsel %vm5582_vm3, %v5550_v11, %v5614_v34  ;;  %v4809_v0 = vpop.f32.mrf.mxu1  ;;  %v6852_v29 = vpop.f32.mrf.mxu0 }
 0x218   : > { %5678 = vst [vmem:[%s8582_s20 + $0xc8] sm:$0xff] %v5646_v38  ;;  %v5452_v59 = vadd.f32 %v6851_v19, %v4886_v55  ;;  %v4884_v5 = vadd.f32 %v4809_v0, %v8551_v10 }
 0x219   : > { %v6818_v26 = vpop.f32.mrf.mxu1  ;;  %v5378_v39 = vpop.f32.mrf.mxu0 }
 0x21a   : > { %v5555_v53 = vadd.f32 %v8568_v9, %v5452_v59  ;;  %v5450_v49 = vadd.f32 %v5375_v63, %v4884_v5  ;;  %v4887_v24 = vadd.f32 %v6818_v26, %v8554_v18 }
 0x21b   : > { %v4812_v56 = vpop.f32.mrf.mxu1 }
 0x21c   : > { %vm5587_vm4 = vcmp.ge.f32.partialorder %v5555_v53, 0.0  ;;  %v5619_v17 = vmul.f32 0.1, %v5555_v53  ;;  %v5553_v4 = vadd.f32 %v8568_v9, %v5450_v49  ;;  %v5453_v42 = vadd.f32 %v6852_v29, %v4887_v24 }
 0x21d   : > { %v4885_v28 = vadd.f32 %v4812_v56, %v8561_v60 }
 0x21e   : > { %v5651_v52 = vsel %vm5587_vm4, %v5555_v53, %v5619_v17  ;;  %vm5585_vm5 = vcmp.ge.f32.partialorder %v5553_v4, 0.0  ;;  %v5617_v10 = vmul.f32 0.1, %v5553_v4  ;;  %v5556_v20 = vadd.f32 %v8568_v9, %v5453_v42 }
 0x21f   : > { %5683 = vst [vmem:[%s8582_s20 + $0xf0] sm:$0xff] %v5651_v52  ;;  %v5451_v18 = vadd.f32 %v5378_v39, %v4885_v28 }
 0x220   : > { %v5649_v13 = vsel %vm5585_vm5, %v5553_v4, %v5617_v10  ;;  %vm5588_vm6 = vcmp.ge.f32.partialorder %v5556_v20, 0.0  ;;  %v5620_v12 = vmul.f32 0.1, %v5556_v20 }
 0x221   : > { %5681 = vst [vmem:[%s8582_s20 + $0xe0] sm:$0xff] %v5649_v13  ;;  %v5554_v30 = vadd.f32 %v8568_v9, %v5451_v18 }
 0x222   : > { %v5652_v35 = vsel %vm5588_vm6, %v5556_v20, %v5620_v12 }
 0x223   : > { %5684 = vst [vmem:[%s8582_s20 + $0xf8] sm:$0xff] %v5652_v35  ;;  %vm5586_vm7 = vcmp.ge.f32.partialorder %v5554_v30, 0.0  ;;  %v5618_v54 = vmul.f32 0.1, %v5554_v30 }
 0x225   : > { %v5650_v60 = vsel %vm5586_vm7, %v5554_v30, %v5618_v54 }
 0x226   : > { %5682 = vst [vmem:[%s8582_s20 + $0xe8] sm:$0xff] %v5650_v60 }
 0x227 PF: > { %s13_s14 = sadd.s32 1, %s6960_s14   ;;  %s8822_s12 = smov %s6956_s13 }
 0x228   : > { %p10_p5 = scmp.ge.s32.totalorder %s13_s14, 4   ;;  %s8823_s13 = smov %s8825_s15 }
 0x22a   :  { %12 = sbr.rel (!%p10_p5) target bundleno = 2 (0x2), region = 73 }

</bundles_post_ra>
